<compile_context>
chip_gen: v7x
topology: tpu7x:2x2x1
jax: 0.10.0
libtpu: 0.0.40
codegen_flags: <defaults>
</compile_context>

<pallas_src>
import functools

import jax
import jax.numpy as jnp
from jax import lax
from jax.experimental import pallas as pl
from jax.experimental.pallas import tpu as pltpu

DP = 128    # lane-padded model dimension (logical D zero-padded to 128)
DKP = 128   # lane-padded per-head dimension


# ---------------------------------------------------------------------------
# Small in-kernel helpers
# ---------------------------------------------------------------------------
def _ln_pad(x, g, b, d_real, eps=1e-5):
    """LayerNorm over the first d_real lanes of a zero-padded last dim."""
    inv_d = 1.0 / float(d_real)
    mu = jnp.sum(x, axis=-1, keepdims=True) * inv_d
    var = jnp.maximum(jnp.sum(x * x, axis=-1, keepdims=True) * inv_d - mu * mu, 0.0)
    return (x - mu) * lax.rsqrt(var + eps) * g + b


def _mm(a, b):
    # bf16 MXU matmul with f32 accumulation (weights are already bf16).
    return jnp.dot(a.astype(jnp.bfloat16), b.astype(jnp.bfloat16),
                   preferred_element_type=jnp.float32)


def _ein(spec, a, b):
    return jnp.einsum(spec, a.astype(jnp.bfloat16), b.astype(jnp.bfloat16),
                      preferred_element_type=jnp.float32)


# ---------------------------------------------------------------------------
# pallas_call plumbing
# ---------------------------------------------------------------------------
def _full_spec(shape):
    nd = len(shape)
    return pl.BlockSpec(shape, lambda i, _nd=nd: (0,) * _nd)


def _pcall(kernel, out_shape, *args):
    """Single whole-array block, grid=(1,)."""
    return pl.pallas_call(
        kernel,
        out_shape=out_shape,
        grid=(1,),
        in_specs=[_full_spec(a.shape) for a in args],
        out_specs=_full_spec(out_shape.shape),
        compiler_params=pltpu.CompilerParams(dimension_semantics=("arbitrary",)),
    )(*args)


# ---------------------------------------------------------------------------
# Kernel 1: fused transformer encoder (all layers + attention pooling)
#   grid = (3 streams "parallel", L layers "arbitrary"); activation carried in VMEM.
# ---------------------------------------------------------------------------
def encoder_kernel(x_ref, wqkv_ref, wo_ref, w1_ref, b1_ref, w2_ref, vec_ref,
                   pw_ref, pb_ref, o_ref, xbuf, *, n_head, d_real):
    layer = pl.program_id(1)
    n_layers = pl.num_programs(1)
    _, b, s_len, dp = x_ref.shape
    t = b * s_len
    dk = d_real // n_head
    scale = 1.0 / (float(dk) ** 0.5)

    @pl.when(layer == 0)
    def _():
        xbuf[...] = x_ref[0]

    x2d = xbuf[...].reshape(t, dp)

    # Fused, lane-dense QKV projection: one (DP, 3*H*DKP) matmul.
    qkv = _mm(x2d, wqkv_ref[0, 0])                                   # (T, 3*H*DKP)

    ctxs = []
    for h in range(n_head):
        q = qkv[:, h * DKP:(h + 1) * DKP].reshape(b, s_len, DKP)
        k = qkv[:, (n_head + h) * DKP:(n_head + h + 1) * DKP].reshape(b, s_len, DKP)
        v = qkv[:, (2 * n_head + h) * DKP:(2 * n_head + h + 1) * DKP].reshape(b, s_len, DKP)
        s = _ein('bqe,bke->bqk', q, k) * scale
        s = s - jnp.max(s, axis=-1, keepdims=True)
        p = jnp.exp(s)
        p = p * pl.reciprocal(jnp.sum(p, axis=-1, keepdims=True), approx=True)
        ctxs.append(_ein('bqk,bke->bqe', p, v).reshape(t, DKP))
    ctx = jnp.concatenate(ctxs, axis=-1)                              # (T, H*DKP)

    bo = vec_ref[0, 0, 0:1, :]
    g1 = vec_ref[0, 0, 1:2, :]
    be1 = vec_ref[0, 0, 2:3, :]
    b2 = vec_ref[0, 0, 3:4, :]
    g2 = vec_ref[0, 0, 4:5, :]
    be2 = vec_ref[0, 0, 5:6, :]

    attn = _mm(ctx, wo_ref[0, 0]) + bo
    h1 = _ln_pad(x2d + attn, g1, be1, d_real)
    f = jnp.maximum(_mm(h1, w1_ref[0, 0]) + b1_ref[0, 0], 0.0)
    f = _mm(f, w2_ref[0, 0]) + b2
    y2d = _ln_pad(h1 + f, g2, be2, d_real)
    xbuf[...] = y2d.reshape(b, s_len, dp)

    @pl.when(layer == n_layers - 1)
    def _():
        y = y2d.reshape(b, s_len, dp)
        # attention pooling; score on the VPU (no 1-column matmul)
        sc = jnp.sum(y * pw_ref[0], axis=-1, keepdims=True) + pb_ref[0]   # (B, S, 1)
        sc = sc - jnp.max(sc, axis=1, keepdims=True)
        w = jnp.exp(sc)
        w = w * pl.reciprocal(jnp.sum(w, axis=1, keepdims=True), approx=True)
        o_ref[0] = jnp.sum(w * y, axis=1)                                 # (B, DP)


def encoder_op(x, ep, pool, cfg):
    ns, b, s_len, dp = x.shape
    n_layers = ep['wqkv'].shape[0]
    kern = functools.partial(encoder_kernel, n_head=cfg['n_head'],
                             d_real=cfg['dimension'])

    def wspec(arr):  # stacked (L, 3, ...) weights -> block (1, 1, ...)
        nd = arr.ndim
        return pl.BlockSpec((1, 1) + arr.shape[2:],
                            lambda s, l, _nd=nd: (l, s) + (0,) * (_nd - 2))

    def sspec(arr):  # stream-stacked (3, ...) tensors -> block (1, ...)
        nd = arr.ndim
        return pl.BlockSpec((1,) + arr.shape[1:],
                            lambda s, l, _nd=nd: (s,) + (0,) * (_nd - 1))

    in_specs = [sspec(x), wspec(ep['wqkv']), wspec(ep['wo']), wspec(ep['w1']),
                wspec(ep['b1']), wspec(ep['w2']), wspec(ep['vecs']),
                sspec(pool['w']), sspec(pool['b'])]
    out_specs = pl.BlockSpec((1, b, dp), lambda s, l: (s, 0, 0))
    return pl.pallas_call(
        kern,
        out_shape=jax.ShapeDtypeStruct((ns, b, dp), jnp.float32),
        grid_spec=pltpu.PrefetchScalarGridSpec(
            num_scalar_prefetch=0, grid=(ns, n_layers),
            in_specs=in_specs, out_specs=out_specs,
            scratch_shapes=[pltpu.VMEM((b, s_len, dp), jnp.float32)]),
        compiler_params=pltpu.CompilerParams(
            dimension_semantics=("parallel", "arbitrary")),
    )(x, ep['wqkv'], ep['wo'], ep['w1'], ep['b1'], ep['w2'], ep['vecs'],
      pool['w'], pool['b'])


# ---------------------------------------------------------------------------
# Kernel 2: fused graph layer (EAGAT x2 + LN x2 + mean-pool + Linear/LN/ReLU),
#           the 5 graph streams batched on a "parallel" grid axis.
# ---------------------------------------------------------------------------
def graph_kernel(x_ref, adj_ref, ed_ref, mean_ref, wmat_ref, avec_ref, vec_ref,
                 o_ref, *, d_real):
    x = x_ref[0]                                                      # (N, DP)
    adj = adj_ref[0]                                                  # (N, N)
    ed = ed_ref[0]                                                    # (N, N)

    def row(i):
        return vec_ref[0, i:i + 1, :]

    b1, g1, be1 = row(0), row(1), row(2)
    b2, g2, be2 = row(3), row(4), row(5)
    bl, gl, bel = row(6), row(7), row(8)
    c1 = vec_ref[0, 9:10, 0:1]                                        # (1, 1)
    c2 = vec_ref[0, 9:10, 1:2]

    def gat(xin, w, a_src, a_dst, bias, et, neg_slope=0.2):
        h = _mm(xin, w)                                               # (N, DP)
        s_dst = jnp.sum(h * a_dst, axis=-1, keepdims=True)            # (N, 1) on VPU
        s_src = lax.dot_general(a_src.astype(jnp.bfloat16), h.astype(jnp.bfloat16),
                                (((1,), (1,)), ((), ())),
                                preferred_element_type=jnp.float32)   # (1, N)
        e = s_dst + s_src + et
        e = jnp.where(e > 0, e, neg_slope * e)                        # LeakyReLU
        e = jnp.where(adj > 0, e, -1e30)
        e = e - jnp.max(e, axis=-1, keepdims=True)
        p = jnp.exp(e) * adj
        alpha = p * pl.reciprocal(jnp.sum(p, axis=-1, keepdims=True) + 1e-16,
                                  approx=True)
        return _mm(alpha, h) + bias

    x1 = gat(x, wmat_ref[0, 0], avec_ref[0, 0:1, :], avec_ref[0, 1:2, :], b1, ed * c1)
    x2 = _ln_pad(x1, g1, be1, d_real)
    x3 = gat(x2, wmat_ref[0, 1], avec_ref[0, 2:3, :], avec_ref[0, 3:4, :], b2, ed * c2)
    x4 = _ln_pad(x3, g2, be2, d_real)
    pooled = _mm(mean_ref[0], x4)                                     # (B, DP)
    y = _mm(pooled, wmat_ref[0, 2]) + bl
    o_ref[0] = jnp.maximum(_ln_pad(y, gl, bel, d_real), 0.0)


def graph_layer_op(gx, adj, ed, meanmat, gp, d_real):
    g, _, dp = gx.shape
    b = meanmat.shape[1]
    kern = functools.partial(graph_kernel, d_real=d_real)

    def lead(arr):
        nd = arr.ndim
        return pl.BlockSpec((1,) + arr.shape[1:],
                            lambda s, _nd=nd: (s,) + (0,) * (_nd - 1))

    # TODO(synk): for realistic node counts, tile the dense (N,N) adj/ed over node
    # blocks instead of whole-array blocks (VMEM budget, esp. v7x 64 MiB).
    args = (gx, adj, ed, meanmat, gp['wmat'], gp['avec'], gp['vec'])
    return pl.pallas_call(
        kern,
        out_shape=jax.ShapeDtypeStruct((g, b, dp), jnp.float32),
        grid_spec=pltpu.PrefetchScalarGridSpec(
            num_scalar_prefetch=0, grid=(g,),
            in_specs=[lead(a) for a in args],
            out_specs=pl.BlockSpec((1, b, dp), lambda s: (s, 0, 0))),
        compiler_params=pltpu.CompilerParams(dimension_semantics=("parallel",)),
    )(*args)


# ---------------------------------------------------------------------------
# Kernel 3: shared MLP + all 4 prediction heads, packed lane-dense (B, 128) output
# ---------------------------------------------------------------------------
HEAD_ORDER = ('next_poi', 'is_visited', 'distance', 'time_interval')


def _head_layout(num_classes):
    widths = (num_classes, 2, 1, 1)
    offs = {}
    o = 0
    for name, w in zip(HEAD_ORDER, widths):
        offs[name] = (o, o + w)
        o += w
    pad = max(128, -(-o // 128) * 128)
    return offs, pad


def heads_kernel(t_ref, u_ref, g_ref, to_ref, do_ref,
                 sw1_ref, sw2_ref, svec_ref, hw1_ref, hvec_ref, hw2p_ref, hb2p_ref,
                 out_ref, *, d_mid, d_out, head_widths):
    g_all = g_ref[...]                                                # (5, B, DP)
    shared_in = t_ref[...] + u_ref[...] + jnp.sum(g_all, axis=0)

    w1_cols = sw1_ref.shape[1]
    dp = sw2_ref.shape[1]

    def srow(i, width):
        return svec_ref[i:i + 1, :width]

    h = jnp.maximum(_ln_pad(_mm(shared_in, sw1_ref[...]) + srow(0, w1_cols),
                            srow(1, w1_cols), srow(2, w1_cols), d_mid), 0.0)
    shared = jnp.maximum(_ln_pad(_mm(h, sw2_ref[...]) + srow(3, dp),
                                 srow(4, dp), srow(5, dp), d_out), 0.0)

    tG, dG, vG = g_all[2], g_all[3], g_all[4]
    head_in = (shared,                                   # next_poi
               shared + vG,                              # is_visited
               shared + do_ref[...] + dG,                # distance
               shared + to_ref[...] + tG)                # time_interval

    # TODO(synk): for realistic num_classes (thousands), tile the next_poi second
    # linear over the class dimension instead of the packed 128-wide slab.
    acc = None
    for i in range(4):
        b1 = hvec_ref[i, 0:1, :]
        g = hvec_ref[i, 1:2, :]
        be = hvec_ref[i, 2:3, :]
        y = jnp.maximum(_ln_pad(_mm(head_in[i], hw1_ref[i]) + b1, g, be,
                                head_widths[i]), 0.0)
        # hw2p rows/cols are zero-padded to disjoint column ranges of the 128-wide
        # slab, so summing the heads is equivalent to concatenation (lane-dense).
        c = _mm(y, hw2p_ref[i])
        acc = c if acc is None else acc + c
    out_ref[...] = acc + hb2p_ref[...]


def heads_op(trans_o, user_e, g_out, time_o, dist_o, sp, hp, cfg):
    b = trans_o.shape[0]
    d = cfg['dimension']
    _, pad = _head_layout(cfg['num_classes'])
    head_widths = (4 * d, d // 2, d // 2, d // 2)
    kern = functools.partial(heads_kernel, d_mid=2 * d, d_out=d,
                             head_widths=head_widths)
    return _pcall(kern, jax.ShapeDtypeStruct((b, pad), jnp.float32),
                  trans_o, user_e, g_out, time_o, dist_o,
                  sp['w1'], sp['w2'], sp['vec'],
                  hp['w1'], hp['vec'], hp['w2p'], hp['b2p'])


# ---------------------------------------------------------------------------
# Model glue (embedding gathers, scalar embeddings, dense adjacency build)
# ---------------------------------------------------------------------------
GRAPH_ORDER = ('last_visit', 'friends', 'trajectory', 'distance', 'visited')  # lG,fG,tG,dG,vG


def temporal_embedding_forward(tp, time_in, year_list):
    year = time_in[..., 0]
    month = time_in[..., 1]
    day = time_in[..., 2]
    weekday = time_in[..., 3]
    hour = time_in[..., 4]
    minute = time_in[..., 5]
    # seconds (index 6) unused, matching the reference module
    for idx, y in enumerate(year_list):
        year = jnp.where(year == y, idx, year)
    return (tp['year'][year] + tp['month'][month - 1] + tp['day'][day - 1]
            + tp['weekday'][weekday] + tp['hour'][hour] + tp['min'][minute // 10])


def scalar_embedding_forward(v, prm, d_logical):
    # Linear(1, D) + LayerNorm at the logical width in plain XLA, then zero-pad to DP.
    y = v[..., None] * prm['w'] + prm['b']
    mu = jnp.mean(y, axis=-1, keepdims=True)
    var = jnp.mean((y - mu) ** 2, axis=-1, keepdims=True)
    y = (y - mu) * lax.rsqrt(var + 1e-5) * prm['g'] + prm['be']
    return jnp.pad(y, ((0, 0), (0, 0), (0, DP - d_logical)))


def build_graph_batch(poi_table, graphs, num_graphs):
    xs, adjs, eds, means = [], [], [], []
    for name in GRAPH_ORDER:
        g = graphs[name]
        x = poi_table[g['x']]                                         # (N, DP) padded
        n = x.shape[0]
        src = g['edge_index'][0]
        dst = g['edge_index'][1]
        adj = jnp.zeros((n, n), jnp.float32).at[dst, src].set(1.0)
        ed = jnp.zeros((n, n), jnp.float32).at[dst, src].set(g['edge_attr'][:, 0])
        diag = jnp.arange(n)
        # TODO(synk): EAGAT self-loop / edge-fill policy unknown; self-loops use edge value 0.
        adj = adj.at[diag, diag].set(1.0)
        onehot = (g['batch'][None, :] == jnp.arange(num_graphs)[:, None]).astype(jnp.float32)
        mean = onehot / jnp.maximum(onehot.sum(axis=-1, keepdims=True), 1.0)
        xs.append(x)
        adjs.append(adj)
        eds.append(ed)
        means.append(mean)
    # TODO(synk): all graphs assumed to share node count; pad to max N for ragged graphs.
    return jnp.stack(xs), jnp.stack(adjs), jnp.stack(eds), jnp.stack(means)


def poi_prediction_forward(params, cfg, user_index, trans_input, time_input,
                           time_interval_input, distance_input, graphs):
    B, _ = trans_input.shape
    D = cfg['dimension']
    poi_table = params['poi_emb']                                     # (P+1, DP), padded

    poi_e = poi_table[trans_input]                                    # (B, S, DP)
    user_e = params['user_emb'][user_index]                           # (B, DP)
    temp_e = temporal_embedding_forward(params['temporal'], time_input, cfg['year_list'])
    trans_x = poi_e + temp_e
    dist_e = scalar_embedding_forward(distance_input, params['dist_emb'], D)
    ti_e = scalar_embedding_forward(time_interval_input, params['ti_emb'], D)

    # TODO(synk): reference `Encoder` class not provided; approximated with
    # independent per-stream post-LN transformer encoder layers (mask=None).
    x = jnp.stack([trans_x, ti_e, dist_e], axis=0)                    # (3, B, S, DP)
    pooled = encoder_op(x, params['encoder'], params['pool'], cfg)    # (3, B, DP)
    trans_output, time_output, distance_output = pooled[0], pooled[1], pooled[2]

    gx, adj, ed, meanmat = build_graph_batch(poi_table, graphs, B)
    g_out = graph_layer_op(gx, adj, ed, meanmat, params['graphs'], D)  # (5, B, DP)

    offs, _ = _head_layout(cfg['num_classes'])
    packed = heads_op(trans_output, user_e, g_out, time_output, distance_output,
                      params['shared'], params['heads'], cfg)          # (B, 128)

    next_poi_pred = packed[:, offs['next_poi'][0]:offs['next_poi'][1]]
    is_visited_pred = packed[:, offs['is_visited'][0]:offs['is_visited'][1]]
    distance_pred = packed[:, offs['distance'][0]:offs['distance'][1]]
    time_interval_pred = packed[:, offs['time_interval'][0]:offs['time_interval'][1]]
    return is_visited_pred, distance_pred, time_interval_pred, next_poi_pred


# ---------------------------------------------------------------------------
# Deterministic parameter init: lane-padded slabs, matmul weights pre-cast to bf16
# ---------------------------------------------------------------------------
def init_params(key, cfg):
    D = cfg['dimension']
    H = cfg['n_head']
    dk = D // H
    d_inner = cfg['d_inner']
    C = cfg['num_classes']
    L = cfg['layer']
    G = 5
    assert D <= DP and H * dk == D and d_inner % 128 == 0

    keys = iter(jax.random.split(key, 4096))
    nk = lambda: next(keys)

    def nrm(shape, scale=0.02):
        return jax.random.normal(nk(), shape, dtype=jnp.float32) * scale

    def emb(rows):
        return jnp.zeros((rows, DP), jnp.float32).at[:, :D].set(nrm((rows, D)))

    ln_g = jnp.zeros((DP,), jnp.float32).at[:D].set(1.0)

    p = {}
    p['poi_emb'] = emb(cfg['poi_count'] + 1).at[cfg['poi_count']].set(0.0)  # padding_idx
    p['user_emb'] = emb(cfg['user_count'])
    p['temporal'] = {'year': emb(len(cfg['year_list'])), 'month': emb(12), 'day': emb(31),
                     'weekday': emb(7), 'hour': emb(24), 'min': emb(6)}
    p['ti_emb'] = {'w': nrm((D,)), 'b': jnp.zeros((D,)), 'g': jnp.ones((D,)), 'be': jnp.zeros((D,))}
    p['dist_emb'] = {'w': nrm((D,)), 'b': jnp.zeros((D,)), 'g': jnp.ones((D,)), 'be': jnp.zeros((D,))}

    # --- encoder: fused/lane-padded weight slabs, stacked over (layer, stream) ---
    wqkv = jnp.zeros((L, 3, DP, 3 * H * DKP), jnp.float32)
    for qi in range(3):                       # q, k, v
        for h in range(H):
            c0 = (qi * H + h) * DKP
            wqkv = wqkv.at[:, :, :D, c0:c0 + dk].set(nrm((L, 3, D, dk)))
    wo = jnp.zeros((L, 3, H * DKP, DP), jnp.float32)
    for h in range(H):
        wo = wo.at[:, :, h * DKP:h * DKP + dk, :D].set(nrm((L, 3, dk, D)))
    w1 = jnp.zeros((L, 3, DP, d_inner), jnp.float32).at[:, :, :D, :].set(nrm((L, 3, D, d_inner)))
    w2 = jnp.zeros((L, 3, d_inner, DP), jnp.float32).at[:, :, :, :D].set(nrm((L, 3, d_inner, D)))
    b1 = jnp.zeros((L, 3, 1, d_inner), jnp.float32)
    vecs = jnp.zeros((L, 3, 6, DP), jnp.float32)          # [bo, g1, be1, b2, g2, be2]
    vecs = vecs.at[:, :, 1, :].set(ln_g).at[:, :, 4, :].set(ln_g)
    p['encoder'] = {'wqkv': wqkv.astype(jnp.bfloat16), 'wo': wo.astype(jnp.bfloat16),
                    'w1': w1.astype(jnp.bfloat16), 'b1': b1,
                    'w2': w2.astype(jnp.bfloat16), 'vecs': vecs}
    p['pool'] = {'w': jnp.zeros((3, 1, DP), jnp.float32).at[:, :, :D].set(nrm((3, 1, D))),
                 'b': jnp.zeros((3, 1, 1), jnp.float32)}

    # --- graph streams: packed weight slabs ---
    wmat = jnp.zeros((G, 3, DP, DP), jnp.float32).at[:, :, :D, :D].set(nrm((G, 3, D, D), 0.1))
    avec = jnp.zeros((G, 4, DP), jnp.float32).at[:, :, :D].set(nrm((G, 4, D), 0.1))
    gvec = jnp.zeros((G, 10, DP), jnp.float32)            # [b1,g1,be1,b2,g2,be2,bl,gl,bel,(c1,c2)]
    gvec = gvec.at[:, 1, :].set(ln_g).at[:, 4, :].set(ln_g).at[:, 7, :].set(ln_g)
    gvec = gvec.at[:, 9, 0].set(nrm((G,), 0.1)).at[:, 9, 1].set(nrm((G,), 0.1))
    p['graphs'] = {'wmat': wmat.astype(jnp.bfloat16), 'avec': avec, 'vec': gvec}

    # --- shared MLP ---
    d2 = 2 * D
    d2p = -(-d2 // 128) * 128
    sw1 = jnp.zeros((DP, d2p), jnp.float32).at[:D, :d2].set(nrm((D, d2)))
    sw2 = jnp.zeros((d2p, DP), jnp.float32).at[:d2, :D].set(nrm((d2, D)))
    svec = jnp.zeros((6, max(d2p, DP)), jnp.float32).at[1, :d2].set(1.0).at[4, :D].set(1.0)
    p['shared'] = {'w1': sw1.astype(jnp.bfloat16), 'w2': sw2.astype(jnp.bfloat16), 'vec': svec}

    # --- prediction heads (second linears packed into a disjoint-column 128 slab) ---
    offs, pad = _head_layout(C)
    hid_real = (4 * D, D // 2, D // 2, D // 2)
    hidp = -(-max(hid_real) // 128) * 128
    hw1 = jnp.zeros((4, DP, hidp), jnp.float32)
    hvec = jnp.zeros((4, 3, hidp), jnp.float32)            # [b1, g, be] per head
    hw2p = jnp.zeros((4, hidp, pad), jnp.float32)
    for i, name in enumerate(HEAD_ORDER):
        hr = hid_real[i]
        lo, hi = offs[name]
        hw1 = hw1.at[i, :D, :hr].set(nrm((D, hr)))
        hvec = hvec.at[i, 1, :hr].set(1.0)
        hw2p = hw2p.at[i, :hr, lo:hi].set(nrm((hr, hi - lo)))
    p['heads'] = {'w1': hw1.astype(jnp.bfloat16), 'vec': hvec,
                  'w2p': hw2p.astype(jnp.bfloat16), 'b2p': jnp.zeros((1, pad), jnp.float32)}
    return p


def make_graph(key, poi_count, n_per_graph=3, num_graphs=2):
    n = n_per_graph * num_graphs
    kx, ke = jax.random.split(key)
    x = jax.random.randint(kx, (n,), 0, poi_count)
    src, dst = [], []
    for g in range(num_graphs):
        base = g * n_per_graph
        for a in range(n_per_graph):
            b = (a + 1) % n_per_graph
            src.extend([base + a, base + b])
            dst.extend([base + b, base + a])
    edge_index = jnp.array([src, dst], dtype=jnp.int32)
    edge_attr = jax.random.uniform(ke, (edge_index.shape[1], 1), dtype=jnp.float32)
    batch = jnp.repeat(jnp.arange(num_graphs, dtype=jnp.int32), n_per_graph)
    return {'x': x, 'edge_index': edge_index, 'batch': batch, 'edge_attr': edge_attr}


if __name__ == "__main__":
    cfg = dict(num_classes=16, poi_count=20, user_count=5, year_list=[2012, 2013],
               dropout=0.0, seq_len=8, layer=2, dimension=48, n_head=3, d_inner=256)

    key = jax.random.PRNGKey(0)
    k_par, k_in = jax.random.split(key)
    params = init_params(k_par, cfg)

    B, S = 2, cfg['seq_len']
    ks = jax.random.split(k_in, 16)
    user_index = jax.random.randint(ks[0], (B,), 0, cfg['user_count'])
    trans_input = jax.random.randint(ks[1], (B, S), 0, cfg['poi_count'])
    year = jnp.array(cfg['year_list'], jnp.int32)[
        jax.random.randint(ks[2], (B, S), 0, len(cfg['year_list']))]
    month = jax.random.randint(ks[3], (B, S), 1, 13)
    day = jax.random.randint(ks[4], (B, S), 1, 32)
    weekday = jax.random.randint(ks[5], (B, S), 0, 7)
    hour = jax.random.randint(ks[6], (B, S), 0, 24)
    minute = jax.random.randint(ks[7], (B, S), 0, 60)
    sec = jax.random.randint(ks[8], (B, S), 0, 60)
    time_input = jnp.stack([year, month, day, weekday, hour, minute, sec],
                           axis=-1).astype(jnp.int32)
    time_interval_input = jax.random.uniform(ks[9], (B, S), dtype=jnp.float32)
    distance_input = jax.random.uniform(ks[10], (B, S), dtype=jnp.float32)

    graphs = {
        'trajectory': make_graph(ks[11], cfg['poi_count']),
        'distance': make_graph(ks[12], cfg['poi_count']),
        'last_visit': make_graph(ks[13], cfg['poi_count']),
        'visited': make_graph(ks[14], cfg['poi_count']),
        'friends': make_graph(ks[15], cfg['poi_count']),
    }

    fwd = jax.jit(lambda prm, *inp: poi_prediction_forward(prm, cfg, *inp))
    outs = fwd(params, user_index, trans_input, time_input,
               time_interval_input, distance_input, graphs)
    outs = jax.block_until_ready(outs)

    assert outs[0].shape == (B, 2)                    # is_visited_pred
    assert outs[1].shape == (B, 1)                    # distance_pred
    assert outs[2].shape == (B, 1)                    # time_interval_pred
    assert outs[3].shape == (B, cfg['num_classes'])   # next_poi_pred
    print("KERNEL_OK")
</pallas_src>

<mosaic_0001>
module attributes {stable_mosaic.version = 11 : i64} {
  func.func @graph_kernel(%arg0: i32, %arg1: memref<1x6x128xf32, #tpu.memory_space<vmem>>, %arg2: memref<1x6x6xf32, #tpu.memory_space<vmem>>, %arg3: memref<1x6x6xf32, #tpu.memory_space<vmem>>, %arg4: memref<1x2x6xf32, #tpu.memory_space<vmem>>, %arg5: memref<1x3x128x128xbf16, #tpu.memory_space<vmem>>, %arg6: memref<1x4x128xf32, #tpu.memory_space<vmem>>, %arg7: memref<1x10x128xf32, #tpu.memory_space<vmem>>, %arg8: memref<1x2x128xf32, #tpu.memory_space<vmem>>) attributes {dimension_semantics = [#tpu.dimension_semantics<parallel>], iteration_bounds = array<i64: 5>, scalar_prefetch = 0 : i64, scratch_operands = 0 : i64, tpu.core_type = #tpu.core_type<tc>, window_params = [{transform_indices = @transform_0, window_bounds = array<i64: 1, 6, 128>}, {transform_indices = @transform_1, window_bounds = array<i64: 1, 6, 6>}, {transform_indices = @transform_2, window_bounds = array<i64: 1, 6, 6>}, {transform_indices = @transform_3, window_bounds = array<i64: 1, 2, 6>}, {transform_indices = @transform_4, window_bounds = array<i64: 1, 3, 128, 128>}, {transform_indices = @transform_5, window_bounds = array<i64: 1, 4, 128>}, {transform_indices = @transform_6, window_bounds = array<i64: 1, 10, 128>}, {transform_indices = @transform_7, window_bounds = array<i64: 1, 2, 128>}]} {
    %c0 = arith.constant 0 : index
    %c0_0 = arith.constant 0 : index
    %c0_1 = arith.constant 0 : index
    %0 = vector.load %arg1[%c0, %c0_0, %c0_1] : memref<1x6x128xf32, #tpu.memory_space<vmem>>, vector<1x6x128xf32>
    %1 = vector.shape_cast %0 : vector<1x6x128xf32> to vector<6x128xf32>
    %c0_2 = arith.constant 0 : index
    %c0_3 = arith.constant 0 : index
    %c0_4 = arith.constant 0 : index
    %2 = vector.load %arg2[%c0_2, %c0_3, %c0_4] : memref<1x6x6xf32, #tpu.memory_space<vmem>>, vector<1x6x6xf32>
    %3 = vector.shape_cast %2 : vector<1x6x6xf32> to vector<6x6xf32>
    %c0_5 = arith.constant 0 : index
    %c0_6 = arith.constant 0 : index
    %c0_7 = arith.constant 0 : index
    %4 = vector.load %arg3[%c0_5, %c0_6, %c0_7] : memref<1x6x6xf32, #tpu.memory_space<vmem>>, vector<1x6x6xf32>
    %5 = vector.shape_cast %4 : vector<1x6x6xf32> to vector<6x6xf32>
    %c0_8 = arith.constant 0 : index
    %c0_9 = arith.constant 0 : index
    %c0_10 = arith.constant 0 : index
    %6 = vector.load %arg7[%c0_8, %c0_9, %c0_10] : memref<1x10x128xf32, #tpu.memory_space<vmem>>, vector<1x1x128xf32>
    %7 = vector.shape_cast %6 : vector<1x1x128xf32> to vector<1x128xf32>
    %c0_11 = arith.constant 0 : index
    %c1 = arith.constant 1 : index
    %c0_12 = arith.constant 0 : index
    %8 = vector.load %arg7[%c0_11, %c1, %c0_12] : memref<1x10x128xf32, #tpu.memory_space<vmem>>, vector<1x1x128xf32>
    %9 = vector.shape_cast %8 : vector<1x1x128xf32> to vector<1x128xf32>
    %c0_13 = arith.constant 0 : index
    %c2 = arith.constant 2 : index
    %c0_14 = arith.constant 0 : index
    %10 = vector.load %arg7[%c0_13, %c2, %c0_14] : memref<1x10x128xf32, #tpu.memory_space<vmem>>, vector<1x1x128xf32>
    %11 = vector.shape_cast %10 : vector<1x1x128xf32> to vector<1x128xf32>
    %c0_15 = arith.constant 0 : index
    %c3 = arith.constant 3 : index
    %c0_16 = arith.constant 0 : index
    %12 = vector.load %arg7[%c0_15, %c3, %c0_16] : memref<1x10x128xf32, #tpu.memory_space<vmem>>, vector<1x1x128xf32>
    %13 = vector.shape_cast %12 : vector<1x1x128xf32> to vector<1x128xf32>
    %c0_17 = arith.constant 0 : index
    %c4 = arith.constant 4 : index
    %c0_18 = arith.constant 0 : index
    %14 = vector.load %arg7[%c0_17, %c4, %c0_18] : memref<1x10x128xf32, #tpu.memory_space<vmem>>, vector<1x1x128xf32>
    %15 = vector.shape_cast %14 : vector<1x1x128xf32> to vector<1x128xf32>
    %c0_19 = arith.constant 0 : index
    %c5 = arith.constant 5 : index
    %c0_20 = arith.constant 0 : index
    %16 = vector.load %arg7[%c0_19, %c5, %c0_20] : memref<1x10x128xf32, #tpu.memory_space<vmem>>, vector<1x1x128xf32>
    %17 = vector.shape_cast %16 : vector<1x1x128xf32> to vector<1x128xf32>
    %c0_21 = arith.constant 0 : index
    %c6 = arith.constant 6 : index
    %c0_22 = arith.constant 0 : index
    %18 = vector.load %arg7[%c0_21, %c6, %c0_22] : memref<1x10x128xf32, #tpu.memory_space<vmem>>, vector<1x1x128xf32>
    %19 = vector.shape_cast %18 : vector<1x1x128xf32> to vector<1x128xf32>
    %c0_23 = arith.constant 0 : index
    %c7 = arith.constant 7 : index
    %c0_24 = arith.constant 0 : index
    %20 = vector.load %arg7[%c0_23, %c7, %c0_24] : memref<1x10x128xf32, #tpu.memory_space<vmem>>, vector<1x1x128xf32>
    %21 = vector.shape_cast %20 : vector<1x1x128xf32> to vector<1x128xf32>
    %c0_25 = arith.constant 0 : index
    %c8 = arith.constant 8 : index
    %c0_26 = arith.constant 0 : index
    %22 = vector.load %arg7[%c0_25, %c8, %c0_26] : memref<1x10x128xf32, #tpu.memory_space<vmem>>, vector<1x1x128xf32>
    %23 = vector.shape_cast %22 : vector<1x1x128xf32> to vector<1x128xf32>
    %c0_27 = arith.constant 0 : index
    %c9 = arith.constant 9 : index
    %c0_28 = arith.constant 0 : index
    %24 = vector.load %arg7[%c0_27, %c9, %c0_28] : memref<1x10x128xf32, #tpu.memory_space<vmem>>, vector<1x1x1xf32>
    %25 = vector.shape_cast %24 : vector<1x1x1xf32> to vector<1x1xf32>
    %c0_29 = arith.constant 0 : index
    %c9_30 = arith.constant 9 : index
    %c1_31 = arith.constant 1 : index
    %26 = vector.load %arg7[%c0_29, %c9_30, %c1_31] : memref<1x10x128xf32, #tpu.memory_space<vmem>>, vector<1x1x1xf32>
    %27 = vector.shape_cast %26 : vector<1x1x1xf32> to vector<1x1xf32>
    %c0_32 = arith.constant 0 : index
    %c0_33 = arith.constant 0 : index
    %c0_34 = arith.constant 0 : index
    %c0_35 = arith.constant 0 : index
    %28 = vector.load %arg5[%c0_32, %c0_33, %c0_34, %c0_35] : memref<1x3x128x128xbf16, #tpu.memory_space<vmem>>, vector<1x1x128x128xbf16>
    %29 = vector.shape_cast %28 : vector<1x1x128x128xbf16> to vector<128x128xbf16>
    %c0_36 = arith.constant 0 : index
    %c0_37 = arith.constant 0 : index
    %c0_38 = arith.constant 0 : index
    %30 = vector.load %arg6[%c0_36, %c0_37, %c0_38] : memref<1x4x128xf32, #tpu.memory_space<vmem>>, vector<1x1x128xf32>
    %31 = vector.shape_cast %30 : vector<1x1x128xf32> to vector<1x128xf32>
    %c0_39 = arith.constant 0 : index
    %c1_40 = arith.constant 1 : index
    %c0_41 = arith.constant 0 : index
    %32 = vector.load %arg6[%c0_39, %c1_40, %c0_41] : memref<1x4x128xf32, #tpu.memory_space<vmem>>, vector<1x1x128xf32>
    %33 = vector.shape_cast %32 : vector<1x1x128xf32> to vector<1x128xf32>
    %34 = vector.broadcast %25 : vector<1x1xf32> to vector<6x6xf32>
    %35 = arith.mulf %5, %34 : vector<6x6xf32>
    %36 = arith.truncf %1 : vector<6x128xf32> to vector<6x128xbf16>
    %cst = arith.constant dense<0.000000e+00> : vector<6x128xf32>
    %37 = tpu.matmul %36, %29, %cst {dimension_numbers = #tpu.dot_dimension_numbers<[1], [0], [0], [1], [0, 0, 1, 1], [], []>} : vector<6x128xbf16>, vector<128x128xbf16>, vector<6x128xf32> -> vector<6x128xf32>
    %38 = vector.broadcast %33 : vector<1x128xf32> to vector<6x128xf32>
    %39 = arith.mulf %37, %38 : vector<6x128xf32>
    %cst_42 = arith.constant dense<0.000000e+00> : vector<6xf32>
    %40 = vector.multi_reduction <add>, %39, %cst_42 [1] : vector<6x128xf32> to vector<6xf32>
    %41 = vector.shape_cast %40 : vector<6xf32> to vector<6x1xf32>
    %42 = arith.truncf %31 : vector<1x128xf32> to vector<1x128xbf16>
    %43 = arith.truncf %37 : vector<6x128xf32> to vector<6x128xbf16>
    %cst_43 = arith.constant dense<0.000000e+00> : vector<1x6xf32>
    %44 = tpu.matmul %42, %43, %cst_43 {dimension_numbers = #tpu.dot_dimension_numbers<[1], [1], [0], [0], [0, 0, 1, 0], [], []>} : vector<1x128xbf16>, vector<6x128xbf16>, vector<1x6xf32> -> vector<1x6xf32>
    %45 = vector.broadcast %41 : vector<6x1xf32> to vector<6x6xf32>
    %46 = vector.broadcast %44 : vector<1x6xf32> to vector<6x6xf32>
    %47 = arith.addf %45, %46 : vector<6x6xf32>
    %48 = arith.addf %47, %35 : vector<6x6xf32>
    %cst_44 = arith.constant 0.000000e+00 : f32
    %49 = vector.broadcast %cst_44 : f32 to vector<6x6xf32>
    %50 = arith.cmpf ogt, %48, %49 : vector<6x6xf32>
    %cst_45 = arith.constant 2.000000e-01 : f32
    %51 = vector.broadcast %cst_45 : f32 to vector<6x6xf32>
    %52 = arith.mulf %51, %48 : vector<6x6xf32>
    %53 = arith.select %50, %48, %52 : vector<6x6xi1>, vector<6x6xf32>
    %cst_46 = arith.constant 0.000000e+00 : f32
    %54 = vector.broadcast %cst_46 : f32 to vector<6x6xf32>
    %55 = arith.cmpf ogt, %3, %54 : vector<6x6xf32>
    %cst_47 = arith.constant -1.000000e+30 : f32
    %56 = vector.broadcast %cst_47 : f32 to vector<6x6xf32>
    %57 = arith.select %55, %53, %56 : vector<6x6xi1>, vector<6x6xf32>
    %cst_48 = arith.constant dense<0xFF800000> : vector<6xf32>
    %58 = vector.multi_reduction <maximumf>, %57, %cst_48 [1] : vector<6x6xf32> to vector<6xf32>
    %59 = vector.shape_cast %58 : vector<6xf32> to vector<6x1xf32>
    %60 = vector.broadcast %59 : vector<6x1xf32> to vector<6x6xf32>
    %61 = arith.subf %57, %60 : vector<6x6xf32>
    %62 = math.exp %61 : vector<6x6xf32>
    %63 = arith.mulf %62, %3 : vector<6x6xf32>
    %cst_49 = arith.constant dense<0.000000e+00> : vector<6xf32>
    %64 = vector.multi_reduction <add>, %63, %cst_49 [1] : vector<6x6xf32> to vector<6xf32>
    %65 = vector.shape_cast %64 : vector<6xf32> to vector<6x1xf32>
    %cst_50 = arith.constant 1.000000e-16 : f32
    %66 = vector.broadcast %cst_50 : f32 to vector<6x1xf32>
    %67 = arith.addf %65, %66 : vector<6x1xf32>
    %68 = tpu.reciprocal %67 {approx = true} : vector<6x1xf32> -> vector<6x1xf32>
    %69 = vector.broadcast %68 : vector<6x1xf32> to vector<6x6xf32>
    %70 = arith.mulf %63, %69 : vector<6x6xf32>
    %71 = arith.truncf %70 : vector<6x6xf32> to vector<6x6xbf16>
    %72 = arith.truncf %37 : vector<6x128xf32> to vector<6x128xbf16>
    %cst_51 = arith.constant dense<0.000000e+00> : vector<6x128xf32>
    %73 = tpu.matmul %71, %72, %cst_51 {dimension_numbers = #tpu.dot_dimension_numbers<[1], [0], [0], [1], [0, 0, 1, 1], [], []>} : vector<6x6xbf16>, vector<6x128xbf16>, vector<6x128xf32> -> vector<6x128xf32>
    %74 = vector.broadcast %7 : vector<1x128xf32> to vector<6x128xf32>
    %75 = arith.addf %73, %74 : vector<6x128xf32>
    %cst_52 = arith.constant dense<0.000000e+00> : vector<6xf32>
    %76 = vector.multi_reduction <add>, %75, %cst_52 [1] : vector<6x128xf32> to vector<6xf32>
    %77 = vector.shape_cast %76 : vector<6xf32> to vector<6x1xf32>
    %cst_53 = arith.constant 0.020833334 : f32
    %78 = vector.broadcast %cst_53 : f32 to vector<6x1xf32>
    %79 = arith.mulf %77, %78 : vector<6x1xf32>
    %80 = arith.mulf %75, %75 : vector<6x128xf32>
    %cst_54 = arith.constant dense<0.000000e+00> : vector<6xf32>
    %81 = vector.multi_reduction <add>, %80, %cst_54 [1] : vector<6x128xf32> to vector<6xf32>
    %82 = vector.shape_cast %81 : vector<6xf32> to vector<6x1xf32>
    %cst_55 = arith.constant 0.020833334 : f32
    %83 = vector.broadcast %cst_55 : f32 to vector<6x1xf32>
    %84 = arith.mulf %82, %83 : vector<6x1xf32>
    %85 = arith.mulf %79, %79 : vector<6x1xf32>
    %86 = arith.subf %84, %85 : vector<6x1xf32>
    %cst_56 = arith.constant 0.000000e+00 : f32
    %87 = vector.broadcast %cst_56 : f32 to vector<6x1xf32>
    %88 = arith.maximumf %86, %87 : vector<6x1xf32>
    %89 = vector.broadcast %79 : vector<6x1xf32> to vector<6x128xf32>
    %90 = arith.subf %75, %89 : vector<6x128xf32>
    %cst_57 = arith.constant 9.99999974E-6 : f32
    %91 = vector.broadcast %cst_57 : f32 to vector<6x1xf32>
    %92 = arith.addf %88, %91 : vector<6x1xf32>
    %93 = math.rsqrt %92 : vector<6x1xf32>
    %94 = vector.broadcast %93 : vector<6x1xf32> to vector<6x128xf32>
    %95 = arith.mulf %90, %94 : vector<6x128xf32>
    %96 = vector.broadcast %9 : vector<1x128xf32> to vector<6x128xf32>
    %97 = arith.mulf %95, %96 : vector<6x128xf32>
    %98 = vector.broadcast %11 : vector<1x128xf32> to vector<6x128xf32>
    %99 = arith.addf %97, %98 : vector<6x128xf32>
    %c0_58 = arith.constant 0 : index
    %c1_59 = arith.constant 1 : index
    %c0_60 = arith.constant 0 : index
    %c0_61 = arith.constant 0 : index
    %100 = vector.load %arg5[%c0_58, %c1_59, %c0_60, %c0_61] : memref<1x3x128x128xbf16, #tpu.memory_space<vmem>>, vector<1x1x128x128xbf16>
    %101 = vector.shape_cast %100 : vector<1x1x128x128xbf16> to vector<128x128xbf16>
    %c0_62 = arith.constant 0 : index
    %c2_63 = arith.constant 2 : index
    %c0_64 = arith.constant 0 : index
    %102 = vector.load %arg6[%c0_62, %c2_63, %c0_64] : memref<1x4x128xf32, #tpu.memory_space<vmem>>, vector<1x1x128xf32>
    %103 = vector.shape_cast %102 : vector<1x1x128xf32> to vector<1x128xf32>
    %c0_65 = arith.constant 0 : index
    %c3_66 = arith.constant 3 : index
    %c0_67 = arith.constant 0 : index
    %104 = vector.load %arg6[%c0_65, %c3_66, %c0_67] : memref<1x4x128xf32, #tpu.memory_space<vmem>>, vector<1x1x128xf32>
    %105 = vector.shape_cast %104 : vector<1x1x128xf32> to vector<1x128xf32>
    %106 = vector.broadcast %27 : vector<1x1xf32> to vector<6x6xf32>
    %107 = arith.mulf %5, %106 : vector<6x6xf32>
    %108 = arith.truncf %99 : vector<6x128xf32> to vector<6x128xbf16>
    %cst_68 = arith.constant dense<0.000000e+00> : vector<6x128xf32>
    %109 = tpu.matmul %108, %101, %cst_68 {dimension_numbers = #tpu.dot_dimension_numbers<[1], [0], [0], [1], [0, 0, 1, 1], [], []>} : vector<6x128xbf16>, vector<128x128xbf16>, vector<6x128xf32> -> vector<6x128xf32>
    %110 = vector.broadcast %105 : vector<1x128xf32> to vector<6x128xf32>
    %111 = arith.mulf %109, %110 : vector<6x128xf32>
    %cst_69 = arith.constant dense<0.000000e+00> : vector<6xf32>
    %112 = vector.multi_reduction <add>, %111, %cst_69 [1] : vector<6x128xf32> to vector<6xf32>
    %113 = vector.shape_cast %112 : vector<6xf32> to vector<6x1xf32>
    %114 = arith.truncf %103 : vector<1x128xf32> to vector<1x128xbf16>
    %115 = arith.truncf %109 : vector<6x128xf32> to vector<6x128xbf16>
    %cst_70 = arith.constant dense<0.000000e+00> : vector<1x6xf32>
    %116 = tpu.matmul %114, %115, %cst_70 {dimension_numbers = #tpu.dot_dimension_numbers<[1], [1], [0], [0], [0, 0, 1, 0], [], []>} : vector<1x128xbf16>, vector<6x128xbf16>, vector<1x6xf32> -> vector<1x6xf32>
    %117 = vector.broadcast %113 : vector<6x1xf32> to vector<6x6xf32>
    %118 = vector.broadcast %116 : vector<1x6xf32> to vector<6x6xf32>
    %119 = arith.addf %117, %118 : vector<6x6xf32>
    %120 = arith.addf %119, %107 : vector<6x6xf32>
    %cst_71 = arith.constant 0.000000e+00 : f32
    %121 = vector.broadcast %cst_71 : f32 to vector<6x6xf32>
    %122 = arith.cmpf ogt, %120, %121 : vector<6x6xf32>
    %cst_72 = arith.constant 2.000000e-01 : f32
    %123 = vector.broadcast %cst_72 : f32 to vector<6x6xf32>
    %124 = arith.mulf %123, %120 : vector<6x6xf32>
    %125 = arith.select %122, %120, %124 : vector<6x6xi1>, vector<6x6xf32>
    %cst_73 = arith.constant 0.000000e+00 : f32
    %126 = vector.broadcast %cst_73 : f32 to vector<6x6xf32>
    %127 = arith.cmpf ogt, %3, %126 : vector<6x6xf32>
    %cst_74 = arith.constant -1.000000e+30 : f32
    %128 = vector.broadcast %cst_74 : f32 to vector<6x6xf32>
    %129 = arith.select %127, %125, %128 : vector<6x6xi1>, vector<6x6xf32>
    %cst_75 = arith.constant dense<0xFF800000> : vector<6xf32>
    %130 = vector.multi_reduction <maximumf>, %129, %cst_75 [1] : vector<6x6xf32> to vector<6xf32>
    %131 = vector.shape_cast %130 : vector<6xf32> to vector<6x1xf32>
    %132 = vector.broadcast %131 : vector<6x1xf32> to vector<6x6xf32>
    %133 = arith.subf %129, %132 : vector<6x6xf32>
    %134 = math.exp %133 : vector<6x6xf32>
    %135 = arith.mulf %134, %3 : vector<6x6xf32>
    %cst_76 = arith.constant dense<0.000000e+00> : vector<6xf32>
    %136 = vector.multi_reduction <add>, %135, %cst_76 [1] : vector<6x6xf32> to vector<6xf32>
    %137 = vector.shape_cast %136 : vector<6xf32> to vector<6x1xf32>
    %cst_77 = arith.constant 1.000000e-16 : f32
    %138 = vector.broadcast %cst_77 : f32 to vector<6x1xf32>
    %139 = arith.addf %137, %138 : vector<6x1xf32>
    %140 = tpu.reciprocal %139 {approx = true} : vector<6x1xf32> -> vector<6x1xf32>
    %141 = vector.broadcast %140 : vector<6x1xf32> to vector<6x6xf32>
    %142 = arith.mulf %135, %141 : vector<6x6xf32>
    %143 = arith.truncf %142 : vector<6x6xf32> to vector<6x6xbf16>
    %144 = arith.truncf %109 : vector<6x128xf32> to vector<6x128xbf16>
    %cst_78 = arith.constant dense<0.000000e+00> : vector<6x128xf32>
    %145 = tpu.matmul %143, %144, %cst_78 {dimension_numbers = #tpu.dot_dimension_numbers<[1], [0], [0], [1], [0, 0, 1, 1], [], []>} : vector<6x6xbf16>, vector<6x128xbf16>, vector<6x128xf32> -> vector<6x128xf32>
    %146 = vector.broadcast %13 : vector<1x128xf32> to vector<6x128xf32>
    %147 = arith.addf %145, %146 : vector<6x128xf32>
    %cst_79 = arith.constant dense<0.000000e+00> : vector<6xf32>
    %148 = vector.multi_reduction <add>, %147, %cst_79 [1] : vector<6x128xf32> to vector<6xf32>
    %149 = vector.shape_cast %148 : vector<6xf32> to vector<6x1xf32>
    %cst_80 = arith.constant 0.020833334 : f32
    %150 = vector.broadcast %cst_80 : f32 to vector<6x1xf32>
    %151 = arith.mulf %149, %150 : vector<6x1xf32>
    %152 = arith.mulf %147, %147 : vector<6x128xf32>
    %cst_81 = arith.constant dense<0.000000e+00> : vector<6xf32>
    %153 = vector.multi_reduction <add>, %152, %cst_81 [1] : vector<6x128xf32> to vector<6xf32>
    %154 = vector.shape_cast %153 : vector<6xf32> to vector<6x1xf32>
    %cst_82 = arith.constant 0.020833334 : f32
    %155 = vector.broadcast %cst_82 : f32 to vector<6x1xf32>
    %156 = arith.mulf %154, %155 : vector<6x1xf32>
    %157 = arith.mulf %151, %151 : vector<6x1xf32>
    %158 = arith.subf %156, %157 : vector<6x1xf32>
    %cst_83 = arith.constant 0.000000e+00 : f32
    %159 = vector.broadcast %cst_83 : f32 to vector<6x1xf32>
    %160 = arith.maximumf %158, %159 : vector<6x1xf32>
    %161 = vector.broadcast %151 : vector<6x1xf32> to vector<6x128xf32>
    %162 = arith.subf %147, %161 : vector<6x128xf32>
    %cst_84 = arith.constant 9.99999974E-6 : f32
    %163 = vector.broadcast %cst_84 : f32 to vector<6x1xf32>
    %164 = arith.addf %160, %163 : vector<6x1xf32>
    %165 = math.rsqrt %164 : vector<6x1xf32>
    %166 = vector.broadcast %165 : vector<6x1xf32> to vector<6x128xf32>
    %167 = arith.mulf %162, %166 : vector<6x128xf32>
    %168 = vector.broadcast %15 : vector<1x128xf32> to vector<6x128xf32>
    %169 = arith.mulf %167, %168 : vector<6x128xf32>
    %170 = vector.broadcast %17 : vector<1x128xf32> to vector<6x128xf32>
    %171 = arith.addf %169, %170 : vector<6x128xf32>
    %c0_85 = arith.constant 0 : index
    %c0_86 = arith.constant 0 : index
    %c0_87 = arith.constant 0 : index
    %172 = vector.load %arg4[%c0_85, %c0_86, %c0_87] : memref<1x2x6xf32, #tpu.memory_space<vmem>>, vector<1x2x6xf32>
    %173 = vector.shape_cast %172 : vector<1x2x6xf32> to vector<2x6xf32>
    %174 = arith.truncf %173 : vector<2x6xf32> to vector<2x6xbf16>
    %175 = arith.truncf %171 : vector<6x128xf32> to vector<6x128xbf16>
    %cst_88 = arith.constant dense<0.000000e+00> : vector<2x128xf32>
    %176 = tpu.matmul %174, %175, %cst_88 {dimension_numbers = #tpu.dot_dimension_numbers<[1], [0], [0], [1], [0, 0, 1, 1], [], []>} : vector<2x6xbf16>, vector<6x128xbf16>, vector<2x128xf32> -> vector<2x128xf32>
    %c0_89 = arith.constant 0 : index
    %c2_90 = arith.constant 2 : index
    %c0_91 = arith.constant 0 : index
    %c0_92 = arith.constant 0 : index
    %177 = vector.load %arg5[%c0_89, %c2_90, %c0_91, %c0_92] : memref<1x3x128x128xbf16, #tpu.memory_space<vmem>>, vector<1x1x128x128xbf16>
    %178 = vector.shape_cast %177 : vector<1x1x128x128xbf16> to vector<128x128xbf16>
    %179 = arith.truncf %176 : vector<2x128xf32> to vector<2x128xbf16>
    %cst_93 = arith.constant dense<0.000000e+00> : vector<2x128xf32>
    %180 = tpu.matmul %179, %178, %cst_93 {dimension_numbers = #tpu.dot_dimension_numbers<[1], [0], [0], [1], [0, 0, 1, 1], [], []>} : vector<2x128xbf16>, vector<128x128xbf16>, vector<2x128xf32> -> vector<2x128xf32>
    %181 = vector.broadcast %19 : vector<1x128xf32> to vector<2x128xf32>
    %182 = arith.addf %180, %181 : vector<2x128xf32>
    %cst_94 = arith.constant dense<0.000000e+00> : vector<2xf32>
    %183 = vector.multi_reduction <add>, %182, %cst_94 [1] : vector<2x128xf32> to vector<2xf32>
    %184 = vector.shape_cast %183 : vector<2xf32> to vector<2x1xf32>
    %cst_95 = arith.constant 0.020833334 : f32
    %185 = vector.broadcast %cst_95 : f32 to vector<2x1xf32>
    %186 = arith.mulf %184, %185 : vector<2x1xf32>
    %187 = arith.mulf %182, %182 : vector<2x128xf32>
    %cst_96 = arith.constant dense<0.000000e+00> : vector<2xf32>
    %188 = vector.multi_reduction <add>, %187, %cst_96 [1] : vector<2x128xf32> to vector<2xf32>
    %189 = vector.shape_cast %188 : vector<2xf32> to vector<2x1xf32>
    %cst_97 = arith.constant 0.020833334 : f32
    %190 = vector.broadcast %cst_97 : f32 to vector<2x1xf32>
    %191 = arith.mulf %189, %190 : vector<2x1xf32>
    %192 = arith.mulf %186, %186 : vector<2x1xf32>
    %193 = arith.subf %191, %192 : vector<2x1xf32>
    %cst_98 = arith.constant 0.000000e+00 : f32
    %194 = vector.broadcast %cst_98 : f32 to vector<2x1xf32>
    %195 = arith.maximumf %193, %194 : vector<2x1xf32>
    %196 = vector.broadcast %186 : vector<2x1xf32> to vector<2x128xf32>
    %197 = arith.subf %182, %196 : vector<2x128xf32>
    %cst_99 = arith.constant 9.99999974E-6 : f32
    %198 = vector.broadcast %cst_99 : f32 to vector<2x1xf32>
    %199 = arith.addf %195, %198 : vector<2x1xf32>
    %200 = math.rsqrt %199 : vector<2x1xf32>
    %201 = vector.broadcast %200 : vector<2x1xf32> to vector<2x128xf32>
    %202 = arith.mulf %197, %201 : vector<2x128xf32>
    %203 = vector.broadcast %21 : vector<1x128xf32> to vector<2x128xf32>
    %204 = arith.mulf %202, %203 : vector<2x128xf32>
    %205 = vector.broadcast %23 : vector<1x128xf32> to vector<2x128xf32>
    %206 = arith.addf %204, %205 : vector<2x128xf32>
    %cst_100 = arith.constant 0.000000e+00 : f32
    %207 = vector.broadcast %cst_100 : f32 to vector<2x128xf32>
    %208 = arith.maximumf %206, %207 : vector<2x128xf32>
    %c0_101 = arith.constant 0 : index
    %c0_102 = arith.constant 0 : index
    %c0_103 = arith.constant 0 : index
    %209 = vector.load %arg8[%c0_101, %c0_102, %c0_103] : memref<1x2x128xf32, #tpu.memory_space<vmem>>, vector<1x2x128xf32>
    %210 = vector.shape_cast %209 : vector<1x2x128xf32> to vector<2x128xf32>
    %211 = vector.shape_cast %208 : vector<2x128xf32> to vector<1x2x128xf32>
    tpu.vector_store %arg8[%c0_101, %c0_102, %c0_103], %211 {strides = array<i32>} : memref<1x2x128xf32, #tpu.memory_space<vmem>>, vector<1x2x128xf32>,
    return
  }
  func.func @transform_0(%arg0: i32) -> (i32, i32, i32) {
    %c0_i32 = arith.constant 0 : i32
    %c0_i32_0 = arith.constant 0 : i32
    %c0_i32_1 = arith.constant 0 : i32
    return %arg0, %c0_i32, %c0_i32_0 : i32, i32, i32
  }
  func.func @transform_1(%arg0: i32) -> (i32, i32, i32) {
    %c0_i32 = arith.constant 0 : i32
    %c0_i32_0 = arith.constant 0 : i32
    %c0_i32_1 = arith.constant 0 : i32
    return %arg0, %c0_i32, %c0_i32_0 : i32, i32, i32
  }
  func.func @transform_2(%arg0: i32) -> (i32, i32, i32) {
    %c0_i32 = arith.constant 0 : i32
    %c0_i32_0 = arith.constant 0 : i32
    %c0_i32_1 = arith.constant 0 : i32
    return %arg0, %c0_i32, %c0_i32_0 : i32, i32, i32
  }
  func.func @transform_3(%arg0: i32) -> (i32, i32, i32) {
    %c0_i32 = arith.constant 0 : i32
    %c0_i32_0 = arith.constant 0 : i32
    %c0_i32_1 = arith.constant 0 : i32
    return %arg0, %c0_i32, %c0_i32_0 : i32, i32, i32
  }
  func.func @transform_4(%arg0: i32) -> (i32, i32, i32, i32) {
    %c0_i32 = arith.constant 0 : i32
    %c0_i32_0 = arith.constant 0 : i32
    %c0_i32_1 = arith.constant 0 : i32
    %c0_i32_2 = arith.constant 0 : i32
    return %arg0, %c0_i32, %c0_i32_0, %c0_i32_1 : i32, i32, i32, i32
  }
  func.func @transform_5(%arg0: i32) -> (i32, i32, i32) {
    %c0_i32 = arith.constant 0 : i32
    %c0_i32_0 = arith.constant 0 : i32
    %c0_i32_1 = arith.constant 0 : i32
    return %arg0, %c0_i32, %c0_i32_0 : i32, i32, i32
  }
  func.func @transform_6(%arg0: i32) -> (i32, i32, i32) {
    %c0_i32 = arith.constant 0 : i32
    %c0_i32_0 = arith.constant 0 : i32
    %c0_i32_1 = arith.constant 0 : i32
    return %arg0, %c0_i32, %c0_i32_0 : i32, i32, i32
  }
  func.func @transform_7(%arg0: i32) -> (i32, i32, i32) {
    %c0_i32 = arith.constant 0 : i32
    %c0_i32_0 = arith.constant 0 : i32
    %c0_i32_1 = arith.constant 0 : i32
    return %arg0, %c0_i32, %c0_i32_0 : i32, i32, i32
  }
}

module attributes {stable_mosaic.version = 11 : i64} {
  func.func @encoder_kernel(%arg0: i32, %arg1: i32, %arg2: memref<1x2x8x128xf32, #tpu.memory_space<vmem>>, %arg3: memref<1x1x128x1152xbf16, #tpu.memory_space<vmem>>, %arg4: memref<1x1x384x128xbf16, #tpu.memory_space<vmem>>, %arg5: memref<1x1x128x256xbf16, #tpu.memory_space<vmem>>, %arg6: memref<1x1x1x256xf32, #tpu.memory_space<vmem>>, %arg7: memref<1x1x256x128xbf16, #tpu.memory_space<vmem>>, %arg8: memref<1x1x6x128xf32, #tpu.memory_space<vmem>>, %arg9: memref<1x1x128xf32, #tpu.memory_space<vmem>>, %arg10: memref<1x1x1xf32, #tpu.memory_space<vmem>>, %arg11: memref<1x2x128xf32, #tpu.memory_space<vmem>>, %arg12: memref<2x8x128xf32, #tpu.memory_space<vmem>>) attributes {dimension_semantics = [#tpu.dimension_semantics<parallel>, #tpu.dimension_semantics<arbitrary>], iteration_bounds = array<i64: 3, 2>, scalar_prefetch = 0 : i64, scratch_operands = 1 : i64, tpu.core_type = #tpu.core_type<tc>, window_params = [{transform_indices = @transform_0, window_bounds = array<i64: 1, 2, 8, 128>}, {transform_indices = @transform_1, window_bounds = array<i64: 1, 1, 128, 1152>}, {transform_indices = @transform_2, window_bounds = array<i64: 1, 1, 384, 128>}, {transform_indices = @transform_3, window_bounds = array<i64: 1, 1, 128, 256>}, {transform_indices = @transform_4, window_bounds = array<i64: 1, 1, 1, 256>}, {transform_indices = @transform_5, window_bounds = array<i64: 1, 1, 256, 128>}, {transform_indices = @transform_6, window_bounds = array<i64: 1, 1, 6, 128>}, {transform_indices = @transform_7, window_bounds = array<i64: 1, 1, 128>}, {transform_indices = @transform_8, window_bounds = array<i64: 1, 1, 1>}, {transform_indices = @transform_9, window_bounds = array<i64: 1, 2, 128>}]} {
    %c0_i32 = arith.constant 0 : i32
    %0 = arith.cmpi eq, %arg1, %c0_i32 : i32
    %1 = arith.extui %0 : i1 to i32
    %c0_i32_0 = arith.constant 0 : i32
    %2 = arith.cmpi ne, %1, %c0_i32_0 : i32
    scf.if %2 {
      %c0_77 = arith.constant 0 : index
      %c0_78 = arith.constant 0 : index
      %c0_79 = arith.constant 0 : index
      %c0_80 = arith.constant 0 : index
      %174 = vector.load %arg2[%c0_77, %c0_78, %c0_79, %c0_80] : memref<1x2x8x128xf32, #tpu.memory_space<vmem>>, vector<1x2x8x128xf32>
      %175 = vector.shape_cast %174 : vector<1x2x8x128xf32> to vector<2x8x128xf32>
      %c0_81 = arith.constant 0 : index
      %c0_82 = arith.constant 0 : index
      %c0_83 = arith.constant 0 : index
      %176 = vector.load %arg12[%c0_81, %c0_82, %c0_83] : memref<2x8x128xf32, #tpu.memory_space<vmem>>, vector<2x8x128xf32>
      tpu.vector_store %arg12[%c0_81, %c0_82, %c0_83], %175 {strides = array<i32>} : memref<2x8x128xf32, #tpu.memory_space<vmem>>, vector<2x8x128xf32>,
    } else {
    }
    %c0 = arith.constant 0 : index
    %c0_1 = arith.constant 0 : index
    %c0_2 = arith.constant 0 : index
    %3 = vector.load %arg12[%c0, %c0_1, %c0_2] : memref<2x8x128xf32, #tpu.memory_space<vmem>>, vector<2x8x128xf32>
    %4 = vector.shape_cast %3 : vector<2x8x128xf32> to vector<16x128xf32>
    %c0_3 = arith.constant 0 : index
    %c0_4 = arith.constant 0 : index
    %c0_5 = arith.constant 0 : index
    %c0_6 = arith.constant 0 : index
    %5 = vector.load %arg3[%c0_3, %c0_4, %c0_5, %c0_6] : memref<1x1x128x1152xbf16, #tpu.memory_space<vmem>>, vector<1x1x128x1152xbf16>
    %6 = vector.shape_cast %5 : vector<1x1x128x1152xbf16> to vector<128x1152xbf16>
    %7 = arith.truncf %4 : vector<16x128xf32> to vector<16x128xbf16>
    %cst = arith.constant dense<0.000000e+00> : vector<16x1152xf32>
    %8 = tpu.matmul %7, %6, %cst {dimension_numbers = #tpu.dot_dimension_numbers<[1], [0], [0], [1], [0, 0, 1, 1], [], []>} : vector<16x128xbf16>, vector<128x1152xbf16>, vector<16x1152xf32> -> vector<16x1152xf32>
    %9 = vector.extract_strided_slice %8 {offsets = [0, 0], sizes = [16, 128], strides = [1, 1]} : vector<16x1152xf32> to vector<16x128xf32>
    %10 = vector.shape_cast %9 : vector<16x128xf32> to vector<2x8x128xf32>
    %11 = vector.extract_strided_slice %8 {offsets = [0, 384], sizes = [16, 128], strides = [1, 1]} : vector<16x1152xf32> to vector<16x128xf32>
    %12 = vector.shape_cast %11 : vector<16x128xf32> to vector<2x8x128xf32>
    %13 = vector.extract_strided_slice %8 {offsets = [0, 768], sizes = [16, 128], strides = [1, 1]} : vector<16x1152xf32> to vector<16x128xf32>
    %14 = vector.shape_cast %13 : vector<16x128xf32> to vector<2x8x128xf32>
    %15 = arith.truncf %10 : vector<2x8x128xf32> to vector<2x8x128xbf16>
    %16 = arith.truncf %12 : vector<2x8x128xf32> to vector<2x8x128xbf16>
    "tpu.trace_start"() <{level = 10 : i32, message = "bqe,bke->bqk"}> : () -> ()
    %cst_7 = arith.constant dense<0.000000e+00> : vector<2x8x8xf32>
    %17 = tpu.matmul %15, %16, %cst_7 {dimension_numbers = #tpu.dot_dimension_numbers<[2], [2], [1], [1], [0, 0, 0, 1, 1, 1], [0], [0]>} : vector<2x8x128xbf16>, vector<2x8x128xbf16>, vector<2x8x8xf32> -> vector<2x8x8xf32>
    "tpu.trace_stop"() : () -> ()
    %cst_8 = arith.constant 2.500000e-01 : f32
    %18 = vector.broadcast %cst_8 : f32 to vector<2x8x8xf32>
    %19 = arith.mulf %17, %18 : vector<2x8x8xf32>
    %cst_9 = arith.constant dense<0xFF800000> : vector<2x8xf32>
    %20 = vector.multi_reduction <maximumf>, %19, %cst_9 [2] : vector<2x8x8xf32> to vector<2x8xf32>
    %21 = vector.shape_cast %20 : vector<2x8xf32> to vector<2x8x1xf32>
    %22 = vector.broadcast %21 : vector<2x8x1xf32> to vector<2x8x8xf32>
    %23 = arith.subf %19, %22 : vector<2x8x8xf32>
    %24 = math.exp %23 : vector<2x8x8xf32>
    %cst_10 = arith.constant dense<0.000000e+00> : vector<2x8xf32>
    %25 = vector.multi_reduction <add>, %24, %cst_10 [2] : vector<2x8x8xf32> to vector<2x8xf32>
    %26 = vector.shape_cast %25 : vector<2x8xf32> to vector<2x8x1xf32>
    %27 = tpu.reciprocal %26 {approx = true} : vector<2x8x1xf32> -> vector<2x8x1xf32>
    %28 = vector.broadcast %27 : vector<2x8x1xf32> to vector<2x8x8xf32>
    %29 = arith.mulf %24, %28 : vector<2x8x8xf32>
    %30 = arith.truncf %29 : vector<2x8x8xf32> to vector<2x8x8xbf16>
    %31 = arith.truncf %14 : vector<2x8x128xf32> to vector<2x8x128xbf16>
    "tpu.trace_start"() <{level = 10 : i32, message = "bqk,bke->bqe"}> : () -> ()
    %cst_11 = arith.constant dense<0.000000e+00> : vector<2x8x128xf32>
    %32 = tpu.matmul %30, %31, %cst_11 {dimension_numbers = #tpu.dot_dimension_numbers<[2], [1], [1], [2], [0, 0, 0, 1, 1, 2], [0], [0]>} : vector<2x8x8xbf16>, vector<2x8x128xbf16>, vector<2x8x128xf32> -> vector<2x8x128xf32>
    "tpu.trace_stop"() : () -> ()
    %33 = vector.shape_cast %32 : vector<2x8x128xf32> to vector<16x128xf32>
    %34 = vector.extract_strided_slice %8 {offsets = [0, 128], sizes = [16, 128], strides = [1, 1]} : vector<16x1152xf32> to vector<16x128xf32>
    %35 = vector.shape_cast %34 : vector<16x128xf32> to vector<2x8x128xf32>
    %36 = vector.extract_strided_slice %8 {offsets = [0, 512], sizes = [16, 128], strides = [1, 1]} : vector<16x1152xf32> to vector<16x128xf32>
    %37 = vector.shape_cast %36 : vector<16x128xf32> to vector<2x8x128xf32>
    %38 = vector.extract_strided_slice %8 {offsets = [0, 896], sizes = [16, 128], strides = [1, 1]} : vector<16x1152xf32> to vector<16x128xf32>
    %39 = vector.shape_cast %38 : vector<16x128xf32> to vector<2x8x128xf32>
    %40 = arith.truncf %35 : vector<2x8x128xf32> to vector<2x8x128xbf16>
    %41 = arith.truncf %37 : vector<2x8x128xf32> to vector<2x8x128xbf16>
    "tpu.trace_start"() <{level = 10 : i32, message = "bqe,bke->bqk"}> : () -> ()
    %cst_12 = arith.constant dense<0.000000e+00> : vector<2x8x8xf32>
    %42 = tpu.matmul %40, %41, %cst_12 {dimension_numbers = #tpu.dot_dimension_numbers<[2], [2], [1], [1], [0, 0, 0, 1, 1, 1], [0], [0]>} : vector<2x8x128xbf16>, vector<2x8x128xbf16>, vector<2x8x8xf32> -> vector<2x8x8xf32>
    "tpu.trace_stop"() : () -> ()
    %cst_13 = arith.constant 2.500000e-01 : f32
    %43 = vector.broadcast %cst_13 : f32 to vector<2x8x8xf32>
    %44 = arith.mulf %42, %43 : vector<2x8x8xf32>
    %cst_14 = arith.constant dense<0xFF800000> : vector<2x8xf32>
    %45 = vector.multi_reduction <maximumf>, %44, %cst_14 [2] : vector<2x8x8xf32> to vector<2x8xf32>
    %46 = vector.shape_cast %45 : vector<2x8xf32> to vector<2x8x1xf32>
    %47 = vector.broadcast %46 : vector<2x8x1xf32> to vector<2x8x8xf32>
    %48 = arith.subf %44, %47 : vector<2x8x8xf32>
    %49 = math.exp %48 : vector<2x8x8xf32>
    %cst_15 = arith.constant dense<0.000000e+00> : vector<2x8xf32>
    %50 = vector.multi_reduction <add>, %49, %cst_15 [2] : vector<2x8x8xf32> to vector<2x8xf32>
    %51 = vector.shape_cast %50 : vector<2x8xf32> to vector<2x8x1xf32>
    %52 = tpu.reciprocal %51 {approx = true} : vector<2x8x1xf32> -> vector<2x8x1xf32>
    %53 = vector.broadcast %52 : vector<2x8x1xf32> to vector<2x8x8xf32>
    %54 = arith.mulf %49, %53 : vector<2x8x8xf32>
    %55 = arith.truncf %54 : vector<2x8x8xf32> to vector<2x8x8xbf16>
    %56 = arith.truncf %39 : vector<2x8x128xf32> to vector<2x8x128xbf16>
    "tpu.trace_start"() <{level = 10 : i32, message = "bqk,bke->bqe"}> : () -> ()
    %cst_16 = arith.constant dense<0.000000e+00> : vector<2x8x128xf32>
    %57 = tpu.matmul %55, %56, %cst_16 {dimension_numbers = #tpu.dot_dimension_numbers<[2], [1], [1], [2], [0, 0, 0, 1, 1, 2], [0], [0]>} : vector<2x8x8xbf16>, vector<2x8x128xbf16>, vector<2x8x128xf32> -> vector<2x8x128xf32>
    "tpu.trace_stop"() : () -> ()
    %58 = vector.shape_cast %57 : vector<2x8x128xf32> to vector<16x128xf32>
    %59 = vector.extract_strided_slice %8 {offsets = [0, 256], sizes = [16, 128], strides = [1, 1]} : vector<16x1152xf32> to vector<16x128xf32>
    %60 = vector.shape_cast %59 : vector<16x128xf32> to vector<2x8x128xf32>
    %61 = vector.extract_strided_slice %8 {offsets = [0, 640], sizes = [16, 128], strides = [1, 1]} : vector<16x1152xf32> to vector<16x128xf32>
    %62 = vector.shape_cast %61 : vector<16x128xf32> to vector<2x8x128xf32>
    %63 = vector.extract_strided_slice %8 {offsets = [0, 1024], sizes = [16, 128], strides = [1, 1]} : vector<16x1152xf32> to vector<16x128xf32>
    %64 = vector.shape_cast %63 : vector<16x128xf32> to vector<2x8x128xf32>
    %65 = arith.truncf %60 : vector<2x8x128xf32> to vector<2x8x128xbf16>
    %66 = arith.truncf %62 : vector<2x8x128xf32> to vector<2x8x128xbf16>
    "tpu.trace_start"() <{level = 10 : i32, message = "bqe,bke->bqk"}> : () -> ()
    %cst_17 = arith.constant dense<0.000000e+00> : vector<2x8x8xf32>
    %67 = tpu.matmul %65, %66, %cst_17 {dimension_numbers = #tpu.dot_dimension_numbers<[2], [2], [1], [1], [0, 0, 0, 1, 1, 1], [0], [0]>} : vector<2x8x128xbf16>, vector<2x8x128xbf16>, vector<2x8x8xf32> -> vector<2x8x8xf32>
    "tpu.trace_stop"() : () -> ()
    %cst_18 = arith.constant 2.500000e-01 : f32
    %68 = vector.broadcast %cst_18 : f32 to vector<2x8x8xf32>
    %69 = arith.mulf %67, %68 : vector<2x8x8xf32>
    %cst_19 = arith.constant dense<0xFF800000> : vector<2x8xf32>
    %70 = vector.multi_reduction <maximumf>, %69, %cst_19 [2] : vector<2x8x8xf32> to vector<2x8xf32>
    %71 = vector.shape_cast %70 : vector<2x8xf32> to vector<2x8x1xf32>
    %72 = vector.broadcast %71 : vector<2x8x1xf32> to vector<2x8x8xf32>
    %73 = arith.subf %69, %72 : vector<2x8x8xf32>
    %74 = math.exp %73 : vector<2x8x8xf32>
    %cst_20 = arith.constant dense<0.000000e+00> : vector<2x8xf32>
    %75 = vector.multi_reduction <add>, %74, %cst_20 [2] : vector<2x8x8xf32> to vector<2x8xf32>
    %76 = vector.shape_cast %75 : vector<2x8xf32> to vector<2x8x1xf32>
    %77 = tpu.reciprocal %76 {approx = true} : vector<2x8x1xf32> -> vector<2x8x1xf32>
    %78 = vector.broadcast %77 : vector<2x8x1xf32> to vector<2x8x8xf32>
    %79 = arith.mulf %74, %78 : vector<2x8x8xf32>
    %80 = arith.truncf %79 : vector<2x8x8xf32> to vector<2x8x8xbf16>
    %81 = arith.truncf %64 : vector<2x8x128xf32> to vector<2x8x128xbf16>
    "tpu.trace_start"() <{level = 10 : i32, message = "bqk,bke->bqe"}> : () -> ()
    %cst_21 = arith.constant dense<0.000000e+00> : vector<2x8x128xf32>
    %82 = tpu.matmul %80, %81, %cst_21 {dimension_numbers = #tpu.dot_dimension_numbers<[2], [1], [1], [2], [0, 0, 0, 1, 1, 2], [0], [0]>} : vector<2x8x8xbf16>, vector<2x8x128xbf16>, vector<2x8x128xf32> -> vector<2x8x128xf32>
    "tpu.trace_stop"() : () -> ()
    %83 = vector.shape_cast %82 : vector<2x8x128xf32> to vector<16x128xf32>
    %84 = tpu.concatenate %33, %58, %83 in 1 : vector<16x128xf32>, vector<16x128xf32>, vector<16x128xf32> -> vector<16x384xf32>
    %c0_22 = arith.constant 0 : index
    %c0_23 = arith.constant 0 : index
    %c0_24 = arith.constant 0 : index
    %c0_25 = arith.constant 0 : index
    %85 = vector.load %arg8[%c0_22, %c0_23, %c0_24, %c0_25] : memref<1x1x6x128xf32, #tpu.memory_space<vmem>>, vector<1x1x1x128xf32>
    %86 = vector.shape_cast %85 : vector<1x1x1x128xf32> to vector<1x128xf32>
    %c0_26 = arith.constant 0 : index
    %c0_27 = arith.constant 0 : index
    %c1 = arith.constant 1 : index
    %c0_28 = arith.constant 0 : index
    %87 = vector.load %arg8[%c0_26, %c0_27, %c1, %c0_28] : memref<1x1x6x128xf32, #tpu.memory_space<vmem>>, vector<1x1x1x128xf32>
    %88 = vector.shape_cast %87 : vector<1x1x1x128xf32> to vector<1x128xf32>
    %c0_29 = arith.constant 0 : index
    %c0_30 = arith.constant 0 : index
    %c2 = arith.constant 2 : index
    %c0_31 = arith.constant 0 : index
    %89 = vector.load %arg8[%c0_29, %c0_30, %c2, %c0_31] : memref<1x1x6x128xf32, #tpu.memory_space<vmem>>, vector<1x1x1x128xf32>
    %90 = vector.shape_cast %89 : vector<1x1x1x128xf32> to vector<1x128xf32>
    %c0_32 = arith.constant 0 : index
    %c0_33 = arith.constant 0 : index
    %c3 = arith.constant 3 : index
    %c0_34 = arith.constant 0 : index
    %91 = vector.load %arg8[%c0_32, %c0_33, %c3, %c0_34] : memref<1x1x6x128xf32, #tpu.memory_space<vmem>>, vector<1x1x1x128xf32>
    %92 = vector.shape_cast %91 : vector<1x1x1x128xf32> to vector<1x128xf32>
    %c0_35 = arith.constant 0 : index
    %c0_36 = arith.constant 0 : index
    %c4 = arith.constant 4 : index
    %c0_37 = arith.constant 0 : index
    %93 = vector.load %arg8[%c0_35, %c0_36, %c4, %c0_37] : memref<1x1x6x128xf32, #tpu.memory_space<vmem>>, vector<1x1x1x128xf32>
    %94 = vector.shape_cast %93 : vector<1x1x1x128xf32> to vector<1x128xf32>
    %c0_38 = arith.constant 0 : index
    %c0_39 = arith.constant 0 : index
    %c5 = arith.constant 5 : index
    %c0_40 = arith.constant 0 : index
    %95 = vector.load %arg8[%c0_38, %c0_39, %c5, %c0_40] : memref<1x1x6x128xf32, #tpu.memory_space<vmem>>, vector<1x1x1x128xf32>
    %96 = vector.shape_cast %95 : vector<1x1x1x128xf32> to vector<1x128xf32>
    %c0_41 = arith.constant 0 : index
    %c0_42 = arith.constant 0 : index
    %c0_43 = arith.constant 0 : index
    %c0_44 = arith.constant 0 : index
    %97 = vector.load %arg4[%c0_41, %c0_42, %c0_43, %c0_44] : memref<1x1x384x128xbf16, #tpu.memory_space<vmem>>, vector<1x1x384x128xbf16>
    %98 = vector.shape_cast %97 : vector<1x1x384x128xbf16> to vector<384x128xbf16>
    %99 = arith.truncf %84 : vector<16x384xf32> to vector<16x384xbf16>
    %cst_45 = arith.constant dense<0.000000e+00> : vector<16x128xf32>
    %100 = tpu.matmul %99, %98, %cst_45 {dimension_numbers = #tpu.dot_dimension_numbers<[1], [0], [0], [1], [0, 0, 1, 1], [], []>} : vector<16x384xbf16>, vector<384x128xbf16>, vector<16x128xf32> -> vector<16x128xf32>
    %101 = vector.broadcast %86 : vector<1x128xf32> to vector<16x128xf32>
    %102 = arith.addf %100, %101 : vector<16x128xf32>
    %103 = arith.addf %4, %102 : vector<16x128xf32>
    %cst_46 = arith.constant dense<0.000000e+00> : vector<16xf32>
    %104 = vector.multi_reduction <add>, %103, %cst_46 [1] : vector<16x128xf32> to vector<16xf32>
    %105 = vector.shape_cast %104 : vector<16xf32> to vector<16x1xf32>
    %cst_47 = arith.constant 0.020833334 : f32
    %106 = vector.broadcast %cst_47 : f32 to vector<16x1xf32>
    %107 = arith.mulf %105, %106 : vector<16x1xf32>
    %108 = arith.mulf %103, %103 : vector<16x128xf32>
    %cst_48 = arith.constant dense<0.000000e+00> : vector<16xf32>
    %109 = vector.multi_reduction <add>, %108, %cst_48 [1] : vector<16x128xf32> to vector<16xf32>
    %110 = vector.shape_cast %109 : vector<16xf32> to vector<16x1xf32>
    %cst_49 = arith.constant 0.020833334 : f32
    %111 = vector.broadcast %cst_49 : f32 to vector<16x1xf32>
    %112 = arith.mulf %110, %111 : vector<16x1xf32>
    %113 = arith.mulf %107, %107 : vector<16x1xf32>
    %114 = arith.subf %112, %113 : vector<16x1xf32>
    %cst_50 = arith.constant 0.000000e+00 : f32
    %115 = vector.broadcast %cst_50 : f32 to vector<16x1xf32>
    %116 = arith.maximumf %114, %115 : vector<16x1xf32>
    %117 = vector.broadcast %107 : vector<16x1xf32> to vector<16x128xf32>
    %118 = arith.subf %103, %117 : vector<16x128xf32>
    %cst_51 = arith.constant 9.99999974E-6 : f32
    %119 = vector.broadcast %cst_51 : f32 to vector<16x1xf32>
    %120 = arith.addf %116, %119 : vector<16x1xf32>
    %121 = math.rsqrt %120 : vector<16x1xf32>
    %122 = vector.broadcast %121 : vector<16x1xf32> to vector<16x128xf32>
    %123 = arith.mulf %118, %122 : vector<16x128xf32>
    %124 = vector.broadcast %88 : vector<1x128xf32> to vector<16x128xf32>
    %125 = arith.mulf %123, %124 : vector<16x128xf32>
    %126 = vector.broadcast %90 : vector<1x128xf32> to vector<16x128xf32>
    %127 = arith.addf %125, %126 : vector<16x128xf32>
    %c0_52 = arith.constant 0 : index
    %c0_53 = arith.constant 0 : index
    %c0_54 = arith.constant 0 : index
    %c0_55 = arith.constant 0 : index
    %128 = vector.load %arg5[%c0_52, %c0_53, %c0_54, %c0_55] : memref<1x1x128x256xbf16, #tpu.memory_space<vmem>>, vector<1x1x128x256xbf16>
    %129 = vector.shape_cast %128 : vector<1x1x128x256xbf16> to vector<128x256xbf16>
    %130 = arith.truncf %127 : vector<16x128xf32> to vector<16x128xbf16>
    %cst_56 = arith.constant dense<0.000000e+00> : vector<16x256xf32>
    %131 = tpu.matmul %130, %129, %cst_56 {dimension_numbers = #tpu.dot_dimension_numbers<[1], [0], [0], [1], [0, 0, 1, 1], [], []>} : vector<16x128xbf16>, vector<128x256xbf16>, vector<16x256xf32> -> vector<16x256xf32>
    %c0_57 = arith.constant 0 : index
    %c0_58 = arith.constant 0 : index
    %c0_59 = arith.constant 0 : index
    %c0_60 = arith.constant 0 : index
    %132 = vector.load %arg6[%c0_57, %c0_58, %c0_59, %c0_60] : memref<1x1x1x256xf32, #tpu.memory_space<vmem>>, vector<1x1x1x256xf32>
    %133 = vector.shape_cast %132 : vector<1x1x1x256xf32> to vector<1x256xf32>
    %134 = vector.broadcast %133 : vector<1x256xf32> to vector<16x256xf32>
    %135 = arith.addf %131, %134 : vector<16x256xf32>
    %cst_61 = arith.constant 0.000000e+00 : f32
    %136 = vector.broadcast %cst_61 : f32 to vector<16x256xf32>
    %137 = arith.maximumf %135, %136 : vector<16x256xf32>
    %c0_62 = arith.constant 0 : index
    %c0_63 = arith.constant 0 : index
    %c0_64 = arith.constant 0 : index
    %c0_65 = arith.constant 0 : index
    %138 = vector.load %arg7[%c0_62, %c0_63, %c0_64, %c0_65] : memref<1x1x256x128xbf16, #tpu.memory_space<vmem>>, vector<1x1x256x128xbf16>
    %139 = vector.shape_cast %138 : vector<1x1x256x128xbf16> to vector<256x128xbf16>
    %140 = arith.truncf %137 : vector<16x256xf32> to vector<16x256xbf16>
    %cst_66 = arith.constant dense<0.000000e+00> : vector<16x128xf32>
    %141 = tpu.matmul %140, %139, %cst_66 {dimension_numbers = #tpu.dot_dimension_numbers<[1], [0], [0], [1], [0, 0, 1, 1], [], []>} : vector<16x256xbf16>, vector<256x128xbf16>, vector<16x128xf32> -> vector<16x128xf32>
    %142 = vector.broadcast %92 : vector<1x128xf32> to vector<16x128xf32>
    %143 = arith.addf %141, %142 : vector<16x128xf32>
    %144 = arith.addf %127, %143 : vector<16x128xf32>
    %cst_67 = arith.constant dense<0.000000e+00> : vector<16xf32>
    %145 = vector.multi_reduction <add>, %144, %cst_67 [1] : vector<16x128xf32> to vector<16xf32>
    %146 = vector.shape_cast %145 : vector<16xf32> to vector<16x1xf32>
    %cst_68 = arith.constant 0.020833334 : f32
    %147 = vector.broadcast %cst_68 : f32 to vector<16x1xf32>
    %148 = arith.mulf %146, %147 : vector<16x1xf32>
    %149 = arith.mulf %144, %144 : vector<16x128xf32>
    %cst_69 = arith.constant dense<0.000000e+00> : vector<16xf32>
    %150 = vector.multi_reduction <add>, %149, %cst_69 [1] : vector<16x128xf32> to vector<16xf32>
    %151 = vector.shape_cast %150 : vector<16xf32> to vector<16x1xf32>
    %cst_70 = arith.constant 0.020833334 : f32
    %152 = vector.broadcast %cst_70 : f32 to vector<16x1xf32>
    %153 = arith.mulf %151, %152 : vector<16x1xf32>
    %154 = arith.mulf %148, %148 : vector<16x1xf32>
    %155 = arith.subf %153, %154 : vector<16x1xf32>
    %cst_71 = arith.constant 0.000000e+00 : f32
    %156 = vector.broadcast %cst_71 : f32 to vector<16x1xf32>
    %157 = arith.maximumf %155, %156 : vector<16x1xf32>
    %158 = vector.broadcast %148 : vector<16x1xf32> to vector<16x128xf32>
    %159 = arith.subf %144, %158 : vector<16x128xf32>
    %cst_72 = arith.constant 9.99999974E-6 : f32
    %160 = vector.broadcast %cst_72 : f32 to vector<16x1xf32>
    %161 = arith.addf %157, %160 : vector<16x1xf32>
    %162 = math.rsqrt %161 : vector<16x1xf32>
    %163 = vector.broadcast %162 : vector<16x1xf32> to vector<16x128xf32>
    %164 = arith.mulf %159, %163 : vector<16x128xf32>
    %165 = vector.broadcast %94 : vector<1x128xf32> to vector<16x128xf32>
    %166 = arith.mulf %164, %165 : vector<16x128xf32>
    %167 = vector.broadcast %96 : vector<1x128xf32> to vector<16x128xf32>
    %168 = arith.addf %166, %167 : vector<16x128xf32>
    %169 = vector.shape_cast %168 : vector<16x128xf32> to vector<2x8x128xf32>
    %c0_73 = arith.constant 0 : index
    %c0_74 = arith.constant 0 : index
    %c0_75 = arith.constant 0 : index
    %170 = vector.load %arg12[%c0_73, %c0_74, %c0_75] : memref<2x8x128xf32, #tpu.memory_space<vmem>>, vector<2x8x128xf32>
    tpu.vector_store %arg12[%c0_73, %c0_74, %c0_75], %169 {strides = array<i32>} : memref<2x8x128xf32, #tpu.memory_space<vmem>>, vector<2x8x128xf32>,
    %c1_i32 = arith.constant 1 : i32
    %171 = arith.cmpi eq, %arg1, %c1_i32 : i32
    %172 = arith.extui %171 : i1 to i32
    %c0_i32_76 = arith.constant 0 : i32
    %173 = arith.cmpi ne, %172, %c0_i32_76 : i32
    scf.if %173 {
      %174 = vector.shape_cast %168 : vector<16x128xf32> to vector<2x8x128xf32>
      %c0_77 = arith.constant 0 : index
      %c0_78 = arith.constant 0 : index
      %c0_79 = arith.constant 0 : index
      %175 = vector.load %arg9[%c0_77, %c0_78, %c0_79] : memref<1x1x128xf32, #tpu.memory_space<vmem>>, vector<1x1x128xf32>
      %176 = vector.shape_cast %175 : vector<1x1x128xf32> to vector<1x128xf32>
      %177 = vector.shape_cast %176 : vector<1x128xf32> to vector<1x1x128xf32>
      %178 = vector.broadcast %177 : vector<1x1x128xf32> to vector<2x8x128xf32>
      %179 = arith.mulf %174, %178 : vector<2x8x128xf32>
      %cst_80 = arith.constant dense<0.000000e+00> : vector<2x8xf32>
      %180 = vector.multi_reduction <add>, %179, %cst_80 [2] : vector<2x8x128xf32> to vector<2x8xf32>
      %181 = vector.shape_cast %180 : vector<2x8xf32> to vector<2x8x1xf32>
      %c0_81 = arith.constant 0 : index
      %c0_82 = arith.constant 0 : index
      %c0_83 = arith.constant 0 : index
      %182 = vector.load %arg10[%c0_81, %c0_82, %c0_83] : memref<1x1x1xf32, #tpu.memory_space<vmem>>, vector<1x1x1xf32>
      %183 = vector.shape_cast %182 : vector<1x1x1xf32> to vector<1x1xf32>
      %184 = vector.shape_cast %183 : vector<1x1xf32> to vector<1x1x1xf32>
      %185 = vector.broadcast %184 : vector<1x1x1xf32> to vector<2x8x1xf32>
      %186 = arith.addf %181, %185 : vector<2x8x1xf32>
      %cst_84 = arith.constant dense<0xFF800000> : vector<2x1xf32>
      %187 = vector.multi_reduction <maximumf>, %186, %cst_84 [1] : vector<2x8x1xf32> to vector<2x1xf32>
      %188 = vector.shape_cast %187 : vector<2x1xf32> to vector<2x1x1xf32>
      %189 = vector.broadcast %188 : vector<2x1x1xf32> to vector<2x8x1xf32>
      %190 = arith.subf %186, %189 : vector<2x8x1xf32>
      %191 = math.exp %190 : vector<2x8x1xf32>
      %cst_85 = arith.constant dense<0.000000e+00> : vector<2x1xf32>
      %192 = vector.multi_reduction <add>, %191, %cst_85 [1] : vector<2x8x1xf32> to vector<2x1xf32>
      %193 = vector.shape_cast %192 : vector<2x1xf32> to vector<2x1x1xf32>
      %194 = tpu.reciprocal %193 {approx = true} : vector<2x1x1xf32> -> vector<2x1x1xf32>
      %195 = vector.broadcast %194 : vector<2x1x1xf32> to vector<2x8x1xf32>
      %196 = arith.mulf %191, %195 : vector<2x8x1xf32>
      %197 = vector.broadcast %196 : vector<2x8x1xf32> to vector<2x8x128xf32>
      %198 = arith.mulf %197, %174 : vector<2x8x128xf32>
      %cst_86 = arith.constant dense<0.000000e+00> : vector<2x128xf32>
      %199 = vector.multi_reduction <add>, %198, %cst_86 [1] : vector<2x8x128xf32> to vector<2x128xf32>
      %c0_87 = arith.constant 0 : index
      %c0_88 = arith.constant 0 : index
      %c0_89 = arith.constant 0 : index
      %200 = vector.load %arg11[%c0_87, %c0_88, %c0_89] : memref<1x2x128xf32, #tpu.memory_space<vmem>>, vector<1x2x128xf32>
      %201 = vector.shape_cast %200 : vector<1x2x128xf32> to vector<2x128xf32>
      %202 = vector.shape_cast %199 : vector<2x128xf32> to vector<1x2x128xf32>
      tpu.vector_store %arg11[%c0_87, %c0_88, %c0_89], %202 {strides = array<i32>} : memref<1x2x128xf32, #tpu.memory_space<vmem>>, vector<1x2x128xf32>,
    } else {
    }
    return
  }
  func.func @transform_0(%arg0: i32, %arg1: i32) -> (i32, i32, i32, i32) {
    %c0_i32 = arith.constant 0 : i32
    %c0_i32_0 = arith.constant 0 : i32
    %c0_i32_1 = arith.constant 0 : i32
    %c0_i32_2 = arith.constant 0 : i32
    return %arg0, %c0_i32, %c0_i32_0, %c0_i32_1 : i32, i32, i32, i32
  }
  func.func @transform_1(%arg0: i32, %arg1: i32) -> (i32, i32, i32, i32) {
    %c0_i32 = arith.constant 0 : i32
    %c0_i32_0 = arith.constant 0 : i32
    %c0_i32_1 = arith.constant 0 : i32
    return %arg1, %arg0, %c0_i32, %c0_i32_0 : i32, i32, i32, i32
  }
  func.func @transform_2(%arg0: i32, %arg1: i32) -> (i32, i32, i32, i32) {
    %c0_i32 = arith.constant 0 : i32
    %c0_i32_0 = arith.constant 0 : i32
    %c0_i32_1 = arith.constant 0 : i32
    return %arg1, %arg0, %c0_i32, %c0_i32_0 : i32, i32, i32, i32
  }
  func.func @transform_3(%arg0: i32, %arg1: i32) -> (i32, i32, i32, i32) {
    %c0_i32 = arith.constant 0 : i32
    %c0_i32_0 = arith.constant 0 : i32
    %c0_i32_1 = arith.constant 0 : i32
    return %arg1, %arg0, %c0_i32, %c0_i32_0 : i32, i32, i32, i32
  }
  func.func @transform_4(%arg0: i32, %arg1: i32) -> (i32, i32, i32, i32) {
    %c0_i32 = arith.constant 0 : i32
    %c0_i32_0 = arith.constant 0 : i32
    %c0_i32_1 = arith.constant 0 : i32
    return %arg1, %arg0, %c0_i32, %c0_i32_0 : i32, i32, i32, i32
  }
  func.func @transform_5(%arg0: i32, %arg1: i32) -> (i32, i32, i32, i32) {
    %c0_i32 = arith.constant 0 : i32
    %c0_i32_0 = arith.constant 0 : i32
    %c0_i32_1 = arith.constant 0 : i32
    return %arg1, %arg0, %c0_i32, %c0_i32_0 : i32, i32, i32, i32
  }
  func.func @transform_6(%arg0: i32, %arg1: i32) -> (i32, i32, i32, i32) {
    %c0_i32 = arith.constant 0 : i32
    %c0_i32_0 = arith.constant 0 : i32
    %c0_i32_1 = arith.constant 0 : i32
    return %arg1, %arg0, %c0_i32, %c0_i32_0 : i32, i32, i32, i32
  }
  func.func @transform_7(%arg0: i32, %arg1: i32) -> (i32, i32, i32) {
    %c0_i32 = arith.constant 0 : i32
    %c0_i32_0 = arith.constant 0 : i32
    %c0_i32_1 = arith.constant 0 : i32
    return %arg0, %c0_i32, %c0_i32_0 : i32, i32, i32
  }
  func.func @transform_8(%arg0: i32, %arg1: i32) -> (i32, i32, i32) {
    %c0_i32 = arith.constant 0 : i32
    %c0_i32_0 = arith.constant 0 : i32
    %c0_i32_1 = arith.constant 0 : i32
    return %arg0, %c0_i32, %c0_i32_0 : i32, i32, i32
  }
  func.func @transform_9(%arg0: i32, %arg1: i32) -> (i32, i32, i32) {
    %c0_i32 = arith.constant 0 : i32
    %c0_i32_0 = arith.constant 0 : i32
    %c0_i32_1 = arith.constant 0 : i32
    return %arg0, %c0_i32, %c0_i32_0 : i32, i32, i32
  }
}

module attributes {stable_mosaic.version = 11 : i64} {
  func.func @heads_kernel(%arg0: i32, %arg1: memref<2x128xf32, #tpu.memory_space<vmem>>, %arg2: memref<2x128xf32, #tpu.memory_space<vmem>>, %arg3: memref<5x2x128xf32, #tpu.memory_space<vmem>>, %arg4: memref<2x128xf32, #tpu.memory_space<vmem>>, %arg5: memref<2x128xf32, #tpu.memory_space<vmem>>, %arg6: memref<128x128xbf16, #tpu.memory_space<vmem>>, %arg7: memref<128x128xbf16, #tpu.memory_space<vmem>>, %arg8: memref<6x128xf32, #tpu.memory_space<vmem>>, %arg9: memref<4x128x256xbf16, #tpu.memory_space<vmem>>, %arg10: memref<4x3x256xf32, #tpu.memory_space<vmem>>, %arg11: memref<4x256x128xbf16, #tpu.memory_space<vmem>>, %arg12: memref<1x128xf32, #tpu.memory_space<vmem>>, %arg13: memref<2x128xf32, #tpu.memory_space<vmem>>) attributes {dimension_semantics = [#tpu.dimension_semantics<arbitrary>], iteration_bounds = array<i64: 1>, scalar_prefetch = 0 : i64, scratch_operands = 0 : i64, tpu.core_type = #tpu.core_type<tc>, window_params = [{pipeline_mode = #tpu.pipeline_mode<synchronous>, transform_indices = @transform_0, window_bounds = array<i64: 2, 128>}, {pipeline_mode = #tpu.pipeline_mode<synchronous>, transform_indices = @transform_1, window_bounds = array<i64: 2, 128>}, {pipeline_mode = #tpu.pipeline_mode<synchronous>, transform_indices = @transform_2, window_bounds = array<i64: 5, 2, 128>}, {pipeline_mode = #tpu.pipeline_mode<synchronous>, transform_indices = @transform_3, window_bounds = array<i64: 2, 128>}, {pipeline_mode = #tpu.pipeline_mode<synchronous>, transform_indices = @transform_4, window_bounds = array<i64: 2, 128>}, {pipeline_mode = #tpu.pipeline_mode<synchronous>, transform_indices = @transform_5, window_bounds = array<i64: 128, 128>}, {pipeline_mode = #tpu.pipeline_mode<synchronous>, transform_indices = @transform_6, window_bounds = array<i64: 128, 128>}, {pipeline_mode = #tpu.pipeline_mode<synchronous>, transform_indices = @transform_7, window_bounds = array<i64: 6, 128>}, {pipeline_mode = #tpu.pipeline_mode<synchronous>, transform_indices = @transform_8, window_bounds = array<i64: 4, 128, 256>}, {pipeline_mode = #tpu.pipeline_mode<synchronous>, transform_indices = @transform_9, window_bounds = array<i64: 4, 3, 256>}, {pipeline_mode = #tpu.pipeline_mode<synchronous>, transform_indices = @transform_10, window_bounds = array<i64: 4, 256, 128>}, {pipeline_mode = #tpu.pipeline_mode<synchronous>, transform_indices = @transform_11, window_bounds = array<i64: 1, 128>}, {pipeline_mode = #tpu.pipeline_mode<synchronous>, transform_indices = @transform_12, window_bounds = array<i64: 2, 128>}]} {
    %c0 = arith.constant 0 : index
    %c0_0 = arith.constant 0 : index
    %c0_1 = arith.constant 0 : index
    %0 = vector.load %arg3[%c0, %c0_0, %c0_1] : memref<5x2x128xf32, #tpu.memory_space<vmem>>, vector<5x2x128xf32>
    %c0_2 = arith.constant 0 : index
    %c0_3 = arith.constant 0 : index
    %1 = vector.load %arg1[%c0_2, %c0_3] : memref<2x128xf32, #tpu.memory_space<vmem>>, vector<2x128xf32>
    %c0_4 = arith.constant 0 : index
    %c0_5 = arith.constant 0 : index
    %2 = vector.load %arg2[%c0_4, %c0_5] : memref<2x128xf32, #tpu.memory_space<vmem>>, vector<2x128xf32>
    %3 = arith.addf %1, %2 : vector<2x128xf32>
    %cst = arith.constant dense<0.000000e+00> : vector<2x128xf32>
    %4 = vector.multi_reduction <add>, %0, %cst [0] : vector<5x2x128xf32> to vector<2x128xf32>
    %5 = arith.addf %3, %4 : vector<2x128xf32>
    %c0_6 = arith.constant 0 : index
    %c0_7 = arith.constant 0 : index
    %6 = vector.load %arg6[%c0_6, %c0_7] : memref<128x128xbf16, #tpu.memory_space<vmem>>, vector<128x128xbf16>
    %7 = arith.truncf %5 : vector<2x128xf32> to vector<2x128xbf16>
    %cst_8 = arith.constant dense<0.000000e+00> : vector<2x128xf32>
    %8 = tpu.matmul %7, %6, %cst_8 {dimension_numbers = #tpu.dot_dimension_numbers<[1], [0], [0], [1], [0, 0, 1, 1], [], []>} : vector<2x128xbf16>, vector<128x128xbf16>, vector<2x128xf32> -> vector<2x128xf32>
    %c0_9 = arith.constant 0 : index
    %c0_10 = arith.constant 0 : index
    %9 = vector.load %arg8[%c0_9, %c0_10] : memref<6x128xf32, #tpu.memory_space<vmem>>, vector<1x128xf32>
    %10 = vector.broadcast %9 : vector<1x128xf32> to vector<2x128xf32>
    %11 = arith.addf %8, %10 : vector<2x128xf32>
    %c1 = arith.constant 1 : index
    %c0_11 = arith.constant 0 : index
    %12 = vector.load %arg8[%c1, %c0_11] : memref<6x128xf32, #tpu.memory_space<vmem>>, vector<1x128xf32>
    %c2 = arith.constant 2 : index
    %c0_12 = arith.constant 0 : index
    %13 = vector.load %arg8[%c2, %c0_12] : memref<6x128xf32, #tpu.memory_space<vmem>>, vector<1x128xf32>
    %cst_13 = arith.constant dense<0.000000e+00> : vector<2xf32>
    %14 = vector.multi_reduction <add>, %11, %cst_13 [1] : vector<2x128xf32> to vector<2xf32>
    %15 = vector.shape_cast %14 : vector<2xf32> to vector<2x1xf32>
    %cst_14 = arith.constant 0.010416667 : f32
    %16 = vector.broadcast %cst_14 : f32 to vector<2x1xf32>
    %17 = arith.mulf %15, %16 : vector<2x1xf32>
    %18 = arith.mulf %11, %11 : vector<2x128xf32>
    %cst_15 = arith.constant dense<0.000000e+00> : vector<2xf32>
    %19 = vector.multi_reduction <add>, %18, %cst_15 [1] : vector<2x128xf32> to vector<2xf32>
    %20 = vector.shape_cast %19 : vector<2xf32> to vector<2x1xf32>
    %cst_16 = arith.constant 0.010416667 : f32
    %21 = vector.broadcast %cst_16 : f32 to vector<2x1xf32>
    %22 = arith.mulf %20, %21 : vector<2x1xf32>
    %23 = arith.mulf %17, %17 : vector<2x1xf32>
    %24 = arith.subf %22, %23 : vector<2x1xf32>
    %cst_17 = arith.constant 0.000000e+00 : f32
    %25 = vector.broadcast %cst_17 : f32 to vector<2x1xf32>
    %26 = arith.maximumf %24, %25 : vector<2x1xf32>
    %27 = vector.broadcast %17 : vector<2x1xf32> to vector<2x128xf32>
    %28 = arith.subf %11, %27 : vector<2x128xf32>
    %cst_18 = arith.constant 9.99999974E-6 : f32
    %29 = vector.broadcast %cst_18 : f32 to vector<2x1xf32>
    %30 = arith.addf %26, %29 : vector<2x1xf32>
    %31 = math.rsqrt %30 : vector<2x1xf32>
    %32 = vector.broadcast %31 : vector<2x1xf32> to vector<2x128xf32>
    %33 = arith.mulf %28, %32 : vector<2x128xf32>
    %34 = vector.broadcast %12 : vector<1x128xf32> to vector<2x128xf32>
    %35 = arith.mulf %33, %34 : vector<2x128xf32>
    %36 = vector.broadcast %13 : vector<1x128xf32> to vector<2x128xf32>
    %37 = arith.addf %35, %36 : vector<2x128xf32>
    %cst_19 = arith.constant 0.000000e+00 : f32
    %38 = vector.broadcast %cst_19 : f32 to vector<2x128xf32>
    %39 = arith.maximumf %37, %38 : vector<2x128xf32>
    %c0_20 = arith.constant 0 : index
    %c0_21 = arith.constant 0 : index
    %40 = vector.load %arg7[%c0_20, %c0_21] : memref<128x128xbf16, #tpu.memory_space<vmem>>, vector<128x128xbf16>
    %41 = arith.truncf %39 : vector<2x128xf32> to vector<2x128xbf16>
    %cst_22 = arith.constant dense<0.000000e+00> : vector<2x128xf32>
    %42 = tpu.matmul %41, %40, %cst_22 {dimension_numbers = #tpu.dot_dimension_numbers<[1], [0], [0], [1], [0, 0, 1, 1], [], []>} : vector<2x128xbf16>, vector<128x128xbf16>, vector<2x128xf32> -> vector<2x128xf32>
    %c3 = arith.constant 3 : index
    %c0_23 = arith.constant 0 : index
    %43 = vector.load %arg8[%c3, %c0_23] : memref<6x128xf32, #tpu.memory_space<vmem>>, vector<1x128xf32>
    %44 = vector.broadcast %43 : vector<1x128xf32> to vector<2x128xf32>
    %45 = arith.addf %42, %44 : vector<2x128xf32>
    %c4 = arith.constant 4 : index
    %c0_24 = arith.constant 0 : index
    %46 = vector.load %arg8[%c4, %c0_24] : memref<6x128xf32, #tpu.memory_space<vmem>>, vector<1x128xf32>
    %c5 = arith.constant 5 : index
    %c0_25 = arith.constant 0 : index
    %47 = vector.load %arg8[%c5, %c0_25] : memref<6x128xf32, #tpu.memory_space<vmem>>, vector<1x128xf32>
    %cst_26 = arith.constant dense<0.000000e+00> : vector<2xf32>
    %48 = vector.multi_reduction <add>, %45, %cst_26 [1] : vector<2x128xf32> to vector<2xf32>
    %49 = vector.shape_cast %48 : vector<2xf32> to vector<2x1xf32>
    %cst_27 = arith.constant 0.020833334 : f32
    %50 = vector.broadcast %cst_27 : f32 to vector<2x1xf32>
    %51 = arith.mulf %49, %50 : vector<2x1xf32>
    %52 = arith.mulf %45, %45 : vector<2x128xf32>
    %cst_28 = arith.constant dense<0.000000e+00> : vector<2xf32>
    %53 = vector.multi_reduction <add>, %52, %cst_28 [1] : vector<2x128xf32> to vector<2xf32>
    %54 = vector.shape_cast %53 : vector<2xf32> to vector<2x1xf32>
    %cst_29 = arith.constant 0.020833334 : f32
    %55 = vector.broadcast %cst_29 : f32 to vector<2x1xf32>
    %56 = arith.mulf %54, %55 : vector<2x1xf32>
    %57 = arith.mulf %51, %51 : vector<2x1xf32>
    %58 = arith.subf %56, %57 : vector<2x1xf32>
    %cst_30 = arith.constant 0.000000e+00 : f32
    %59 = vector.broadcast %cst_30 : f32 to vector<2x1xf32>
    %60 = arith.maximumf %58, %59 : vector<2x1xf32>
    %61 = vector.broadcast %51 : vector<2x1xf32> to vector<2x128xf32>
    %62 = arith.subf %45, %61 : vector<2x128xf32>
    %cst_31 = arith.constant 9.99999974E-6 : f32
    %63 = vector.broadcast %cst_31 : f32 to vector<2x1xf32>
    %64 = arith.addf %60, %63 : vector<2x1xf32>
    %65 = math.rsqrt %64 : vector<2x1xf32>
    %66 = vector.broadcast %65 : vector<2x1xf32> to vector<2x128xf32>
    %67 = arith.mulf %62, %66 : vector<2x128xf32>
    %68 = vector.broadcast %46 : vector<1x128xf32> to vector<2x128xf32>
    %69 = arith.mulf %67, %68 : vector<2x128xf32>
    %70 = vector.broadcast %47 : vector<1x128xf32> to vector<2x128xf32>
    %71 = arith.addf %69, %70 : vector<2x128xf32>
    %cst_32 = arith.constant 0.000000e+00 : f32
    %72 = vector.broadcast %cst_32 : f32 to vector<2x128xf32>
    %73 = arith.maximumf %71, %72 : vector<2x128xf32>
    %74 = vector.extract_strided_slice %0 {offsets = [2, 0, 0], sizes = [1, 2, 128], strides = [1, 1, 1]} : vector<5x2x128xf32> to vector<1x2x128xf32>
    %75 = vector.shape_cast %74 : vector<1x2x128xf32> to vector<2x128xf32>
    %76 = vector.extract_strided_slice %0 {offsets = [3, 0, 0], sizes = [1, 2, 128], strides = [1, 1, 1]} : vector<5x2x128xf32> to vector<1x2x128xf32>
    %77 = vector.shape_cast %76 : vector<1x2x128xf32> to vector<2x128xf32>
    %78 = vector.extract_strided_slice %0 {offsets = [4, 0, 0], sizes = [1, 2, 128], strides = [1, 1, 1]} : vector<5x2x128xf32> to vector<1x2x128xf32>
    %79 = vector.shape_cast %78 : vector<1x2x128xf32> to vector<2x128xf32>
    %80 = arith.addf %73, %79 : vector<2x128xf32>
    %c0_33 = arith.constant 0 : index
    %c0_34 = arith.constant 0 : index
    %81 = vector.load %arg5[%c0_33, %c0_34] : memref<2x128xf32, #tpu.memory_space<vmem>>, vector<2x128xf32>
    %82 = arith.addf %73, %81 : vector<2x128xf32>
    %83 = arith.addf %82, %77 : vector<2x128xf32>
    %c0_35 = arith.constant 0 : index
    %c0_36 = arith.constant 0 : index
    %84 = vector.load %arg4[%c0_35, %c0_36] : memref<2x128xf32, #tpu.memory_space<vmem>>, vector<2x128xf32>
    %85 = arith.addf %73, %84 : vector<2x128xf32>
    %86 = arith.addf %85, %75 : vector<2x128xf32>
    %c0_37 = arith.constant 0 : index
    %c0_38 = arith.constant 0 : index
    %c0_39 = arith.constant 0 : index
    %87 = vector.load %arg10[%c0_37, %c0_38, %c0_39] : memref<4x3x256xf32, #tpu.memory_space<vmem>>, vector<1x1x256xf32>
    %88 = vector.shape_cast %87 : vector<1x1x256xf32> to vector<1x256xf32>
    %c0_40 = arith.constant 0 : index
    %c1_41 = arith.constant 1 : index
    %c0_42 = arith.constant 0 : index
    %89 = vector.load %arg10[%c0_40, %c1_41, %c0_42] : memref<4x3x256xf32, #tpu.memory_space<vmem>>, vector<1x1x256xf32>
    %90 = vector.shape_cast %89 : vector<1x1x256xf32> to vector<1x256xf32>
    %c0_43 = arith.constant 0 : index
    %c2_44 = arith.constant 2 : index
    %c0_45 = arith.constant 0 : index
    %91 = vector.load %arg10[%c0_43, %c2_44, %c0_45] : memref<4x3x256xf32, #tpu.memory_space<vmem>>, vector<1x1x256xf32>
    %92 = vector.shape_cast %91 : vector<1x1x256xf32> to vector<1x256xf32>
    %c0_46 = arith.constant 0 : index
    %c0_47 = arith.constant 0 : index
    %c0_48 = arith.constant 0 : index
    %93 = vector.load %arg9[%c0_46, %c0_47, %c0_48] : memref<4x128x256xbf16, #tpu.memory_space<vmem>>, vector<1x128x256xbf16>
    %94 = vector.shape_cast %93 : vector<1x128x256xbf16> to vector<128x256xbf16>
    %95 = arith.truncf %73 : vector<2x128xf32> to vector<2x128xbf16>
    %cst_49 = arith.constant dense<0.000000e+00> : vector<2x256xf32>
    %96 = tpu.matmul %95, %94, %cst_49 {dimension_numbers = #tpu.dot_dimension_numbers<[1], [0], [0], [1], [0, 0, 1, 1], [], []>} : vector<2x128xbf16>, vector<128x256xbf16>, vector<2x256xf32> -> vector<2x256xf32>
    %97 = vector.broadcast %88 : vector<1x256xf32> to vector<2x256xf32>
    %98 = arith.addf %96, %97 : vector<2x256xf32>
    %cst_50 = arith.constant dense<0.000000e+00> : vector<2xf32>
    %99 = vector.multi_reduction <add>, %98, %cst_50 [1] : vector<2x256xf32> to vector<2xf32>
    %100 = vector.shape_cast %99 : vector<2xf32> to vector<2x1xf32>
    %cst_51 = arith.constant 0.00520833349 : f32
    %101 = vector.broadcast %cst_51 : f32 to vector<2x1xf32>
    %102 = arith.mulf %100, %101 : vector<2x1xf32>
    %103 = arith.mulf %98, %98 : vector<2x256xf32>
    %cst_52 = arith.constant dense<0.000000e+00> : vector<2xf32>
    %104 = vector.multi_reduction <add>, %103, %cst_52 [1] : vector<2x256xf32> to vector<2xf32>
    %105 = vector.shape_cast %104 : vector<2xf32> to vector<2x1xf32>
    %cst_53 = arith.constant 0.00520833349 : f32
    %106 = vector.broadcast %cst_53 : f32 to vector<2x1xf32>
    %107 = arith.mulf %105, %106 : vector<2x1xf32>
    %108 = arith.mulf %102, %102 : vector<2x1xf32>
    %109 = arith.subf %107, %108 : vector<2x1xf32>
    %cst_54 = arith.constant 0.000000e+00 : f32
    %110 = vector.broadcast %cst_54 : f32 to vector<2x1xf32>
    %111 = arith.maximumf %109, %110 : vector<2x1xf32>
    %112 = vector.broadcast %102 : vector<2x1xf32> to vector<2x256xf32>
    %113 = arith.subf %98, %112 : vector<2x256xf32>
    %cst_55 = arith.constant 9.99999974E-6 : f32
    %114 = vector.broadcast %cst_55 : f32 to vector<2x1xf32>
    %115 = arith.addf %111, %114 : vector<2x1xf32>
    %116 = math.rsqrt %115 : vector<2x1xf32>
    %117 = vector.broadcast %116 : vector<2x1xf32> to vector<2x256xf32>
    %118 = arith.mulf %113, %117 : vector<2x256xf32>
    %119 = vector.broadcast %90 : vector<1x256xf32> to vector<2x256xf32>
    %120 = arith.mulf %118, %119 : vector<2x256xf32>
    %121 = vector.broadcast %92 : vector<1x256xf32> to vector<2x256xf32>
    %122 = arith.addf %120, %121 : vector<2x256xf32>
    %cst_56 = arith.constant 0.000000e+00 : f32
    %123 = vector.broadcast %cst_56 : f32 to vector<2x256xf32>
    %124 = arith.maximumf %122, %123 : vector<2x256xf32>
    %c0_57 = arith.constant 0 : index
    %c0_58 = arith.constant 0 : index
    %c0_59 = arith.constant 0 : index
    %125 = vector.load %arg11[%c0_57, %c0_58, %c0_59] : memref<4x256x128xbf16, #tpu.memory_space<vmem>>, vector<1x256x128xbf16>
    %126 = vector.shape_cast %125 : vector<1x256x128xbf16> to vector<256x128xbf16>
    %127 = arith.truncf %124 : vector<2x256xf32> to vector<2x256xbf16>
    %cst_60 = arith.constant dense<0.000000e+00> : vector<2x128xf32>
    %128 = tpu.matmul %127, %126, %cst_60 {dimension_numbers = #tpu.dot_dimension_numbers<[1], [0], [0], [1], [0, 0, 1, 1], [], []>} : vector<2x256xbf16>, vector<256x128xbf16>, vector<2x128xf32> -> vector<2x128xf32>
    %c1_61 = arith.constant 1 : index
    %c0_62 = arith.constant 0 : index
    %c0_63 = arith.constant 0 : index
    %129 = vector.load %arg10[%c1_61, %c0_62, %c0_63] : memref<4x3x256xf32, #tpu.memory_space<vmem>>, vector<1x1x256xf32>
    %130 = vector.shape_cast %129 : vector<1x1x256xf32> to vector<1x256xf32>
    %c1_64 = arith.constant 1 : index
    %c1_65 = arith.constant 1 : index
    %c0_66 = arith.constant 0 : index
    %131 = vector.load %arg10[%c1_64, %c1_65, %c0_66] : memref<4x3x256xf32, #tpu.memory_space<vmem>>, vector<1x1x256xf32>
    %132 = vector.shape_cast %131 : vector<1x1x256xf32> to vector<1x256xf32>
    %c1_67 = arith.constant 1 : index
    %c2_68 = arith.constant 2 : index
    %c0_69 = arith.constant 0 : index
    %133 = vector.load %arg10[%c1_67, %c2_68, %c0_69] : memref<4x3x256xf32, #tpu.memory_space<vmem>>, vector<1x1x256xf32>
    %134 = vector.shape_cast %133 : vector<1x1x256xf32> to vector<1x256xf32>
    %c1_70 = arith.constant 1 : index
    %c0_71 = arith.constant 0 : index
    %c0_72 = arith.constant 0 : index
    %135 = vector.load %arg9[%c1_70, %c0_71, %c0_72] : memref<4x128x256xbf16, #tpu.memory_space<vmem>>, vector<1x128x256xbf16>
    %136 = vector.shape_cast %135 : vector<1x128x256xbf16> to vector<128x256xbf16>
    %137 = arith.truncf %80 : vector<2x128xf32> to vector<2x128xbf16>
    %cst_73 = arith.constant dense<0.000000e+00> : vector<2x256xf32>
    %138 = tpu.matmul %137, %136, %cst_73 {dimension_numbers = #tpu.dot_dimension_numbers<[1], [0], [0], [1], [0, 0, 1, 1], [], []>} : vector<2x128xbf16>, vector<128x256xbf16>, vector<2x256xf32> -> vector<2x256xf32>
    %139 = vector.broadcast %130 : vector<1x256xf32> to vector<2x256xf32>
    %140 = arith.addf %138, %139 : vector<2x256xf32>
    %cst_74 = arith.constant dense<0.000000e+00> : vector<2xf32>
    %141 = vector.multi_reduction <add>, %140, %cst_74 [1] : vector<2x256xf32> to vector<2xf32>
    %142 = vector.shape_cast %141 : vector<2xf32> to vector<2x1xf32>
    %cst_75 = arith.constant 0.0416666679 : f32
    %143 = vector.broadcast %cst_75 : f32 to vector<2x1xf32>
    %144 = arith.mulf %142, %143 : vector<2x1xf32>
    %145 = arith.mulf %140, %140 : vector<2x256xf32>
    %cst_76 = arith.constant dense<0.000000e+00> : vector<2xf32>
    %146 = vector.multi_reduction <add>, %145, %cst_76 [1] : vector<2x256xf32> to vector<2xf32>
    %147 = vector.shape_cast %146 : vector<2xf32> to vector<2x1xf32>
    %cst_77 = arith.constant 0.0416666679 : f32
    %148 = vector.broadcast %cst_77 : f32 to vector<2x1xf32>
    %149 = arith.mulf %147, %148 : vector<2x1xf32>
    %150 = arith.mulf %144, %144 : vector<2x1xf32>
    %151 = arith.subf %149, %150 : vector<2x1xf32>
    %cst_78 = arith.constant 0.000000e+00 : f32
    %152 = vector.broadcast %cst_78 : f32 to vector<2x1xf32>
    %153 = arith.maximumf %151, %152 : vector<2x1xf32>
    %154 = vector.broadcast %144 : vector<2x1xf32> to vector<2x256xf32>
    %155 = arith.subf %140, %154 : vector<2x256xf32>
    %cst_79 = arith.constant 9.99999974E-6 : f32
    %156 = vector.broadcast %cst_79 : f32 to vector<2x1xf32>
    %157 = arith.addf %153, %156 : vector<2x1xf32>
    %158 = math.rsqrt %157 : vector<2x1xf32>
    %159 = vector.broadcast %158 : vector<2x1xf32> to vector<2x256xf32>
    %160 = arith.mulf %155, %159 : vector<2x256xf32>
    %161 = vector.broadcast %132 : vector<1x256xf32> to vector<2x256xf32>
    %162 = arith.mulf %160, %161 : vector<2x256xf32>
    %163 = vector.broadcast %134 : vector<1x256xf32> to vector<2x256xf32>
    %164 = arith.addf %162, %163 : vector<2x256xf32>
    %cst_80 = arith.constant 0.000000e+00 : f32
    %165 = vector.broadcast %cst_80 : f32 to vector<2x256xf32>
    %166 = arith.maximumf %164, %165 : vector<2x256xf32>
    %c1_81 = arith.constant 1 : index
    %c0_82 = arith.constant 0 : index
    %c0_83 = arith.constant 0 : index
    %167 = vector.load %arg11[%c1_81, %c0_82, %c0_83] : memref<4x256x128xbf16, #tpu.memory_space<vmem>>, vector<1x256x128xbf16>
    %168 = vector.shape_cast %167 : vector<1x256x128xbf16> to vector<256x128xbf16>
    %169 = arith.truncf %166 : vector<2x256xf32> to vector<2x256xbf16>
    %cst_84 = arith.constant dense<0.000000e+00> : vector<2x128xf32>
    %170 = tpu.matmul %169, %168, %cst_84 {dimension_numbers = #tpu.dot_dimension_numbers<[1], [0], [0], [1], [0, 0, 1, 1], [], []>} : vector<2x256xbf16>, vector<256x128xbf16>, vector<2x128xf32> -> vector<2x128xf32>
    %171 = arith.addf %128, %170 : vector<2x128xf32>
    %c2_85 = arith.constant 2 : index
    %c0_86 = arith.constant 0 : index
    %c0_87 = arith.constant 0 : index
    %172 = vector.load %arg10[%c2_85, %c0_86, %c0_87] : memref<4x3x256xf32, #tpu.memory_space<vmem>>, vector<1x1x256xf32>
    %173 = vector.shape_cast %172 : vector<1x1x256xf32> to vector<1x256xf32>
    %c2_88 = arith.constant 2 : index
    %c1_89 = arith.constant 1 : index
    %c0_90 = arith.constant 0 : index
    %174 = vector.load %arg10[%c2_88, %c1_89, %c0_90] : memref<4x3x256xf32, #tpu.memory_space<vmem>>, vector<1x1x256xf32>
    %175 = vector.shape_cast %174 : vector<1x1x256xf32> to vector<1x256xf32>
    %c2_91 = arith.constant 2 : index
    %c2_92 = arith.constant 2 : index
    %c0_93 = arith.constant 0 : index
    %176 = vector.load %arg10[%c2_91, %c2_92, %c0_93] : memref<4x3x256xf32, #tpu.memory_space<vmem>>, vector<1x1x256xf32>
    %177 = vector.shape_cast %176 : vector<1x1x256xf32> to vector<1x256xf32>
    %c2_94 = arith.constant 2 : index
    %c0_95 = arith.constant 0 : index
    %c0_96 = arith.constant 0 : index
    %178 = vector.load %arg9[%c2_94, %c0_95, %c0_96] : memref<4x128x256xbf16, #tpu.memory_space<vmem>>, vector<1x128x256xbf16>
    %179 = vector.shape_cast %178 : vector<1x128x256xbf16> to vector<128x256xbf16>
    %180 = arith.truncf %83 : vector<2x128xf32> to vector<2x128xbf16>
    %cst_97 = arith.constant dense<0.000000e+00> : vector<2x256xf32>
    %181 = tpu.matmul %180, %179, %cst_97 {dimension_numbers = #tpu.dot_dimension_numbers<[1], [0], [0], [1], [0, 0, 1, 1], [], []>} : vector<2x128xbf16>, vector<128x256xbf16>, vector<2x256xf32> -> vector<2x256xf32>
    %182 = vector.broadcast %173 : vector<1x256xf32> to vector<2x256xf32>
    %183 = arith.addf %181, %182 : vector<2x256xf32>
    %cst_98 = arith.constant dense<0.000000e+00> : vector<2xf32>
    %184 = vector.multi_reduction <add>, %183, %cst_98 [1] : vector<2x256xf32> to vector<2xf32>
    %185 = vector.shape_cast %184 : vector<2xf32> to vector<2x1xf32>
    %cst_99 = arith.constant 0.0416666679 : f32
    %186 = vector.broadcast %cst_99 : f32 to vector<2x1xf32>
    %187 = arith.mulf %185, %186 : vector<2x1xf32>
    %188 = arith.mulf %183, %183 : vector<2x256xf32>
    %cst_100 = arith.constant dense<0.000000e+00> : vector<2xf32>
    %189 = vector.multi_reduction <add>, %188, %cst_100 [1] : vector<2x256xf32> to vector<2xf32>
    %190 = vector.shape_cast %189 : vector<2xf32> to vector<2x1xf32>
    %cst_101 = arith.constant 0.0416666679 : f32
    %191 = vector.broadcast %cst_101 : f32 to vector<2x1xf32>
    %192 = arith.mulf %190, %191 : vector<2x1xf32>
    %193 = arith.mulf %187, %187 : vector<2x1xf32>
    %194 = arith.subf %192, %193 : vector<2x1xf32>
    %cst_102 = arith.constant 0.000000e+00 : f32
    %195 = vector.broadcast %cst_102 : f32 to vector<2x1xf32>
    %196 = arith.maximumf %194, %195 : vector<2x1xf32>
    %197 = vector.broadcast %187 : vector<2x1xf32> to vector<2x256xf32>
    %198 = arith.subf %183, %197 : vector<2x256xf32>
    %cst_103 = arith.constant 9.99999974E-6 : f32
    %199 = vector.broadcast %cst_103 : f32 to vector<2x1xf32>
    %200 = arith.addf %196, %199 : vector<2x1xf32>
    %201 = math.rsqrt %200 : vector<2x1xf32>
    %202 = vector.broadcast %201 : vector<2x1xf32> to vector<2x256xf32>
    %203 = arith.mulf %198, %202 : vector<2x256xf32>
    %204 = vector.broadcast %175 : vector<1x256xf32> to vector<2x256xf32>
    %205 = arith.mulf %203, %204 : vector<2x256xf32>
    %206 = vector.broadcast %177 : vector<1x256xf32> to vector<2x256xf32>
    %207 = arith.addf %205, %206 : vector<2x256xf32>
    %cst_104 = arith.constant 0.000000e+00 : f32
    %208 = vector.broadcast %cst_104 : f32 to vector<2x256xf32>
    %209 = arith.maximumf %207, %208 : vector<2x256xf32>
    %c2_105 = arith.constant 2 : index
    %c0_106 = arith.constant 0 : index
    %c0_107 = arith.constant 0 : index
    %210 = vector.load %arg11[%c2_105, %c0_106, %c0_107] : memref<4x256x128xbf16, #tpu.memory_space<vmem>>, vector<1x256x128xbf16>
    %211 = vector.shape_cast %210 : vector<1x256x128xbf16> to vector<256x128xbf16>
    %212 = arith.truncf %209 : vector<2x256xf32> to vector<2x256xbf16>
    %cst_108 = arith.constant dense<0.000000e+00> : vector<2x128xf32>
    %213 = tpu.matmul %212, %211, %cst_108 {dimension_numbers = #tpu.dot_dimension_numbers<[1], [0], [0], [1], [0, 0, 1, 1], [], []>} : vector<2x256xbf16>, vector<256x128xbf16>, vector<2x128xf32> -> vector<2x128xf32>
    %214 = arith.addf %171, %213 : vector<2x128xf32>
    %c3_109 = arith.constant 3 : index
    %c0_110 = arith.constant 0 : index
    %c0_111 = arith.constant 0 : index
    %215 = vector.load %arg10[%c3_109, %c0_110, %c0_111] : memref<4x3x256xf32, #tpu.memory_space<vmem>>, vector<1x1x256xf32>
    %216 = vector.shape_cast %215 : vector<1x1x256xf32> to vector<1x256xf32>
    %c3_112 = arith.constant 3 : index
    %c1_113 = arith.constant 1 : index
    %c0_114 = arith.constant 0 : index
    %217 = vector.load %arg10[%c3_112, %c1_113, %c0_114] : memref<4x3x256xf32, #tpu.memory_space<vmem>>, vector<1x1x256xf32>
    %218 = vector.shape_cast %217 : vector<1x1x256xf32> to vector<1x256xf32>
    %c3_115 = arith.constant 3 : index
    %c2_116 = arith.constant 2 : index
    %c0_117 = arith.constant 0 : index
    %219 = vector.load %arg10[%c3_115, %c2_116, %c0_117] : memref<4x3x256xf32, #tpu.memory_space<vmem>>, vector<1x1x256xf32>
    %220 = vector.shape_cast %219 : vector<1x1x256xf32> to vector<1x256xf32>
    %c3_118 = arith.constant 3 : index
    %c0_119 = arith.constant 0 : index
    %c0_120 = arith.constant 0 : index
    %221 = vector.load %arg9[%c3_118, %c0_119, %c0_120] : memref<4x128x256xbf16, #tpu.memory_space<vmem>>, vector<1x128x256xbf16>
    %222 = vector.shape_cast %221 : vector<1x128x256xbf16> to vector<128x256xbf16>
    %223 = arith.truncf %86 : vector<2x128xf32> to vector<2x128xbf16>
    %cst_121 = arith.constant dense<0.000000e+00> : vector<2x256xf32>
    %224 = tpu.matmul %223, %222, %cst_121 {dimension_numbers = #tpu.dot_dimension_numbers<[1], [0], [0], [1], [0, 0, 1, 1], [], []>} : vector<2x128xbf16>, vector<128x256xbf16>, vector<2x256xf32> -> vector<2x256xf32>
    %225 = vector.broadcast %216 : vector<1x256xf32> to vector<2x256xf32>
    %226 = arith.addf %224, %225 : vector<2x256xf32>
    %cst_122 = arith.constant dense<0.000000e+00> : vector<2xf32>
    %227 = vector.multi_reduction <add>, %226, %cst_122 [1] : vector<2x256xf32> to vector<2xf32>
    %228 = vector.shape_cast %227 : vector<2xf32> to vector<2x1xf32>
    %cst_123 = arith.constant 0.0416666679 : f32
    %229 = vector.broadcast %cst_123 : f32 to vector<2x1xf32>
    %230 = arith.mulf %228, %229 : vector<2x1xf32>
    %231 = arith.mulf %226, %226 : vector<2x256xf32>
    %cst_124 = arith.constant dense<0.000000e+00> : vector<2xf32>
    %232 = vector.multi_reduction <add>, %231, %cst_124 [1] : vector<2x256xf32> to vector<2xf32>
    %233 = vector.shape_cast %232 : vector<2xf32> to vector<2x1xf32>
    %cst_125 = arith.constant 0.0416666679 : f32
    %234 = vector.broadcast %cst_125 : f32 to vector<2x1xf32>
    %235 = arith.mulf %233, %234 : vector<2x1xf32>
    %236 = arith.mulf %230, %230 : vector<2x1xf32>
    %237 = arith.subf %235, %236 : vector<2x1xf32>
    %cst_126 = arith.constant 0.000000e+00 : f32
    %238 = vector.broadcast %cst_126 : f32 to vector<2x1xf32>
    %239 = arith.maximumf %237, %238 : vector<2x1xf32>
    %240 = vector.broadcast %230 : vector<2x1xf32> to vector<2x256xf32>
    %241 = arith.subf %226, %240 : vector<2x256xf32>
    %cst_127 = arith.constant 9.99999974E-6 : f32
    %242 = vector.broadcast %cst_127 : f32 to vector<2x1xf32>
    %243 = arith.addf %239, %242 : vector<2x1xf32>
    %244 = math.rsqrt %243 : vector<2x1xf32>
    %245 = vector.broadcast %244 : vector<2x1xf32> to vector<2x256xf32>
    %246 = arith.mulf %241, %245 : vector<2x256xf32>
    %247 = vector.broadcast %218 : vector<1x256xf32> to vector<2x256xf32>
    %248 = arith.mulf %246, %247 : vector<2x256xf32>
    %249 = vector.broadcast %220 : vector<1x256xf32> to vector<2x256xf32>
    %250 = arith.addf %248, %249 : vector<2x256xf32>
    %cst_128 = arith.constant 0.000000e+00 : f32
    %251 = vector.broadcast %cst_128 : f32 to vector<2x256xf32>
    %252 = arith.maximumf %250, %251 : vector<2x256xf32>
    %c3_129 = arith.constant 3 : index
    %c0_130 = arith.constant 0 : index
    %c0_131 = arith.constant 0 : index
    %253 = vector.load %arg11[%c3_129, %c0_130, %c0_131] : memref<4x256x128xbf16, #tpu.memory_space<vmem>>, vector<1x256x128xbf16>
    %254 = vector.shape_cast %253 : vector<1x256x128xbf16> to vector<256x128xbf16>
    %255 = arith.truncf %252 : vector<2x256xf32> to vector<2x256xbf16>
    %cst_132 = arith.constant dense<0.000000e+00> : vector<2x128xf32>
    %256 = tpu.matmul %255, %254, %cst_132 {dimension_numbers = #tpu.dot_dimension_numbers<[1], [0], [0], [1], [0, 0, 1, 1], [], []>} : vector<2x256xbf16>, vector<256x128xbf16>, vector<2x128xf32> -> vector<2x128xf32>
    %257 = arith.addf %214, %256 : vector<2x128xf32>
    %c0_133 = arith.constant 0 : index
    %c0_134 = arith.constant 0 : index
    %258 = vector.load %arg12[%c0_133, %c0_134] : memref<1x128xf32, #tpu.memory_space<vmem>>, vector<1x128xf32>
    %259 = vector.broadcast %258 : vector<1x128xf32> to vector<2x128xf32>
    %260 = arith.addf %257, %259 : vector<2x128xf32>
    %c0_135 = arith.constant 0 : index
    %c0_136 = arith.constant 0 : index
    %261 = vector.load %arg13[%c0_135, %c0_136] : memref<2x128xf32, #tpu.memory_space<vmem>>, vector<2x128xf32>
    tpu.vector_store %arg13[%c0_135, %c0_136], %260 {strides = array<i32>} : memref<2x128xf32, #tpu.memory_space<vmem>>, vector<2x128xf32>,
    return
  }
  func.func @transform_0(%arg0: i32) -> (i32, i32) {
    %c0_i32 = arith.constant 0 : i32
    %c0_i32_0 = arith.constant 0 : i32
    %c0_i32_1 = arith.constant 0 : i32
    return %c0_i32, %c0_i32_0 : i32, i32
  }
  func.func @transform_1(%arg0: i32) -> (i32, i32) {
    %c0_i32 = arith.constant 0 : i32
    %c0_i32_0 = arith.constant 0 : i32
    %c0_i32_1 = arith.constant 0 : i32
    return %c0_i32, %c0_i32_0 : i32, i32
  }
  func.func @transform_2(%arg0: i32) -> (i32, i32, i32) {
    %c0_i32 = arith.constant 0 : i32
    %c0_i32_0 = arith.constant 0 : i32
    %c0_i32_1 = arith.constant 0 : i32
    %c0_i32_2 = arith.constant 0 : i32
    return %c0_i32, %c0_i32_0, %c0_i32_1 : i32, i32, i32
  }
  func.func @transform_3(%arg0: i32) -> (i32, i32) {
    %c0_i32 = arith.constant 0 : i32
    %c0_i32_0 = arith.constant 0 : i32
    %c0_i32_1 = arith.constant 0 : i32
    return %c0_i32, %c0_i32_0 : i32, i32
  }
  func.func @transform_4(%arg0: i32) -> (i32, i32) {
    %c0_i32 = arith.constant 0 : i32
    %c0_i32_0 = arith.constant 0 : i32
    %c0_i32_1 = arith.constant 0 : i32
    return %c0_i32, %c0_i32_0 : i32, i32
  }
  func.func @transform_5(%arg0: i32) -> (i32, i32) {
    %c0_i32 = arith.constant 0 : i32
    %c0_i32_0 = arith.constant 0 : i32
    %c0_i32_1 = arith.constant 0 : i32
    return %c0_i32, %c0_i32_0 : i32, i32
  }
  func.func @transform_6(%arg0: i32) -> (i32, i32) {
    %c0_i32 = arith.constant 0 : i32
    %c0_i32_0 = arith.constant 0 : i32
    %c0_i32_1 = arith.constant 0 : i32
    return %c0_i32, %c0_i32_0 : i32, i32
  }
  func.func @transform_7(%arg0: i32) -> (i32, i32) {
    %c0_i32 = arith.constant 0 : i32
    %c0_i32_0 = arith.constant 0 : i32
    %c0_i32_1 = arith.constant 0 : i32
    return %c0_i32, %c0_i32_0 : i32, i32
  }
  func.func @transform_8(%arg0: i32) -> (i32, i32, i32) {
    %c0_i32 = arith.constant 0 : i32
    %c0_i32_0 = arith.constant 0 : i32
    %c0_i32_1 = arith.constant 0 : i32
    %c0_i32_2 = arith.constant 0 : i32
    return %c0_i32, %c0_i32_0, %c0_i32_1 : i32, i32, i32
  }
  func.func @transform_9(%arg0: i32) -> (i32, i32, i32) {
    %c0_i32 = arith.constant 0 : i32
    %c0_i32_0 = arith.constant 0 : i32
    %c0_i32_1 = arith.constant 0 : i32
    %c0_i32_2 = arith.constant 0 : i32
    return %c0_i32, %c0_i32_0, %c0_i32_1 : i32, i32, i32
  }
  func.func @transform_10(%arg0: i32) -> (i32, i32, i32) {
    %c0_i32 = arith.constant 0 : i32
    %c0_i32_0 = arith.constant 0 : i32
    %c0_i32_1 = arith.constant 0 : i32
    %c0_i32_2 = arith.constant 0 : i32
    return %c0_i32, %c0_i32_0, %c0_i32_1 : i32, i32, i32
  }
  func.func @transform_11(%arg0: i32) -> (i32, i32) {
    %c0_i32 = arith.constant 0 : i32
    %c0_i32_0 = arith.constant 0 : i32
    %c0_i32_1 = arith.constant 0 : i32
    return %c0_i32, %c0_i32_0 : i32, i32
  }
  func.func @transform_12(%arg0: i32) -> (i32, i32) {
    %c0_i32 = arith.constant 0 : i32
    %c0_i32_0 = arith.constant 0 : i32
    %c0_i32_1 = arith.constant 0 : i32
    return %c0_i32, %c0_i32_0 : i32, i32
  }
}

</mosaic_0001>

<bundles_post_ra>
// kernel: _lambda_.4
= control target key start
LH: loop header
LB: loop body
LE: loop exit
PB: predicated region body
PF: predicated region fallthrough
CT: control target
= control target key end

     0   :  { %s1559_s24 = smov 0   ;;  %s1739_s0 = inlined_call_operand.vmem [shape: f32[5,6,128], index: 0, kind: input, shape index: {}]   ;;  %s1740_s1 = inlined_call_operand.vmem [shape: f32[5,6,6], index: 1, kind: input, shape index: {}]   ;;  %s1741_s2 = inlined_call_operand.vmem [shape: f32[5,6,6], index: 2, kind: input, shape index: {}]   ;;  %s1742_s3 = inlined_call_operand.vmem [shape: f32[5,2,6], index: 3, kind: input, shape index: {}]   ;;  %s1743_s4 = inlined_call_operand.vmem [shape: bf16[5,3,128,128], index: 4, kind: input, shape index: {}]   ;;  %s1744_s5 = inlined_call_operand.vmem [shape: f32[5,4,128], index: 5, kind: input, shape index: {}]   ;;  %s1745_s6 = inlined_call_operand.vmem [shape: f32[5,10,128], index: 6, kind: input, shape index: {}]   ;;  %s1746_s7 = inlined_call_operand.vmem [shape: f32[5,2,128], index: 7, kind: output, shape index: {}]  }
   0x1 LB: > { %s1240_s25 = sadd.s32 4294967295, %s1514_s24   ;;  %p1244_p0 = scmp.ge.s32.totalorder %s1514_s24, 1  ;;  %s1514_s24 = sphi %s1559_s24, %s17_s24  }
   0x2   : > { %p292_p1 = scmp.lt.s32.totalorder %s1514_s24, 6 }
   0x4   : > { %p293_p2 = pnand %p1244_p0, %p292_p1 }
   0x5   : > { %p348_p3 = scmp.lt.s32.totalorder (!%p293_p2), %s1240_s25, 4  ;;  %v1516_v0 = vmov (!%p293_p2), 0.0   ;;  %vm1517_vm0 = vmmov (!%p293_p2), 0   ;;  %vm593_vm1 = vcmask (!%p293_p2), 1042432   ;;  %vm513_vm2 = vcmask (!%p293_p2), 1045504   ;;  %s1518_s28 = smov (!%p293_p2), 127  }
   0x6   : > { %296 = sbr.rel (%p293_p2) target bundleno = 2954 (0xb8a), region = 48  ;;  %1364 = vmatprep.subr.bf16.mxu0 (!%p293_p2), %v1516_v0  ;;  %1380 = vmatprep.mubr.msk.bf16.mxu0 (!%p293_p2), %vm1517_vm0, %v1516_v0  ;;  %v559_v23 = vlaneseq (!%p293_p2)  ;;  %vm570_vm5 = vcmask (!%p293_p2), 46080   ;;  %vm589_vm6 = vcmask (!%p293_p2), 48128   ;;  %vm1086_vm8 = vcmask (!%p293_p2), 1041408  }
   0x7   : > { %1390 = vmatprep.subr.bf16.mxu1 (!%p293_p2), %v1516_v0  ;;  %1392 = vmatprep.mubr.msk.bf16.mxu1 (!%p293_p2), %vm1517_vm0, %v1516_v0 }
   0x8   : > { %v1630_v24 = vshrl.u32 (!%p293_p2), %v559_v23, 7 }
   0xa   : > { %v561_v25 = vsub.s32 (!%p293_p2), 0, %v1630_v24 }
   0xd   : > { %s1748_s25 = smov (!%p348_p3, %s1240_s25), 4 }
   0xe   : > { %s1454_s26 = smul.u32 192, %s1748_s25  ;;  %s1593_s30 = sshll.u32 %s1748_s25, 3 }
   0xf   : > { %s351_s10 = scalar_lea.vmem %s1739_s0, %s1593_s30  ;;  %s1250_s11 = sshll.u32 %s1748_s25, 2 }
  0x10   : > { %s1579_s29 = scalar_lea.vmem %s1743_s4, %s1454_s26  ;;  %v383_v9 = vld [vmem:[%s351_s10] sm:$0x3f]  ;;  %s1610_s14 = scalar_lea.vmem %s1744_s5, %s1250_s11 }
  0x11   : > { %v1470_v1 = vld [vmem:[%s1579_s29] sm:$0xff]   ;;  %v1471_v2 = vld [vmem:[%s1579_s29 + $0x8] sm:$0xff]   ;;  %v1472_v3 = vld [vmem:[%s1579_s29 + $0x10] sm:$0xff]   ;;  %v419_v10 = vpack.c.bf16 %v383_v9, %v383_v9  ;;  %s1326_s15 = sshll.u32 %s1748_s25, 4  ;;  %s359_s21 = scalar_lea.vmem %s1741_s2, %s1593_s30 }
  0x12   : > { %1365 = vmatpush3.bf16.msra.mxu0 %v1470_v1  ;;  %v1473_v4 = vld [vmem:[%s1579_s29 + $0x18] sm:$0xff]   ;;  %v1474_v5 = vld [vmem:[%s1579_s29 + $0x20] sm:$0xff]   ;;  %v1475_v6 = vld [vmem:[%s1579_s29 + $0x28] sm:$0xff]   ;;  %s1624_s18 = scalar_lea.vmem %s1745_s6, %s1326_s15  ;;  %s355_s27 = scalar_lea.vmem %s1740_s1, %s1593_s30 }
  0x13   : > { %1366 = vmatprep.subr.bf16.mxu0 %v1516_v0  ;;  %v1476_v7 = vld [vmem:[%s1579_s29 + $0x30] sm:$0xff]   ;;  %v1477_v8 = vld [vmem:[%s1579_s29 + $0x38] sm:$0xff]   ;;  %v1262_v11 = vld [vmem:[%s1610_s14 + $0x1] ss:$0 sm:$0xff]  ;;  %s1248_s8 = sshll.u32 %s1748_s25, 1 }
  0x14   : > { %v412_v20 = vld [vmem:[%s1610_s14] sm:$0x1]  ;;  %v1627_v22 = vld [vmem:[%s1624_s18 + $0x9] sm:$0x1]  ;;  %v1480_v1 = vld [vmem:[%s1579_s29 + $0x50] sm:$0xff]   ;;  %s363_s11 = scalar_lea.vmem %s1742_s3, %s1248_s8  ;;  %s381_s13 = scalar_lea.vmem %s1746_s7, %s1248_s8 }
  0x15   : > { %v517_v21 = vpack.c.bf16 %v412_v20, %v412_v20  ;;  %1455 = vpush %v1627_v22  ;;  %v1637_v26 = vld [vmem:[%s359_s21] sm:$0x3f]  ;;  %v1479_v63 = vld [vmem:[%s1579_s29 + $0x48] sm:$0xff]  }
  0x16   : > { %1367 = vmatpush3.bf16.msra.mxu0 %v1471_v2  ;;  %v1646_v36 = vld [vmem:[%s355_s27] sm:$0x3f]  ;;  %v1481_v2 = vld [vmem:[%s1579_s29 + $0x58] sm:$0xff]  }
  0x17   : > { %1368 = vmatprep.subr.bf16.mxu0 %v1516_v0  ;;  %vm568_vm4 = vcmp.gt.f32.partialorder %v1646_v36, 0.0  ;;  %v1478_v53 = vld [vmem:[%s1579_s29 + $0x40] sm:$0xff]  }
  0x18   : > { %v1263_v54 = vld [vmem:[%s1624_s18] ss:$0 sm:$0xff] }
  0x1a   : > { %1369 = vmatpush3.bf16.msra.mxu0 %v1472_v3  ;;  %v1482_v3 = vld [vmem:[%s1579_s29 + $0x60] sm:$0xff]  }
  0x1b   : > { %1370 = vmatprep.subr.bf16.mxu0 %v1516_v0 }
  0x1e   : > { %1371 = vmatpush3.bf16.msra.mxu0 %v1473_v4  ;;  %v1483_v4 = vld [vmem:[%s1579_s29 + $0x68] sm:$0xff]  }
  0x1f   : > { %1372 = vmatprep.subr.bf16.mxu0 %v1516_v0 }
  0x22   : > { %1373 = vmatpush3.bf16.msra.mxu0 %v1474_v5  ;;  %v1484_v5 = vld [vmem:[%s1579_s29 + $0x70] sm:$0xff]  }
  0x23   : > { %1374 = vmatprep.subr.bf16.mxu0 %v1516_v0 }
  0x26   : > { %1375 = vmatpush3.bf16.msra.mxu0 %v1475_v6  ;;  %v1485_v6 = vld [vmem:[%s1579_s29 + $0x78] sm:$0xff]  }
  0x27   : > { %1376 = vmatprep.subr.bf16.mxu0 %v1516_v0 }
  0x2a   : > { %1377 = vmatpush3.bf16.msra.mxu0 %v1476_v7 }
  0x2b   : > { %1378 = vmatprep.subr.bf16.mxu0 %v1516_v0 }
  0x2e   : > { %1379 = vmatpush3.bf16.msra.mxu0 %v1477_v8 }
  0x2f   : > { %1384 = vmatprep.subr.bf16.mxu0 %v1516_v0 }
  0x31   : > { %1381 = vmatmul.mubr.bf16.vlgmr.msra.gmra.mrb[0].mxu0 %v419_v10 }
  0x32   : > { %1386 = vmatprep.mubr.msk.bf16.mxu0 %vm1517_vm0, %v1516_v0 }
  0x46   : > { %s1456_s22 = spop %1455 }
  0x47   : > { %v416_v27 = vstv %s1456_s22 }
  0x48   : > { %v418_v30 = vmul.f32 %v416_v27, %v1637_v26  ;;  %v1291_v27 = vld [vmem:[%s1610_s14 + $0x3] ss:$0 sm:$0xff] }
 0x104   : > { %v502_v12 = vpop.f32.mrb[0].mxu0 }
 0x105   : > { %v518_v13 = vpack.c.bf16 %v502_v12, %v502_v12  ;;  %v1382_v14 = vpop.f32.mrb[1].mxu0  ;;  %v512_v15 = vmul.f32 %v1262_v11, %v502_v12 }
 0x106   : > { %v505_v16 = vpop.f32.mrb[2].mxu0 }
 0x107   : > { %v1383_v17 = vpop.f32.mrb[3].mxu0  ;;  %1385 = vmatpush3.bf16.xpose.msra.mxu0 %v518_v13  ;;  %v595_v18 = vsel %vm593_vm1, %v518_v13, 0  ;;  %v514_v19 = vsel %vm513_vm2, %v512_v15, 0.0 }
 0x108   : > { %1391 = vmatpush3.bf16.msra.mxu1 %v595_v18  ;;  %515 = vadd.xlane.f32.xlu0 %v514_v19  ;;  %v1265_v17 = vld [vmem:[%s1624_s18 + $0x1] ss:$0 sm:$0xff]  ;;  %v1266_v19 = vld [vmem:[%s1624_s18 + $0x2] ss:$0 sm:$0xff] }
 0x109   : > { %1396 = vmatprep.subr.bf16.mxu1 %v1516_v0  ;;  %1416 = vmatprep.subr.bf16.mxu0 %v1516_v0 }
 0x10e   : > { %1387 = vmatmul.mubr.bf16.vlgmr.msra.gmra.mrb[4].mxu0 %v517_v21 }
 0x10f   : > { %1418 = vmatprep.mubr.msk.bf16.mxu0 %vm1517_vm0, %v1516_v0 }
 0x195   : > { %v516_v32 = vpop.xlane.xlu0 %515 }
 0x1e1   : > { %v553_v28 = vpop.f32.mrb[4].mxu0 }
 0x1e2   : > { %v562_v29 = vrot.slane %v553_v28, %v561_v25  ;;  %v1388_v31 = vpop.f32.mrb[5].mxu0 }
 0x1e3   : > { %v556_v33 = vpop.f32.mrb[6].mxu0 }
 0x1e4   : > { %v563_v34 = vadd.f32 %v562_v29, %v516_v32  ;;  %v1389_v35 = vpop.f32.mrb[7].mxu0 }
 0x1e5   : > { %v680_v35 = vld [vmem:[%s1610_s14 + $0x2] sm:$0x1] }
 0x1e6   : > { %v564_v37 = vadd.f32 %v563_v34, %v418_v30 }
 0x1e8   : > { %vm565_vm3 = vcmp.gt.f32.partialorder %v564_v37, 0.0  ;;  %v566_v38 = vmul.f32 0.2, %v564_v37 }
 0x1ea   : > { %v567_v39 = vsel %vm565_vm3, %v564_v37, %v566_v38  ;;  %v785_v37 = vpack.c.bf16 %v680_v35, %v680_v35  ;;  %v1493_v35 = vld [vmem:[%s1579_s29 + $0xb8] sm:$0xff]  }
 0x1eb   : > { %v569_v40 = vsel %vm568_vm4, %v567_v39, -1e+30 }
 0x1ec   : > { %v571_v41 = vsel %vm570_vm5, %v569_v40, -inf }
 0x1ed   : > { %572 = vmax.xlane.f32.xlu0 %v571_v41 }
 0x27a   : > { %v573_v42 = vpop.xlane.xlu0 %572 }
 0x27b   : > { %v574_v43 = vsub.f32 %v569_v40, %v573_v42 }
 0x27d   : > { %v575_v44 = vmul.f32 1.442695, %v574_v43 }
 0x27f   : > { %1494 = vpow2.f32 %v575_v44 }
 0x289   : > { %v1495_v45 = vpop.eup %1494 }
 0x28a   : > { %v577_v46 = vmul.f32 %v1495_v45, %v1646_v36 }
 0x28c   : > { %v578_v47 = vsel %vm570_vm5, %v577_v46, 0.0 }
 0x28d   : > { %579 = vadd.xlane.f32.xlu1 %v578_v47 }
 0x31a   : > { %v580_v48 = vpop.xlane.xlu1 %579 }
 0x31b   : > { %v581_v49 = vadd.f32 1e-16, %v580_v48 }
 0x31d   : > { %1496 = vrcp.f32 %v581_v49 }
 0x327   : > { %v1497_v50 = vpop.eup %1496 }
 0x328   : > { %v583_v51 = vmul.f32 %v1497_v50, %v577_v46 }
 0x32a   : > { %v584_v52 = vpack.c.bf16 %v583_v51, %v583_v51 }
 0x32c   : > { %1393 = vmatmul.mubr.msk.bf16.vlgmr.msra.gmra.mrb[0].mxu1 %vm589_vm6, %v584_v52 }
 0x32d   : > { %1412 = vmatprep.mubr.msk.bf16.mxu1 %vm1517_vm0, %v1516_v0  ;;  %1397 = vmatpush3.bf16.msra.mxu1 %v1478_v53 }
 0x32e   : > { %1398 = vmatprep.subr.bf16.mxu1 %v1516_v0 }
 0x331   : > { %1399 = vmatpush3.bf16.msra.mxu1 %v1479_v63 }
 0x332   : > { %1400 = vmatprep.subr.bf16.mxu1 %v1516_v0 }
 0x335   : > { %1401 = vmatpush3.bf16.msra.mxu1 %v1480_v1 }
 0x336   : > { %1402 = vmatprep.subr.bf16.mxu1 %v1516_v0 }
 0x339   : > { %1403 = vmatpush3.bf16.msra.mxu1 %v1481_v2 }
 0x33a   : > { %1404 = vmatprep.subr.bf16.mxu1 %v1516_v0 }
 0x33d   : > { %1405 = vmatpush3.bf16.msra.mxu1 %v1482_v3 }
 0x33e   : > { %1406 = vmatprep.subr.bf16.mxu1 %v1516_v0 }
 0x341   : > { %1407 = vmatpush3.bf16.msra.mxu1 %v1483_v4 }
 0x342   : > { %1408 = vmatprep.subr.bf16.mxu1 %v1516_v0 }
 0x345   : > { %1409 = vmatpush3.bf16.msra.mxu1 %v1484_v5 }
 0x346   : > { %1410 = vmatprep.subr.bf16.mxu1 %v1516_v0 }
 0x349   : > { %1411 = vmatpush3.bf16.msra.mxu1 %v1485_v6  ;;  %v1486_v6 = vld [vmem:[%s1579_s29 + $0x80] sm:$0xff]  }
 0x34a   : > { %1434 = vmatprep.subr.bf16.mxu1 %v1516_v0 }
 0x3ff   : > { %v631_v55 = vpop.f32.mrb[0].mxu1 }
 0x400   : > { %v632_v56 = vadd.f32 %v1263_v54, %v631_v55  ;;  %v1394_v57 = vpop.f32.mrb[1].mxu1 }
 0x401   : > { %v634_v58 = vpop.f32.mrb[2].mxu1 }
 0x402   : > { %v1395_v59 = vpop.f32.mrb[3].mxu1  ;;  %v637_v60 = vsel %vm513_vm2, %v632_v56, 0.0  ;;  %v641_v61 = vmul.f32 %v632_v56, %v632_v56 }
 0x403   : > { %638 = vadd.xlane.f32.xlu1 %v637_v60 }
 0x404   : > { %v642_v62 = vsel %vm513_vm2, %v641_v61, 0.0  ;;  %v1292_v61 = vld [vmem:[%s1624_s18 + $0x3] ss:$0 sm:$0xff] }
 0x405   : > { %643 = vadd.xlane.f32.xlu0 %v642_v62 }
 0x414   : > { %682 = vrot.lane.b32.xlu1 %v1627_v22, %s1518_s28 }
 0x490   : > { %v639_v7 = vpop.xlane.xlu1 %638 }
 0x491   : > { %v640_v8 = vmul.f32 0.020833334, %v639_v7  ;;  %v1487_v7 = vld [vmem:[%s1579_s29 + $0x88] sm:$0xff]  }
 0x492   : > { %v644_v9 = vpop.xlane.xlu0 %643 }
 0x493   : > { %v646_v10 = vmul.f32 %v640_v8, %v640_v8  ;;  %v645_v11 = vmul.f32 0.020833334, %v644_v9  ;;  %v649_v15 = vsub.f32 %v632_v56, %v640_v8  ;;  %v1488_v8 = vld [vmem:[%s1579_s29 + $0x90] sm:$0xff]   ;;  %v1489_v9 = vld [vmem:[%s1579_s29 + $0x98] sm:$0xff]  }
 0x494   : > { %v683_v22 = vpop.permute.xlu1 %682 }
 0x495   : > { %v647_v12 = vsub.f32 %v645_v11, %v646_v10  ;;  %1457 = vpush %v683_v22  ;;  %v1490_v10 = vld [vmem:[%s1579_s29 + $0xa0] sm:$0xff]   ;;  %v1491_v11 = vld [vmem:[%s1579_s29 + $0xa8] sm:$0xff]  }
 0x497   : > { %v648_v13 = vmax.f32 %v647_v12, 0.0  ;;  %v1492_v12 = vld [vmem:[%s1579_s29 + $0xb0] sm:$0xff]  }
 0x499   : > { %v650_v14 = vadd.f32 1e-05, %v648_v13 }
 0x49b   : > { %1498 = vrsqrt.f32 %v650_v14 }
 0x4a5   : > { %v1499_v16 = vpop.eup %1498 }
 0x4a6   : > { %v652_v18 = vmul.f32 %v1499_v16, %v649_v15 }
 0x4a8   : > { %v657_v20 = vmul.f32 %v1265_v17, %v652_v18 }
 0x4aa   : > { %v662_v21 = vadd.f32 %v1266_v19, %v657_v20 }
 0x4ac   : > { %v688_v23 = vpack.c.bf16 %v662_v21, %v662_v21 }
 0x4ae   : > { %1413 = vmatmul.mubr.bf16.vlgmr.msra.gmra.mrb[4].mxu1 %v688_v23 }
 0x4af   : > { %1450 = vmatprep.mubr.msk.bf16.mxu1 %vm1517_vm0, %v1516_v0  ;;  %1435 = vmatpush3.bf16.msra.mxu1 %v1486_v6 }
 0x4b0   : > { %1436 = vmatprep.subr.bf16.mxu1 %v1516_v0 }
 0x4b3   : > { %1437 = vmatpush3.bf16.msra.mxu1 %v1487_v7 }
 0x4b4   : > { %1438 = vmatprep.subr.bf16.mxu1 %v1516_v0 }
 0x4b7   : > { %1439 = vmatpush3.bf16.msra.mxu1 %v1488_v8 }
 0x4b8   : > { %1440 = vmatprep.subr.bf16.mxu1 %v1516_v0 }
 0x4bb   : > { %1441 = vmatpush3.bf16.msra.mxu1 %v1489_v9 }
 0x4bc   : > { %1442 = vmatprep.subr.bf16.mxu1 %v1516_v0 }
 0x4bf   : > { %1443 = vmatpush3.bf16.msra.mxu1 %v1490_v10 }
 0x4c0   : > { %1444 = vmatprep.subr.bf16.mxu1 %v1516_v0 }
 0x4c3   : > { %1445 = vmatpush3.bf16.msra.mxu1 %v1491_v11 }
 0x4c4   : > { %1446 = vmatprep.subr.bf16.mxu1 %v1516_v0 }
 0x4c6   : > { %s1458_s30 = spop %1457 }
 0x4c7   : > { %v685_v39 = vstv %s1458_s30  ;;  %1447 = vmatpush3.bf16.msra.mxu1 %v1492_v12 }
 0x4c8   : > { %v687_v42 = vmul.f32 %v685_v39, %v1637_v26  ;;  %1448 = vmatprep.subr.bf16.mxu1 %v1516_v0 }
 0x4cb   : > { %1449 = vmatpush3.bf16.msra.mxu1 %v1493_v35 }
 0x581   : > { %v771_v28 = vpop.f32.mrb[4].mxu1 }
 0x582   : > { %v781_v29 = vmul.f32 %v1291_v27, %v771_v28  ;;  %v786_v30 = vpack.c.bf16 %v771_v28, %v771_v28  ;;  %v1414_v31 = vpop.f32.mrb[5].mxu1  ;;  %v1294_v27 = vld [vmem:[%s1624_s18 + $0x4] ss:$0 sm:$0xff] }
 0x583   : > { %v774_v32 = vpop.f32.mrb[6].mxu1  ;;  %v927_v31 = vld [vmem:[%s363_s11] sm:$0x3] }
 0x584   : > { %v1415_v33 = vpop.f32.mrb[7].mxu1  ;;  %1417 = vmatpush3.bf16.xpose.msra.mxu0 %v786_v30  ;;  %v782_v34 = vsel %vm513_vm2, %v781_v29, 0.0  ;;  %v859_v38 = vsel %vm593_vm1, %v786_v30, 0  ;;  %v1295_v29 = vld [vmem:[%s1624_s18 + $0x5] ss:$0 sm:$0xff] }
 0x585   : > { %783 = vadd.xlane.f32.xlu0 %v782_v34  ;;  %1422 = vmatprep.subr.bf16.mxu0 %v1516_v0  ;;  %v928_v34 = vpack.c.bf16 %v927_v31, %v927_v31 }
 0x58b   : > { %1419 = vmatmul.mubr.bf16.vlgmr.msra.gmra.mrb[8].mxu0 %v785_v37 }
 0x58c   : > { %1423 = vmatpush3.bf16.msra.mxu0 %v859_v38  ;;  %1424 = vmatprep.mubr.msk.bf16.mxu0 %vm1517_vm0, %v1516_v0 }
 0x58d   : > { %1428 = vmatprep.subr.bf16.mxu0 %v1516_v0 }
 0x612   : > { %v784_v44 = vpop.xlane.xlu0 %783 }
 0x65e   : > { %v821_v40 = vpop.f32.mrb[8].mxu0 }
 0x65f   : > { %v830_v41 = vrot.slane %v821_v40, %v561_v25  ;;  %v1420_v43 = vpop.f32.mrb[9].mxu0 }
 0x660   : > { %v824_v45 = vpop.f32.mrb[10].mxu0 }
 0x661   : > { %v831_v46 = vadd.f32 %v830_v41, %v784_v44  ;;  %v1421_v47 = vpop.f32.mrb[11].mxu0  ;;  %v1313_v41 = vld [vmem:[%s1624_s18 + $0x6] ss:$0 sm:$0xff] }
 0x663   : > { %v832_v48 = vadd.f32 %v831_v46, %v687_v42 }
 0x665   : > { %vm833_vm7 = vcmp.gt.f32.partialorder %v832_v48, 0.0  ;;  %v834_v49 = vmul.f32 0.2, %v832_v48 }
 0x667   : > { %v835_v50 = vsel %vm833_vm7, %v832_v48, %v834_v49 }
 0x668   : > { %v836_v51 = vsel %vm568_vm4, %v835_v50, -1e+30 }
 0x669   : > { %v837_v52 = vsel %vm570_vm5, %v836_v51, -inf }
 0x66a   : > { %838 = vmax.xlane.f32.xlu0 %v837_v52 }
 0x6f7   : > { %v839_v53 = vpop.xlane.xlu0 %838 }
 0x6f8   : > { %v840_v24 = vsub.f32 %v836_v51, %v839_v53 }
 0x6fa   : > { %v841_v25 = vmul.f32 1.442695, %v840_v24 }
 0x6fc   : > { %1500 = vpow2.f32 %v841_v25 }
 0x706   : > { %v1501_v26 = vpop.eup %1500 }
 0x707   : > { %v843_v54 = vmul.f32 %v1501_v26, %v1646_v36 }
 0x709   : > { %v844_v55 = vsel %vm570_vm5, %v843_v54, 0.0 }
 0x70a   : > { %845 = vadd.xlane.f32.xlu0 %v844_v55 }
 0x797   : > { %v846_v56 = vpop.xlane.xlu0 %845 }
 0x798   : > { %v847_v57 = vadd.f32 1e-16, %v846_v56 }
 0x79a   : > { %1502 = vrcp.f32 %v847_v57  ;;  %v1322_v57 = vld [vmem:[%s1624_s18 + $0x7] ss:$0 sm:$0xff] }
 0x7a4   : > { %v1503_v58 = vpop.eup %1502 }
 0x7a5   : > { %v849_v59 = vmul.f32 %v1503_v58, %v843_v54 }
 0x7a7   : > { %v850_v60 = vpack.c.bf16 %v849_v59, %v849_v59  ;;  %v1323_v59 = vld [vmem:[%s1624_s18 + $0x8] ss:$0 sm:$0xff] }
 0x7a9   : > { %1425 = vmatmul.mubr.msk.bf16.vlgmr.msra.gmra.mrb[12].mxu0 %vm589_vm6, %v850_v60 }
 0x7aa   : > { %1430 = vmatprep.mubr.msk.bf16.mxu0 %vm1517_vm0, %v1516_v0 }
 0x87c   : > { %v895_v62 = vpop.f32.mrb[12].mxu0 }
 0x87d   : > { %v896_v36 = vadd.f32 %v1292_v61, %v895_v62  ;;  %v1426_v63 = vpop.f32.mrb[13].mxu0 }
 0x87e   : > { %v898_v1 = vpop.f32.mrb[14].mxu0 }
 0x87f   : > { %v1427_v2 = vpop.f32.mrb[15].mxu0  ;;  %v901_v3 = vsel %vm513_vm2, %v896_v36, 0.0  ;;  %v905_v4 = vmul.f32 %v896_v36, %v896_v36 }
 0x880   : > { %902 = vadd.xlane.f32.xlu0 %v901_v3 }
 0x881   : > { %v906_v5 = vsel %vm513_vm2, %v905_v4, 0.0 }
 0x882   : > { %907 = vadd.xlane.f32.xlu1 %v906_v5 }
 0x90d   : > { %v903_v13 = vpop.xlane.xlu0 %902 }
 0x90e   : > { %v904_v14 = vmul.f32 0.020833334, %v903_v13 }
 0x90f   : > { %v908_v15 = vpop.xlane.xlu1 %907 }
 0x910   : > { %v910_v16 = vmul.f32 %v904_v14, %v904_v14  ;;  %v909_v17 = vmul.f32 0.020833334, %v908_v15  ;;  %v913_v21 = vsub.f32 %v896_v36, %v904_v14 }
 0x912   : > { %v911_v18 = vsub.f32 %v909_v17, %v910_v16 }
 0x914   : > { %v912_v19 = vmax.f32 %v911_v18, 0.0 }
 0x916   : > { %v914_v20 = vadd.f32 1e-05, %v912_v19 }
 0x918   : > { %1504 = vrsqrt.f32 %v914_v20 }
 0x922   : > { %v1505_v23 = vpop.eup %1504 }
 0x923   : > { %v916_v28 = vmul.f32 %v1505_v23, %v913_v21 }
 0x925   : > { %v921_v30 = vmul.f32 %v1294_v27, %v916_v28 }
 0x927   : > { %v926_v0 = vadd.f32 %v1295_v29, %v921_v30 }
 0x929   : > { %v929_v32 = vpack.c.bf16 %v926_v0, %v926_v0 }
 0x92b   : > { %v934_v33 = vsel %vm593_vm1, %v929_v32, 0 }
 0x92c   : > { %1429 = vmatpush3.bf16.msra.mxu0 %v934_v33 }
 0x92f   : > { %1431 = vmatmul.mubr.msk.bf16.vlgmr.msra.gmra.mrb[16].mxu0 %vm589_vm6, %v928_v34 }
 0xa02   : > { %v970_v37 = vpop.f32.mrb[16].mxu0 }
 0xa03   : > { %v993_v38 = vpack.c.bf16 %v970_v37, %v970_v37  ;;  %v1432_v22 = vpop.f32.mrb[17].mxu0 }
 0xa04   : > { %v973_v39 = vpop.f32.mrb[18].mxu0 }
 0xa05   : > { %1451 = vmatmul.mubr.bf16.vlgmr.msra.gmra.mrb[8].mxu1 %v993_v38  ;;  %v1433_v40 = vpop.f32.mrb[19].mxu0 }
 0xad8   : > { %v1080_v42 = vpop.f32.mrb[8].mxu1 }
 0xad9   : > { %v1081_v43 = vadd.f32 %v1313_v41, %v1080_v42  ;;  %v1452_v44 = vpop.f32.mrb[9].mxu1 }
 0xada   : > { %v1083_v45 = vpop.f32.mrb[10].mxu1 }
 0xadb   : > { %v1087_v46 = vsel %vm1086_vm8, %v1081_v43, 0.0  ;;  %v1453_v47 = vpop.f32.mrb[11].mxu1  ;;  %v1091_v48 = vmul.f32 %v1081_v43, %v1081_v43 }
 0xadc   : > { %1088 = vadd.xlane.f32.xlu0 %v1087_v46 }
 0xadd   : > { %v1092_v49 = vsel %vm1086_vm8, %v1091_v48, 0.0 }
 0xae0   : > { %1093 = vadd.xlane.f32.xlu0 %v1092_v49 }
 0xb69   : > { %v1089_v50 = vpop.xlane.xlu0 %1088 }
 0xb6a   : > { %v1090_v51 = vmul.f32 0.020833334, %v1089_v50 }
 0xb6c   : > { %v1096_v53 = vmul.f32 %v1090_v51, %v1090_v51  ;;  %v1099_v55 = vsub.f32 %v1081_v43, %v1090_v51 }
 0xb6d   : > { %v1094_v52 = vpop.xlane.xlu0 %1093 }
 0xb6e   : > { %v1095_v24 = vmul.f32 0.020833334, %v1094_v52 }
 0xb70   : > { %v1097_v25 = vsub.f32 %v1095_v24, %v1096_v53 }
 0xb72   : > { %v1098_v26 = vmax.f32 %v1097_v25, 0.0 }
 0xb74   : > { %v1100_v54 = vadd.f32 1e-05, %v1098_v26 }
 0xb76   : > { %1506 = vrsqrt.f32 %v1100_v54 }
 0xb80   : > { %v1507_v56 = vpop.eup %1506 }
 0xb81   : > { %v1102_v58 = vmul.f32 %v1507_v56, %v1099_v55 }
 0xb83   : > { %v1107_v60 = vmul.f32 %v1322_v57, %v1102_v58 }
 0xb85   : > { %v1112_v61 = vadd.f32 %v1323_v59, %v1107_v60 }
 0xb87   : > { %v1113_v62 = vmax.f32 %v1112_v61, 0.0 }
 0xb89   : > { %1114 = vst [vmem:[%s381_s13] sm:$0x3] %v1113_v62 }
 0xb8a PF: > { %s17_s24 = sadd.s32 1, %s1514_s24  }
 0xb8b   : > { %p14_p4 = scmp.ge.s32.totalorder %s17_s24, 7  }
 0xb8d   :  { %16 = sbr.rel (!%p14_p4) target bundleno = 1 (0x1), region = 98 }

// kernel: _lambda_.3
= control target key start
LH: loop header
LB: loop body
LE: loop exit
PB: predicated region body
PF: predicated region fallthrough
CT: control target
= control target key end

     0   :  { %s3575_s30 = smov 0   ;;  %s3577_s10 = smov 0   ;;  %s4001_s0 = inlined_call_operand.vmem [shape: f32[3,2,8,128], index: 0, kind: input, shape index: {}]   ;;  %s4002_s1 = inlined_call_operand.vmem [shape: bf16[2,3,128,1152], index: 1, kind: input, shape index: {}]   ;;  %s4003_s2 = inlined_call_operand.vmem [shape: bf16[2,3,384,128], index: 2, kind: input, shape index: {}]   ;;  %s4004_s3 = inlined_call_operand.vmem [shape: bf16[2,3,128,256], index: 3, kind: input, shape index: {}]   ;;  %s4005_s4 = inlined_call_operand.vmem [shape: f32[2,3,1,256], index: 4, kind: input, shape index: {}]   ;;  %s4006_s5 = inlined_call_operand.vmem [shape: bf16[2,3,256,128], index: 5, kind: input, shape index: {}]   ;;  %s4007_s6 = inlined_call_operand.vmem [shape: f32[2,3,6,128], index: 6, kind: input, shape index: {}]   ;;  %s4008_s7 = inlined_call_operand.vmem [shape: f32[3,1,128], index: 7, kind: input, shape index: {}]   ;;  %s4009_s8 = inlined_call_operand.vmem [shape: f32[3,1,1], index: 8, kind: input, shape index: {}]   ;;  %s4010_s9 = inlined_call_operand.vmem [shape: f32[3,2,128], index: 9, kind: output, shape index: {}]  }
   0x1   :  { %4015 = sst [smem:[#allocation9_spill]] %s4001_s0  ;;  %s3579_s11 = smov 0  }
   0x2   :  { %4016 = sst [smem:[#allocation10_spill]] %s4002_s1  ;;  %s3581_s12 = smov 0  }
   0x3   :  { %4017 = sst [smem:[#allocation11_spill]] %s4003_s2  ;;  %s3583_s13 = smov 0  }
   0x4   :  { %4018 = sst [smem:[#allocation12_spill]] %s4007_s6 }
   0x5 LB: > { %4019 = sst [smem:[#allocation3_spill]] %s3503_s30  ;;  %s28_s14 = sadd.s32 1, %s3511_s11  ;;  %s3519_s13 = sphi %s3583_s13, %s19_s13   ;;  %s3515_s12 = sphi %s3581_s12, %s4036_s12   ;;  %s3511_s11 = sphi %s3579_s11, %s4035_s11   ;;  %s3507_s10 = sphi %s3577_s10, %s4034_s10   ;;  %s3503_s30 = sphi %s3575_s30, %s4033_s30  }
   0x6   : > { %4020 = sst [smem:[#allocation4_spill]] %s3511_s11  ;;  %s31_s15 = sadd.s32 1, %s3515_s12 }
   0x7   : > { %4021 = sst [smem:[#allocation5_spill]] %s3515_s12  ;;  %p29_p0 = scmp.ge.s32.totalorder %s28_s14, 2 }
   0x8   : > { %4022 = sst [smem:[#allocation6_spill]] %s3519_s13  ;;  %p2861_p1 = scmp.ge.s32.totalorder %s3519_s13, 1 }
   0x9   : > { %p409_p2 = scmp.lt.s32.totalorder %s3519_s13, 7  ;;  %s4038_s14 = smov (%p29_p0, %s28_s14), 0 }
   0xa   : > { %4023 = sst [smem:[#allocation7_spill]] %s4038_s14  ;;  %s4040_s15 = smov (!%p29_p0, %s31_s15), %s3515_s12 }
   0xb   : > { %p410_p3 = pnand %p2861_p1, %p409_p2  ;;  %p33_p4 = scmp.ge.s32.totalorder %s4040_s15, 3 }
   0xc   : > { %p502_p5 = scmp.lt.s32.totalorder (!%p410_p3), %s3507_s10, 2  ;;  %p507_p6 = scmp.lt.s32.totalorder (!%p410_p3), %s3503_s30, 1 }
   0xd   : > { %s4042_s15 = smov (%p33_p4, %s4040_s15), 0  ;;  %413 = sbr.rel (%p410_p3) target bundleno = 3487 (0xd9f), region = 56 }
   0xe   : > { %4024 = sst [smem:[#allocation8_spill]] %s4042_s15  ;;  %s4025_s0 = sld [smem:[#allocation9_spill]] (!%p410_p3) }
   0xf   : > { %s4026_s1 = sld [smem:[#allocation10_spill]] (!%p410_p3)  ;;  %s4027_s2 = sld [smem:[#allocation11_spill]] (!%p410_p3) }
  0x14   : > { %s4044_s10 = smov (!%p502_p5, %s3507_s10), 2 }
  0x15   : > { %s508_s16 = scalar_select %p507_p6, %s3503_s30, 1 }
  0x16   : > { %s3019_s17 = sshll.u32 %s4044_s10, 4  ;;  %s3218_s18 = smul.u32 144, %s4044_s10 }
  0x17   : > { %s506_s21 = scalar_lea.vmem %s4025_s0, %s3019_s17  ;;  %s3219_s22 = smul.u32 432, %s508_s16 }
  0x18   : > { %s3220_s23 = smul.u32 48, %s4044_s10  ;;  %s2866_s24 = sshll.u32 %s4044_s10, 5 }
  0x19   : > { %s513_s25 = sadd.s32 %s3219_s22, %s3218_s18  ;;  %s3221_s26 = smul.u32 144, %s508_s16 }
  0x1a   : > { %s2864_s27 = sshll.u32 %s513_s25, 2  ;;  %s3222_s28 = smul.u32 96, %s508_s16 }
  0x1b   : > { %s3621_s14 = scalar_lea.vmem %s4026_s1, %s2864_s27  ;;  %s522_s12 = sadd.s32 %s3221_s26, %s3220_s23 }
  0x1c   : > { %s2865_s11 = sshll.u32 %s522_s12, 2  ;;  %s531_s19 = sadd.s32 %s3222_s28, %s2866_s24 }
  0x1d   : > { %s3626_s0 = scalar_lea.vmem %s4027_s2, %s2865_s11  ;;  %s2867_s13 = sshll.u32 %s531_s19, 2 }
  0x1e   : > { %s3631_s25 = scalar_lea.vmem %s4004_s3, %s2867_s13  ;;  %s2868_s30 = sshll.u32 %s4044_s10, 1 }
  0x1f   : > { %s3223_s6 = smul.u32 6, %s508_s16  ;;  %s3637_s27 = scalar_lea.vmem %s4006_s5, %s2867_s13 }
  0x20   : > { %s3224_s12 = smul.u32 3, %s508_s16  ;;  %s564_s20 = scalar_lea.vmem %s4009_s8, %s4044_s10 }
  0x21   : > { %s3643_s11 = sadd.s32 %s3223_s6, %s2868_s30  ;;  %s3657_s16 = scalar_lea.vmem %s4010_s9, %s2868_s30 }
  0x22   : > { %s541_s22 = scalar_lea.vmem %s4005_s4, %s3643_s11  ;;  %s556_s1 = sadd.s32 %s3224_s12, %s4044_s10 }
  0x23   : > { %s2871_s15 = sshll.u32 %s556_s1, 3  ;;  %s4028_s6 = sld [smem:[#allocation12_spill]] }
  0x24   : > { %s4029_s2 = sld [smem:[#allocation3_spill]] }
  0x29   : > { %s3662_s26 = scalar_lea.vmem %s4028_s6, %s2871_s15 }
  0x2a   : > { %p2873_p7 = scmp.ne.s32.totalorder %s4029_s2, 0 }
  0x2b   : > { %v574_v0 = vld [vmem:[%s506_s21] sm:$0xff] (!%p2873_p7)  ;;  %v575_v1 = vld [vmem:[%s506_s21 + $0x8] sm:$0xff] (!%p2873_p7) }
  0x2c   : > { %573 = sbr.rel (%p2873_p7) target bundleno = 51 (0x33), region = 60  ;;  %576 = vst [vmem:[#allocation2] sm:$0xff] (!%p2873_p7), %v574_v0  ;;  %577 = vst [vmem:[#allocation2 + $0x8] sm:$0xff] (!%p2873_p7), %v575_v1 }
  0x33 PF: > { %v3269_v2 = vld [vmem:[%s3621_s14 + $0x4] ss:$36 sps:$4 sm:$0xff]   ;;  %v3271_v3 = vld [vmem:[%s3621_s14 + $0xc] ss:$36 sps:$4 sm:$0xff]   ;;  %v3521_v4 = vmov 0   ;;  %vm3523_vm0 = vmmov 0  }
  0x34   : > { %1104 = vmatprep.mubr.bf16.mxu1 %v3521_v4  ;;  %1061 = vmatprep.mubr.bf16.mxu0 %v3521_v4  ;;  %v3273_v5 = vld [vmem:[%s3621_s14] ss:$36 sps:$4 sm:$0xff]   ;;  %v3274_v6 = vld [vmem:[%s3621_s14 + $0x8] ss:$36 sps:$4 sm:$0xff]   ;;  %v3277_v8 = vld [vmem:[%s3621_s14 + $0x54] ss:$36 sps:$4 sm:$0xff]  }
  0x35   : > { %1029 = vmatprep.subr.bf16.mxu0 %v3269_v2  ;;  %1072 = vmatprep.subr.bf16.mxu1 %v3271_v3  ;;  %v3275_v7 = vld [vmem:[%s3621_s14 + $0x4c] ss:$36 sps:$4 sm:$0xff]   ;;  %v3281_v11 = vld [vmem:[%s3621_s14 + $0x94] ss:$36 sps:$4 sm:$0xff]   ;;  %v3283_v12 = vld [vmem:[%s3621_s14 + $0x9c] ss:$36 sps:$4 sm:$0xff]  }
  0x36   : > { %1030 = vmatpush1.bf16.msra.mxu0 %v3273_v5  ;;  %1073 = vmatpush1.bf16.msra.mxu1 %v3274_v6  ;;  %v3279_v9 = vld [vmem:[%s3621_s14 + $0x48] ss:$36 sps:$4 sm:$0xff]   ;;  %v3280_v10 = vld [vmem:[%s3621_s14 + $0x50] ss:$36 sps:$4 sm:$0xff]   ;;  %v3286_v14 = vld [vmem:[%s3621_s14 + $0x98] ss:$36 sps:$4 sm:$0xff]  }
  0x37   : > { %1031 = vmatprep.subr.bf16.mxu0 %v3275_v7  ;;  %1074 = vmatprep.subr.bf16.mxu1 %v3277_v8  ;;  %v3285_v13 = vld [vmem:[%s3621_s14 + $0x90] ss:$36 sps:$4 sm:$0xff]   ;;  %v3287_v15 = vld [vmem:[%s3621_s14 + $0xdc] ss:$36 sps:$4 sm:$0xff]   ;;  %v3289_v16 = vld [vmem:[%s3621_s14 + $0xe4] ss:$36 sps:$4 sm:$0xff]  }
  0x38   : > { %v3291_v17 = vld [vmem:[%s3621_s14 + $0xd8] ss:$36 sps:$4 sm:$0xff]   ;;  %v3292_v18 = vld [vmem:[%s3621_s14 + $0xe0] ss:$36 sps:$4 sm:$0xff]   ;;  %v3295_v20 = vld [vmem:[%s3621_s14 + $0x12c] ss:$36 sps:$4 sm:$0xff]  }
  0x39   : > { %v3293_v19 = vld [vmem:[%s3621_s14 + $0x124] ss:$36 sps:$4 sm:$0xff]   ;;  %v3299_v23 = vld [vmem:[%s3621_s14 + $0x16c] ss:$36 sps:$4 sm:$0xff]   ;;  %v3301_v24 = vld [vmem:[%s3621_s14 + $0x174] ss:$36 sps:$4 sm:$0xff]  }
  0x3a   : > { %1032 = vmatpush1.bf16.msra.mxu0 %v3279_v9  ;;  %1075 = vmatpush1.bf16.msra.mxu1 %v3280_v10  ;;  %v3297_v21 = vld [vmem:[%s3621_s14 + $0x120] ss:$36 sps:$4 sm:$0xff]   ;;  %v3298_v22 = vld [vmem:[%s3621_s14 + $0x128] ss:$36 sps:$4 sm:$0xff]   ;;  %v3304_v26 = vld [vmem:[%s3621_s14 + $0x170] ss:$36 sps:$4 sm:$0xff]  }
  0x3b   : > { %1033 = vmatprep.subr.bf16.mxu0 %v3281_v11  ;;  %1076 = vmatprep.subr.bf16.mxu1 %v3283_v12  ;;  %v3303_v25 = vld [vmem:[%s3621_s14 + $0x168] ss:$36 sps:$4 sm:$0xff]   ;;  %v3305_v27 = vld [vmem:[%s3621_s14 + $0x1b4] ss:$36 sps:$4 sm:$0xff]   ;;  %v3307_v28 = vld [vmem:[%s3621_s14 + $0x1bc] ss:$36 sps:$4 sm:$0xff]  }
  0x3c   : > { %v3309_v29 = vld [vmem:[%s3621_s14 + $0x1b0] ss:$36 sps:$4 sm:$0xff]   ;;  %v3310_v30 = vld [vmem:[%s3621_s14 + $0x1b8] ss:$36 sps:$4 sm:$0xff]   ;;  %v3313_v32 = vld [vmem:[%s3621_s14 + $0x204] ss:$36 sps:$4 sm:$0xff]  }
  0x3d   : > { %v3311_v31 = vld [vmem:[%s3621_s14 + $0x1fc] ss:$36 sps:$4 sm:$0xff]   ;;  %v579_v36 = vld [vmem:[#allocation2 + $0x8] sm:$0xff]  ;;  %v3319_v37 = vld [vmem:[%s3621_s14 + $0x14] ss:$36 sps:$4 sm:$0xff]   ;;  %v3522_v8 = vmov 0.0  }
  0x3e   : > { %1034 = vmatpush1.bf16.msra.mxu0 %v3285_v13  ;;  %1077 = vmatpush1.bf16.msra.mxu1 %v3286_v14  ;;  %v3315_v33 = vld [vmem:[%s3621_s14 + $0x1f8] ss:$36 sps:$4 sm:$0xff]   ;;  %v3316_v34 = vld [vmem:[%s3621_s14 + $0x200] ss:$36 sps:$4 sm:$0xff]   ;;  %v3317_v39 = vld [vmem:[%s3621_s14 + $0x10] ss:$36 sps:$4 sm:$0xff]  }
  0x3f   : > { %1035 = vmatprep.subr.bf16.mxu0 %v3287_v15  ;;  %1078 = vmatprep.subr.bf16.mxu1 %v3289_v16  ;;  %v578_v35 = vld [vmem:[#allocation2] sm:$0xff]  ;;  %v3341_v42 = vld [vmem:[%s3621_s14 + $0x18] ss:$36 sps:$4 sm:$0xff]   ;;  %v3349_v47 = vld [vmem:[%s3621_s14 + $0xac] ss:$36 sps:$4 sm:$0xff]   ;;  %vm1358_vm1 = vcmask 1043456  }
  0x40   : > { %v3700_v38 = vpack.c.bf16 %v579_v36, %v578_v35  ;;  %v3322_v40 = vld [vmem:[%s3621_s14 + $0x5c] ss:$36 sps:$4 sm:$0xff]   ;;  %v3346_v43 = vld [vmem:[%s3621_s14 + $0x64] ss:$36 sps:$4 sm:$0xff]   ;;  %v3328_v49 = vld [vmem:[%s3621_s14 + $0xec] ss:$36 sps:$4 sm:$0xff]  }
  0x41   : > { %v3343_v41 = vld [vmem:[%s3621_s14 + $0x1c] ss:$36 sps:$4 sm:$0xff]   ;;  %v3325_v45 = vld [vmem:[%s3621_s14 + $0xa4] ss:$36 sps:$4 sm:$0xff]   ;;  %v3331_v52 = vld [vmem:[%s3621_s14 + $0x134] ss:$36 sps:$4 sm:$0xff]  }
  0x42   : > { %1036 = vmatpush1.bf16.msra.mxu0 %v3291_v17  ;;  %1079 = vmatpush1.bf16.msra.mxu1 %v3292_v18  ;;  %v3320_v44 = vld [vmem:[%s3621_s14 + $0x58] ss:$36 sps:$4 sm:$0xff]   ;;  %v3344_v46 = vld [vmem:[%s3621_s14 + $0x60] ss:$36 sps:$4 sm:$0xff]   ;;  %v3326_v50 = vld [vmem:[%s3621_s14 + $0xe8] ss:$36 sps:$4 sm:$0xff]  }
  0x43   : > { %1037 = vmatprep.subr.bf16.mxu0 %v3293_v19  ;;  %1080 = vmatprep.subr.bf16.mxu1 %v3295_v20  ;;  %v3323_v48 = vld [vmem:[%s3621_s14 + $0xa0] ss:$36 sps:$4 sm:$0xff]   ;;  %v3347_v51 = vld [vmem:[%s3621_s14 + $0xa8] ss:$36 sps:$4 sm:$0xff]   ;;  %v3352_v53 = vld [vmem:[%s3621_s14 + $0xf4] ss:$36 sps:$4 sm:$0xff]  }
  0x44   : > { %v3350_v54 = vld [vmem:[%s3621_s14 + $0xf0] ss:$36 sps:$4 sm:$0xff]   ;;  %v3355_v55 = vld [vmem:[%s3621_s14 + $0x13c] ss:$36 sps:$4 sm:$0xff]   ;;  %v3358_v59 = vld [vmem:[%s3621_s14 + $0x184] ss:$36 sps:$4 sm:$0xff]  }
  0x45   : > { %v3329_v56 = vld [vmem:[%s3621_s14 + $0x130] ss:$36 sps:$4 sm:$0xff]   ;;  %v3334_v57 = vld [vmem:[%s3621_s14 + $0x17c] ss:$36 sps:$4 sm:$0xff]   ;;  %v3337_v61 = vld [vmem:[%s3621_s14 + $0x1c4] ss:$36 sps:$4 sm:$0xff]  }
  0x46   : > { %1038 = vmatpush1.bf16.msra.mxu0 %v3297_v21  ;;  %1081 = vmatpush1.bf16.msra.mxu1 %v3298_v22  ;;  %v3353_v58 = vld [vmem:[%s3621_s14 + $0x138] ss:$36 sps:$4 sm:$0xff]   ;;  %v3356_v62 = vld [vmem:[%s3621_s14 + $0x180] ss:$36 sps:$4 sm:$0xff]   ;;  %v3361_v63 = vld [vmem:[%s3621_s14 + $0x1cc] ss:$36 sps:$4 sm:$0xff]  }
  0x47   : > { %1039 = vmatprep.subr.bf16.mxu0 %v3299_v23  ;;  %1082 = vmatprep.subr.bf16.mxu1 %v3301_v24  ;;  %v3332_v60 = vld [vmem:[%s3621_s14 + $0x178] ss:$36 sps:$4 sm:$0xff]   ;;  %v3335_v0 = vld [vmem:[%s3621_s14 + $0x1c0] ss:$36 sps:$4 sm:$0xff]   ;;  %v3340_v1 = vld [vmem:[%s3621_s14 + $0x20c] ss:$36 sps:$4 sm:$0xff]  }
  0x48   : > { %v3359_v2 = vld [vmem:[%s3621_s14 + $0x1c8] ss:$36 sps:$4 sm:$0xff]   ;;  %v3364_v3 = vld [vmem:[%s3621_s14 + $0x214] ss:$36 sps:$4 sm:$0xff]   ;;  %v3365_v7 = vld [vmem:[%s3621_s14 + $0x20] ss:$36 sps:$4 sm:$0xff]  }
  0x49   : > { %v3338_v5 = vld [vmem:[%s3621_s14 + $0x208] ss:$36 sps:$4 sm:$0xff]   ;;  %v3362_v6 = vld [vmem:[%s3621_s14 + $0x210] ss:$36 sps:$4 sm:$0xff]   ;;  %v3368_v11 = vld [vmem:[%s3621_s14 + $0xf8] ss:$36 sps:$4 sm:$0xff]  }
  0x4a   : > { %1040 = vmatpush1.bf16.msra.mxu0 %v3303_v25  ;;  %1083 = vmatpush1.bf16.msra.mxu1 %v3304_v26  ;;  %v3366_v9 = vld [vmem:[%s3621_s14 + $0x68] ss:$36 sps:$4 sm:$0xff]   ;;  %v3367_v10 = vld [vmem:[%s3621_s14 + $0xb0] ss:$36 sps:$4 sm:$0xff]   ;;  %v3369_v12 = vld [vmem:[%s3621_s14 + $0x140] ss:$36 sps:$4 sm:$0xff]  }
  0x4b   : > { %1041 = vmatprep.subr.bf16.mxu0 %v3305_v27  ;;  %1084 = vmatprep.subr.bf16.mxu1 %v3307_v28  ;;  %v3370_v13 = vld [vmem:[%s3621_s14 + $0x188] ss:$36 sps:$4 sm:$0xff]   ;;  %v3371_v14 = vld [vmem:[%s3621_s14 + $0x1d0] ss:$36 sps:$4 sm:$0xff]   ;;  %v3372_v15 = vld [vmem:[%s3621_s14 + $0x218] ss:$36 sps:$4 sm:$0xff]  }
  0x4c   : > { %vm1328_vm2 = vcmask 64512   ;;  %s4030_s2 = sld [smem:[#allocation3_spill]] }
  0x4e   : > { %1042 = vmatpush1.bf16.msra.mxu0 %v3309_v29  ;;  %1085 = vmatpush1.bf16.msra.mxu1 %v3310_v30 }
  0x4f   : > { %1043 = vmatprep.subr.bf16.mxu0 %v3311_v31  ;;  %1086 = vmatprep.subr.bf16.mxu1 %v3313_v32 }
  0x52   : > { %1044 = vmatpush1.bf16.msra.mxu0 %v3315_v33  ;;  %1087 = vmatpush1.bf16.msra.mxu1 %v3316_v34  ;;  %p3014_p8 = scmp.ne.s32.totalorder %s4030_s2, 1 }
  0x53   : > { %1115 = vmatprep.subr.bf16.mxu0 %v3319_v37  ;;  %1158 = vmatprep.subr.bf16.mxu1 %v3343_v41  ;;  %s4031_s21 = scalar_lea.vmem (!%p3014_p8), %s4008_s7, %s4044_s10  ;;  %vm2586_vm3 = vcmask (!%p3014_p8), 7168   ;;  %vm2651_vm4 = vcmask (!%p3014_p8), 1041409  }
  0x55   : > { %1105 = vmatmul.mubr.bf16.vlgmr.msra.gmra.mrb[0].mxu1 %v3700_v38  ;;  %1062 = vmatmul.mubr.bf16.vlgmr.msra.gmra.mrb[0].mxu0 %v3700_v38 }
  0x56   : > { %1116 = vmatpush1.bf16.msra.mxu0 %v3317_v39  ;;  %1147 = vmatprep.mubr.bf16.mxu0 %v3521_v4 }
  0x57   : > { %1117 = vmatprep.subr.bf16.mxu0 %v3322_v40  ;;  %1159 = vmatpush1.bf16.msra.mxu1 %v3341_v42 }
  0x58   : > { %1190 = vmatprep.mubr.bf16.mxu1 %v3521_v4  ;;  %1160 = vmatprep.subr.bf16.mxu1 %v3346_v43 }
  0x5a   : > { %1118 = vmatpush1.bf16.msra.mxu0 %v3320_v44 }
  0x5b   : > { %1119 = vmatprep.subr.bf16.mxu0 %v3325_v45  ;;  %1161 = vmatpush1.bf16.msra.mxu1 %v3344_v46 }
  0x5c   : > { %1162 = vmatprep.subr.bf16.mxu1 %v3349_v47 }
  0x5e   : > { %1120 = vmatpush1.bf16.msra.mxu0 %v3323_v48 }
  0x5f   : > { %1121 = vmatprep.subr.bf16.mxu0 %v3328_v49  ;;  %1163 = vmatpush1.bf16.msra.mxu1 %v3347_v51 }
  0x60   : > { %1164 = vmatprep.subr.bf16.mxu1 %v3352_v53 }
  0x62   : > { %1122 = vmatpush1.bf16.msra.mxu0 %v3326_v50 }
  0x63   : > { %1123 = vmatprep.subr.bf16.mxu0 %v3331_v52  ;;  %1165 = vmatpush1.bf16.msra.mxu1 %v3350_v54 }
  0x64   : > { %1166 = vmatprep.subr.bf16.mxu1 %v3355_v55 }
  0x66   : > { %1124 = vmatpush1.bf16.msra.mxu0 %v3329_v56 }
  0x67   : > { %1125 = vmatprep.subr.bf16.mxu0 %v3334_v57  ;;  %1167 = vmatpush1.bf16.msra.mxu1 %v3353_v58 }
  0x68   : > { %1168 = vmatprep.subr.bf16.mxu1 %v3358_v59 }
  0x6a   : > { %1126 = vmatpush1.bf16.msra.mxu0 %v3332_v60 }
  0x6b   : > { %1127 = vmatprep.subr.bf16.mxu0 %v3337_v61  ;;  %1169 = vmatpush1.bf16.msra.mxu1 %v3356_v62 }
  0x6c   : > { %1170 = vmatprep.subr.bf16.mxu1 %v3361_v63 }
  0x6e   : > { %1128 = vmatpush1.bf16.msra.mxu0 %v3335_v0 }
  0x6f   : > { %1129 = vmatprep.subr.bf16.mxu0 %v3340_v1  ;;  %1171 = vmatpush1.bf16.msra.mxu1 %v3359_v2 }
  0x70   : > { %1172 = vmatprep.subr.bf16.mxu1 %v3364_v3 }
  0x72   : > { %1130 = vmatpush1.bf16.msra.mxu0 %v3338_v5 }
  0x73   : > { %3106 = vmatprep.subr.bf16.mxu0 %v3522_v8  ;;  %1173 = vmatpush1.bf16.msra.mxu1 %v3362_v6 }
  0x74   : > { %3126 = vmatprep.subr.bf16.mxu1 %v3522_v8 }
  0x75   : > { %1148 = vmatmul.mubr.bf16.vlgmr.msra.gmra.mrb[4].mxu0 %v3700_v38 }
  0x76   : > { %3107 = vmatpush3.bf16.msra.mxu0 %v3365_v7  ;;  %1191 = vmatmul.mubr.bf16.vlgmr.msra.gmra.mrb[4].mxu1 %v3700_v38 }
  0x77   : > { %3108 = vmatprep.subr.bf16.mxu0 %v3522_v8  ;;  %3128 = vmatprep.mubr.msk.bf16.mxu1 %vm3523_vm0, %v3522_v8 }
  0x78   : > { %3122 = vmatprep.mubr.msk.bf16.mxu0 %vm3523_vm0, %v3522_v8 }
  0x7a   : > { %3109 = vmatpush3.bf16.msra.mxu0 %v3366_v9 }
  0x7b   : > { %3110 = vmatprep.subr.bf16.mxu0 %v3522_v8 }
  0x7e   : > { %3111 = vmatpush3.bf16.msra.mxu0 %v3367_v10 }
  0x7f   : > { %3112 = vmatprep.subr.bf16.mxu0 %v3522_v8 }
  0x82   : > { %3113 = vmatpush3.bf16.msra.mxu0 %v3368_v11 }
  0x83   : > { %3114 = vmatprep.subr.bf16.mxu0 %v3522_v8 }
  0x86   : > { %3115 = vmatpush3.bf16.msra.mxu0 %v3369_v12 }
  0x87   : > { %3116 = vmatprep.subr.bf16.mxu0 %v3522_v8 }
  0x8a   : > { %3117 = vmatpush3.bf16.msra.mxu0 %v3370_v13 }
  0x8b   : > { %3118 = vmatprep.subr.bf16.mxu0 %v3522_v8 }
  0x8e   : > { %3119 = vmatpush3.bf16.msra.mxu0 %v3371_v14 }
  0x8f   : > { %3120 = vmatprep.subr.bf16.mxu0 %v3522_v8 }
  0x92   : > { %3121 = vmatpush3.bf16.msra.mxu0 %v3372_v15 }
  0x93   : > { %3150 = vmatprep.subr.bf16.mxu0 %v3522_v8 }
  0x95   : > { %3123 = vmatmul.mubr.bf16.vlgmr.msra.gmra.mrb[8].mxu0 %v3700_v38 }
  0x96   : > { %3152 = vmatprep.mubr.msk.bf16.mxu0 %vm3523_vm0, %v3522_v8 }
 0x128   : > { %v3764_v16 = vpop.f32.mrb[0].mxu1  ;;  %v1063_v17 = vpop.f32.mrb[0].mxu0 }
 0x129   : > { %v1108_v18 = vpop.f32.mrb[1].mxu1  ;;  %v1065_v19 = vpop.f32.mrb[1].mxu0  ;;  %v1242_v25 = vpack.c.bf16 %v1063_v17, %v1063_v17 }
 0x12a   : > { %v1244_v20 = vpack.c.bf16 %v1108_v18, %v1108_v18  ;;  %v3766_v21 = vpop.f32.mrb[2].mxu1  ;;  %v1067_v22 = vpop.f32.mrb[2].mxu0  ;;  %v1448_v37 = vpack.c.bf16 %v1065_v19, %v1065_v19 }
 0x12b   : > { %v1112_v23 = vpop.f32.mrb[3].mxu1  ;;  %v3768_v24 = vpop.f32.mrb[3].mxu0  ;;  %v1243_v27 = vpack.c.bf16 %v1067_v22, %v1067_v22 }
 0x12c   : > { %3127 = vmatpush3.bf16.xpose.msra.mxu1 %v1244_v20  ;;  %v1245_v26 = vpack.c.bf16 %v1112_v23, %v1112_v23 }
 0x12d   : > { %3132 = vmatprep.subr.bf16.mxu1 %v3522_v8 }
 0x133   : > { %3129 = vmatmul.mubr.bf16.vlgmr.msra.gmra.mrb[8].mxu1 %v1242_v25 }
 0x134   : > { %3133 = vmatpush3.bf16.xpose.msra.mxu1 %v1245_v26  ;;  %3134 = vmatprep.mubr.msk.bf16.mxu1 %vm3523_vm0, %v3522_v8 }
 0x135   : > { %3138 = vmatprep.subr.bf16.mxu1 %v3522_v8 }
 0x13b   : > { %3135 = vmatmul.mubr.bf16.vlgmr.msra.gmra.mrb[12].mxu1 %v1243_v27 }
 0x13c   : > { %3140 = vmatprep.mubr.msk.bf16.mxu1 %vm3523_vm0, %v3522_v8 }
 0x148   : > { %v1149_v28 = vpop.f32.mrb[4].mxu0 }
 0x149   : > { %v1450_v29 = vpack.c.bf16 %v1149_v28, %v1149_v28  ;;  %v1192_v30 = vpop.f32.mrb[4].mxu1  ;;  %v3787_v39 = vpop.f32.mrb[5].mxu0 }
 0x14a   : > { %v1353_v31 = vpack.c.bf16 %v1192_v30, %v1192_v30  ;;  %v1194_v32 = vpop.f32.mrb[5].mxu1  ;;  %v3789_v40 = vpop.f32.mrb[6].mxu0 }
 0x14b   : > { %3151 = vmatpush3.bf16.xpose.msra.mxu0 %v1450_v29  ;;  %v1558_v33 = vpack.c.bf16 %v1194_v32, %v1194_v32  ;;  %v3776_v34 = vpop.f32.mrb[6].mxu1  ;;  %v3791_v41 = vpop.f32.mrb[7].mxu0  ;;  %v1451_v30 = vpack.c.bf16 %v3789_v40, %v3789_v40  ;;  %v1449_v32 = vpack.c.bf16 %v3768_v24, %v3768_v24  ;;  %v1652_v40 = vpack.c.bf16 %v3764_v16, %v3764_v16 }
 0x14c   : > { %3162 = vmatprep.subr.bf16.mxu0 %v3522_v8  ;;  %v1360_v35 = vsel %vm1358_vm1, %v1353_v31, 0  ;;  %v3780_v36 = vpop.f32.mrb[7].mxu1  ;;  %v1354_v22 = vpack.c.bf16 %v3776_v34, %v3776_v34 }
 0x14d   : > { %3139 = vmatpush3.bf16.msra.mxu1 %v1360_v35  ;;  %v1564_v38 = vsel %vm1358_vm1, %v1558_v33, 0  ;;  %v1559_v31 = vpack.c.bf16 %v3780_v36, %v3780_v36  ;;  %v1654_v36 = vpack.c.bf16 %v3787_v39, %v3787_v39 }
 0x14e   : > { %3144 = vmatprep.subr.bf16.mxu1 %v3522_v8  ;;  %v1406_v26 = vsel %vm1358_vm1, %v1354_v22, 0  ;;  %v1655_v22 = vpack.c.bf16 %v3791_v41, %v3791_v41 }
 0x14f   : > { %v1610_v34 = vsel %vm1358_vm1, %v1559_v31, 0  ;;  %v3377_v31 = vld [vmem:[%s3626_s0 + $0x50] sm:$0xff]  }
 0x152   : > { %3153 = vmatmul.mubr.bf16.vlgmr.msra.gmra.mrb[12].mxu0 %v1448_v37 }
 0x153   : > { %3163 = vmatpush3.bf16.msra.mxu0 %v1564_v38  ;;  %3164 = vmatprep.mubr.msk.bf16.mxu0 %vm3523_vm0, %v3522_v8 }
 0x154   : > { %3174 = vmatprep.subr.bf16.mxu0 %v3522_v8 }
 0x168   : > { %v3793_v42 = vpop.f32.mrb[8].mxu0 }
 0x169   : > { %v3124_v43 = vpop.f32.mrb[9].mxu0  ;;  %v1762_v24 = vpack.c.bf16 %v3793_v42, %v3793_v42 }
 0x16a   : > { %v3795_v44 = vpop.f32.mrb[10].mxu0 }
 0x16b   : > { %v3125_v45 = vpop.f32.mrb[11].mxu0  ;;  %v1768_v43 = vsel %vm1358_vm1, %v1762_v24, 0  ;;  %v3385_v24 = vld [vmem:[%s3626_s0 + $0x70] sm:$0xff]  }
 0x206   : > { %v1280_v46 = vpop.f32.mrb[8].mxu1 }
 0x207   : > { %v1326_v47 = vmul.f32 0.25, %v1280_v46  ;;  %v3130_v48 = vpop.f32.mrb[9].mxu1 }
 0x208   : > { %v1283_v49 = vpop.f32.mrb[10].mxu1 }
 0x209   : > { %v3131_v50 = vpop.f32.mrb[11].mxu1  ;;  %v1329_v51 = vsel %vm1328_vm2, %v1326_v47, -inf }
 0x20a   : > { %1330 = vmax.xlane.f32.xlu0 %v1329_v51 }
 0x20e   : > { %v1320_v52 = vpop.f32.mrb[12].mxu1 }
 0x20f   : > { %v1327_v53 = vmul.f32 0.25, %v1320_v52  ;;  %v3136_v54 = vpop.f32.mrb[13].mxu1 }
 0x210   : > { %v1323_v55 = vpop.f32.mrb[14].mxu1 }
 0x211   : > { %v3137_v56 = vpop.f32.mrb[15].mxu1  ;;  %v1332_v57 = vsel %vm1328_vm2, %v1327_v53, -inf }
 0x212   : > { %1333 = vmax.xlane.f32.xlu0 %v1332_v57 }
 0x225   : > { %v1486_v58 = vpop.f32.mrb[12].mxu0 }
 0x226   : > { %v1532_v59 = vmul.f32 0.25, %v1486_v58  ;;  %v3154_v60 = vpop.f32.mrb[13].mxu0 }
 0x227   : > { %v1489_v61 = vpop.f32.mrb[14].mxu0 }
 0x228   : > { %v3155_v62 = vpop.f32.mrb[15].mxu0  ;;  %v1534_v63 = vsel %vm1328_vm2, %v1532_v59, -inf }
 0x229   : > { %1535 = vmax.xlane.f32.xlu0 %v1534_v63 }
 0x297   : > { %v1331_v0 = vpop.xlane.xlu0 %1330 }
 0x298   : > { %v1335_v1 = vsub.f32 %v1326_v47, %v1331_v0 }
 0x29a   : > { %v1337_v2 = vmul.f32 1.442695, %v1335_v1 }
 0x29c   : > { %3437 = vpow2.f32 %v1337_v2 }
 0x29f   : > { %v1334_v3 = vpop.xlane.xlu0 %1333 }
 0x2a0   : > { %v1336_v5 = vsub.f32 %v1327_v53, %v1334_v3 }
 0x2a2   : > { %v1339_v6 = vmul.f32 1.442695, %v1336_v5 }
 0x2a4   : > { %3439 = vpow2.f32 %v1339_v6 }
 0x2a6   : > { %v3438_v7 = vpop.eup %3437 }
 0x2a7   : > { %v1341_v9 = vsel %vm1328_vm2, %v3438_v7, 0.0 }
 0x2a8   : > { %1342 = vadd.xlane.f32.xlu1 %v1341_v9 }
 0x2ae   : > { %v3440_v10 = vpop.eup %3439 }
 0x2af   : > { %v1344_v11 = vsel %vm1328_vm2, %v3440_v10, 0.0 }
 0x2b0   : > { %1345 = vadd.xlane.f32.xlu1 %v1344_v11 }
 0x2b6   : > { %v1536_v12 = vpop.xlane.xlu0 %1535 }
 0x2b7   : > { %v1540_v13 = vsub.f32 %v1532_v59, %v1536_v12 }
 0x2b9   : > { %v1542_v14 = vmul.f32 1.442695, %v1540_v13 }
 0x2bb   : > { %3441 = vpow2.f32 %v1542_v14 }
 0x2c5   : > { %v3442_v15 = vpop.eup %3441 }
 0x2c6   : > { %v1546_v17 = vsel %vm1328_vm2, %v3442_v15, 0.0 }
 0x2c7   : > { %1547 = vadd.xlane.f32.xlu0 %v1546_v17 }
 0x335   : > { %v1343_v18 = vpop.xlane.xlu1 %1342 }
 0x336   : > { %3443 = vrcp.f32 %v1343_v18 }
 0x33d   : > { %v1346_v19 = vpop.xlane.xlu1 %1345 }
 0x33e   : > { %3445 = vrcp.f32 %v1346_v19 }
 0x340   : > { %v3444_v20 = vpop.eup %3443 }
 0x341   : > { %v1349_v23 = vmul.f32 %v3444_v20, %v3438_v7 }
 0x343   : > { %v1351_v25 = vpack.c.bf16 %v1349_v23, %v1349_v23  ;;  %v1763_v23 = vpack.c.bf16 %v3795_v44, %v3795_v44 }
 0x345   : > { %3141 = vmatmul.mubr.msk.bf16.vlgmr.msra.gmra.mrb[16].mxu1 %vm1328_vm2, %v1351_v25  ;;  %v1653_v25 = vpack.c.bf16 %v3766_v21, %v3766_v21  ;;  %v1814_v41 = vsel %vm1358_vm1, %v1763_v23, 0 }
 0x346   : > { %3145 = vmatpush3.bf16.msra.mxu1 %v1406_v26  ;;  %3146 = vmatprep.mubr.msk.bf16.mxu1 %vm3523_vm0, %v3522_v8 }
 0x347   : > { %3156 = vmatprep.subr.bf16.mxu1 %v3522_v8 }
 0x348   : > { %v3446_v27 = vpop.eup %3445 }
 0x349   : > { %v1350_v28 = vmul.f32 %v3446_v27, %v3440_v10 }
 0x34b   : > { %v1352_v29 = vpack.c.bf16 %v1350_v28, %v1350_v28  ;;  %v3374_v28 = vld [vmem:[%s3626_s0] sm:$0xff]  }
 0x34d   : > { %3147 = vmatmul.mubr.msk.bf16.vlgmr.msra.gmra.mrb[20].mxu1 %vm1328_vm2, %v1352_v29  ;;  %v3375_v29 = vld [vmem:[%s3626_s0 + $0x48] sm:$0xff]  }
 0x34e   : > { %3158 = vmatprep.mubr.msk.bf16.mxu1 %vm3523_vm0, %v3522_v8 }
 0x34f   : > { %3157 = vmatpush3.bf16.xpose.msra.mxu1 %v1451_v30  ;;  %v3376_v30 = vld [vmem:[%s3626_s0 + $0x8] sm:$0xff]  }
 0x350   : > { %3168 = vmatprep.subr.bf16.mxu1 %v3522_v8 }
 0x354   : > { %v1548_v33 = vpop.xlane.xlu0 %1547 }
 0x355   : > { %3447 = vrcp.f32 %v1548_v33  ;;  %v3379_v33 = vld [vmem:[%s3626_s0 + $0x58] sm:$0xff]  }
 0x356   : > { %3159 = vmatmul.mubr.bf16.vlgmr.msra.gmra.mrb[24].mxu1 %v1449_v32  ;;  %v3378_v32 = vld [vmem:[%s3626_s0 + $0x10] sm:$0xff]  }
 0x357   : > { %3169 = vmatpush3.bf16.msra.mxu1 %v1610_v34  ;;  %3170 = vmatprep.mubr.msk.bf16.mxu1 %vm3523_vm0, %v3522_v8  ;;  %v3380_v34 = vld [vmem:[%s3626_s0 + $0x18] sm:$0xff]  }
 0x358   : > { %3180 = vmatprep.subr.bf16.mxu1 %v3522_v8 }
 0x35f   : > { %v3448_v35 = vpop.eup %3447 }
 0x360   : > { %v1554_v37 = vmul.f32 %v3448_v35, %v3442_v15  ;;  %v3373_v15 = vld [vmem:[%s3626_s0 + $0x40] sm:$0xff]  }
 0x361   : > { %v3381_v35 = vld [vmem:[%s3626_s0 + $0x60] sm:$0xff]  }
 0x362   : > { %v1556_v38 = vpack.c.bf16 %v1554_v37, %v1554_v37  ;;  %v3382_v37 = vld [vmem:[%s3626_s0 + $0x20] sm:$0xff]  }
 0x364   : > { %3165 = vmatmul.mubr.msk.bf16.vlgmr.msra.gmra.mrb[16].mxu0 %vm1328_vm2, %v1556_v38  ;;  %v3383_v38 = vld [vmem:[%s3626_s0 + $0x68] sm:$0xff]  }
 0x365   : > { %3175 = vmatpush3.bf16.xpose.msra.mxu0 %v1654_v36  ;;  %3176 = vmatprep.mubr.msk.bf16.mxu0 %vm3523_vm0, %v3522_v8  ;;  %v3384_v36 = vld [vmem:[%s3626_s0 + $0x28] sm:$0xff]  }
 0x366   : > { %3186 = vmatprep.subr.bf16.mxu0 %v3522_v8 }
 0x36c   : > { %3177 = vmatmul.mubr.bf16.vlgmr.msra.gmra.mrb[20].mxu0 %v1652_v40  ;;  %v3386_v40 = vld [vmem:[%s3626_s0 + $0x30] sm:$0xff]  }
 0x36d   : > { %3187 = vmatpush3.bf16.msra.mxu0 %v1768_v43  ;;  %3188 = vmatprep.mubr.msk.bf16.mxu0 %vm3523_vm0, %v3522_v8  ;;  %v3387_v43 = vld [vmem:[%s3626_s0 + $0x78] sm:$0xff]  }
 0x36e   : > { %3053 = vmatprep.subr.bf16.mxu0 %v3373_v15  ;;  %v3394_v15 = vld [vmem:[%s3626_s0 + $0xa8] sm:$0xff]  }
 0x418   : > { %v3837_v39 = vpop.f32.mrb[16].mxu1 }
 0x419   : > { %v3142_v45 = vpop.f32.mrb[17].mxu1 }
 0x41a   : > { %v1399_v46 = vpop.f32.mrb[18].mxu1  ;;  %v3388_v45 = vld [vmem:[%s3626_s0 + $0x38] sm:$0xff]  }
 0x41b   : > { %v3143_v47 = vpop.f32.mrb[19].mxu1 }
 0x420   : > { %v3839_v48 = vpop.f32.mrb[20].mxu1 }
 0x421   : > { %v1910_v42 = vpack.c.bf16 %v3839_v48, %v3837_v39  ;;  %v3148_v49 = vpop.f32.mrb[21].mxu1 }
 0x422   : > { %v1445_v50 = vpop.f32.mrb[22].mxu1 }
 0x423   : > { %v3149_v16 = vpop.f32.mrb[23].mxu1 }
 0x429   : > { %v1526_v51 = vpop.f32.mrb[24].mxu1 }
 0x42a   : > { %v1533_v52 = vmul.f32 0.25, %v1526_v51  ;;  %v3160_v53 = vpop.f32.mrb[25].mxu1 }
 0x42b   : > { %v1529_v54 = vpop.f32.mrb[26].mxu1 }
 0x42c   : > { %v3161_v55 = vpop.f32.mrb[27].mxu1  ;;  %v1537_v56 = vsel %vm1328_vm2, %v1533_v52, -inf }
 0x42d   : > { %1538 = vmax.xlane.f32.xlu1 %v1537_v56 }
 0x437   : > { %v3844_v57 = vpop.f32.mrb[16].mxu0 }
 0x438   : > { %v3166_v58 = vpop.f32.mrb[17].mxu0 }
 0x439   : > { %v1603_v59 = vpop.f32.mrb[18].mxu0 }
 0x43a   : > { %v3167_v60 = vpop.f32.mrb[19].mxu0 }
 0x43f   : > { %v1690_v61 = vpop.f32.mrb[20].mxu0 }
 0x440   : > { %v1736_v62 = vmul.f32 0.25, %v1690_v61  ;;  %v3178_v63 = vpop.f32.mrb[21].mxu0 }
 0x441   : > { %v1693_v0 = vpop.f32.mrb[22].mxu0 }
 0x442   : > { %v3179_v1 = vpop.f32.mrb[23].mxu0  ;;  %v1738_v2 = vsel %vm1328_vm2, %v1736_v62, -inf }
 0x443   : > { %1739 = vmax.xlane.f32.xlu0 %v1738_v2 }
 0x4ba   : > { %v1539_v3 = vpop.xlane.xlu1 %1538 }
 0x4bb   : > { %v1541_v5 = vsub.f32 %v1533_v52, %v1539_v3 }
 0x4bd   : > { %v1544_v6 = vmul.f32 1.442695, %v1541_v5 }
 0x4bf   : > { %3449 = vpow2.f32 %v1544_v6 }
 0x4c9   : > { %v3450_v7 = vpop.eup %3449 }
 0x4ca   : > { %v1549_v9 = vsel %vm1328_vm2, %v3450_v7, 0.0 }
 0x4cb   : > { %1550 = vadd.xlane.f32.xlu1 %v1549_v9  ;;  %v3389_v9 = vld [vmem:[%s3626_s0 + $0x80] sm:$0xff]  }
 0x4d0   : > { %v1740_v10 = vpop.xlane.xlu0 %1739 }
 0x4d1   : > { %v1744_v11 = vsub.f32 %v1736_v62, %v1740_v10 }
 0x4d3   : > { %v1746_v12 = vmul.f32 1.442695, %v1744_v11  ;;  %v3390_v11 = vld [vmem:[%s3626_s0 + $0x88] sm:$0xff]  }
 0x4d5   : > { %3451 = vpow2.f32 %v1746_v12  ;;  %v3391_v12 = vld [vmem:[%s3626_s0 + $0x90] sm:$0xff]  }
 0x4df   : > { %v3452_v13 = vpop.eup %3451 }
 0x4e0   : > { %v1750_v14 = vsel %vm1328_vm2, %v3452_v13, 0.0 }
 0x4e1   : > { %1751 = vadd.xlane.f32.xlu0 %v1750_v14  ;;  %v3393_v14 = vld [vmem:[%s3626_s0 + $0xa0] sm:$0xff]  }
 0x558   : > { %v1551_v17 = vpop.xlane.xlu1 %1550 }
 0x559   : > { %3453 = vrcp.f32 %v1551_v17  ;;  %v3395_v17 = vld [vmem:[%s3626_s0 + $0xb0] sm:$0xff]  }
 0x563   : > { %v3454_v18 = vpop.eup %3453 }
 0x564   : > { %v1555_v19 = vmul.f32 %v3454_v18, %v3450_v7  ;;  %v3396_v18 = vld [vmem:[%s3626_s0 + $0xb8] sm:$0xff]  }
 0x566   : > { %v1557_v20 = vpack.c.bf16 %v1555_v19, %v1555_v19 }
 0x568   : > { %3171 = vmatmul.mubr.msk.bf16.vlgmr.msra.gmra.mrb[28].mxu1 %vm1328_vm2, %v1557_v20 }
 0x569   : > { %3181 = vmatpush3.bf16.xpose.msra.mxu1 %v1655_v22  ;;  %3182 = vmatprep.mubr.msk.bf16.mxu1 %vm3523_vm0, %v3522_v8 }
 0x56a   : > { %3192 = vmatprep.subr.bf16.mxu1 %v3522_v8 }
 0x56e   : > { %v1752_v26 = vpop.xlane.xlu0 %1751 }
 0x56f   : > { %3455 = vrcp.f32 %v1752_v26  ;;  %v2952_v26 = vld [vmem:[%s3662_s26] ss:$0 sm:$0xff] }
 0x570   : > { %3183 = vmatmul.mubr.bf16.vlgmr.msra.gmra.mrb[32].mxu1 %v1653_v25 }
 0x571   : > { %3193 = vmatpush3.bf16.msra.mxu1 %v1814_v41  ;;  %3194 = vmatprep.mubr.msk.bf16.mxu1 %vm3523_vm0, %v3522_v8 }
 0x572   : > { %3198 = vmatprep.subr.bf16.mxu1 %v3522_v8 }
 0x579   : > { %v3456_v44 = vpop.eup %3455 }
 0x57a   : > { %v1758_v27 = vmul.f32 %v3456_v44, %v3452_v13  ;;  %v3392_v13 = vld [vmem:[%s3626_s0 + $0x98] sm:$0xff]  }
 0x57c   : > { %v1760_v21 = vpack.c.bf16 %v1758_v27, %v1758_v27 }
 0x57e   : > { %3189 = vmatmul.mubr.msk.bf16.vlgmr.msra.gmra.mrb[24].mxu0 %vm1328_vm2, %v1760_v21 }
 0x57f   : > { %3054 = vmatpush3.bf16.msra.mxu0 %v3374_v28 }
 0x580   : > { %3055 = vmatprep.subr.bf16.mxu0 %v3375_v29 }
 0x583   : > { %3056 = vmatpush3.bf16.msra.mxu0 %v3376_v30  ;;  %v3469_v30 = vld [vmem:[#allocation2] sm:$0xff] }
 0x584   : > { %3057 = vmatprep.subr.bf16.mxu0 %v3377_v31 }
 0x587   : > { %3058 = vmatpush3.bf16.msra.mxu0 %v3378_v32 }
 0x588   : > { %3059 = vmatprep.subr.bf16.mxu0 %v3379_v33  ;;  %v3470_v33 = vld [vmem:[#allocation2 + $0x8] sm:$0xff] }
 0x58b   : > { %3060 = vmatpush3.bf16.msra.mxu0 %v3380_v34 }
 0x58c   : > { %3061 = vmatprep.subr.bf16.mxu0 %v3381_v35 }
 0x58f   : > { %3062 = vmatpush3.bf16.msra.mxu0 %v3382_v37 }
 0x590   : > { %3063 = vmatprep.subr.bf16.mxu0 %v3383_v38  ;;  %v3399_v38 = vld [vmem:[%s3631_s25 + $0x4] ss:$8 sps:$4 sm:$0xff]  }
 0x593   : > { %3064 = vmatpush3.bf16.msra.mxu0 %v3384_v36  ;;  %v3397_v36 = vld [vmem:[%s3631_s25] ss:$8 sps:$4 sm:$0xff]  }
 0x594   : > { %3065 = vmatprep.subr.bf16.mxu0 %v3385_v24  ;;  %v3402_v24 = vld [vmem:[%s3631_s25 + $0x14] ss:$8 sps:$4 sm:$0xff]  }
 0x597   : > { %3066 = vmatpush3.bf16.msra.mxu0 %v3386_v40  ;;  %v3400_v40 = vld [vmem:[%s3631_s25 + $0x10] ss:$8 sps:$4 sm:$0xff]  }
 0x598   : > { %3067 = vmatprep.subr.bf16.mxu0 %v3387_v43  ;;  %v3405_v43 = vld [vmem:[%s3631_s25 + $0x24] ss:$8 sps:$4 sm:$0xff]  }
 0x59b   : > { %3068 = vmatpush3.bf16.msra.mxu0 %v3388_v45  ;;  %v3403_v45 = vld [vmem:[%s3631_s25 + $0x20] ss:$8 sps:$4 sm:$0xff]  }
 0x59c   : > { %2294 = vmatprep.subr.bf16.mxu0 %v3399_v38  ;;  %v2202_v38 = vld [vmem:[%s541_s22] sm:$0x3] }
 0x63b   : > { %v1646_v46 = vpop.f32.mrb[28].mxu1 }
 0x63c   : > { %v1911_v47 = vpack.c.bf16 %v1646_v46, %v3844_v57  ;;  %v3172_v49 = vpop.f32.mrb[29].mxu1  ;;  %v3408_v46 = vld [vmem:[%s3631_s25 + $0x34] ss:$8 sps:$4 sm:$0xff]  }
 0x63d   : > { %v1649_v50 = vpop.f32.mrb[30].mxu1  ;;  %v3411_v49 = vld [vmem:[%s3631_s25 + $0x44] ss:$8 sps:$4 sm:$0xff]  }
 0x63e   : > { %v3173_v16 = vpop.f32.mrb[31].mxu1  ;;  %2093 = vmatprep.mubr.bf16.mxu0 %v1911_v47  ;;  %v3406_v47 = vld [vmem:[%s3631_s25 + $0x30] ss:$8 sps:$4 sm:$0xff]   ;;  %v3409_v50 = vld [vmem:[%s3631_s25 + $0x40] ss:$8 sps:$4 sm:$0xff]  }
 0x63f   : > { %2094 = vmatmul.mubr.bf16.vlgmr.msra.gmra.mrb[28].mxu0 %v1910_v42  ;;  %v3414_v16 = vld [vmem:[%s3631_s25 + $0x54] ss:$8 sps:$4 sm:$0xff]  }
 0x640   : > { %2326 = vmatprep.mubr.bf16.mxu0 %v3521_v4  ;;  %2295 = vmatpush1.bf16.msra.mxu0 %v3397_v36 }
 0x641   : > { %2296 = vmatprep.subr.bf16.mxu0 %v3402_v24 }
 0x643   : > { %v1730_v51 = vpop.f32.mrb[32].mxu1 }
 0x644   : > { %v1737_v52 = vmul.f32 0.25, %v1730_v51  ;;  %v3184_v53 = vpop.f32.mrb[33].mxu1  ;;  %2297 = vmatpush1.bf16.msra.mxu0 %v3400_v40  ;;  %v3412_v51 = vld [vmem:[%s3631_s25 + $0x50] ss:$8 sps:$4 sm:$0xff]  }
 0x645   : > { %v1733_v54 = vpop.f32.mrb[34].mxu1  ;;  %2298 = vmatprep.subr.bf16.mxu0 %v3405_v43  ;;  %v3415_v53 = vld [vmem:[%s3631_s25 + $0x60] ss:$8 sps:$4 sm:$0xff]  }
 0x646   : > { %v3185_v55 = vpop.f32.mrb[35].mxu1  ;;  %v1741_v56 = vsel %vm1328_vm2, %v1737_v52, -inf  ;;  %v3420_v54 = vld [vmem:[%s3631_s25 + $0x74] ss:$8 sps:$4 sm:$0xff]  }
 0x647   : > { %1742 = vmax.xlane.f32.xlu1 %v1741_v56  ;;  %v3418_v55 = vld [vmem:[%s3631_s25 + $0x70] ss:$8 sps:$4 sm:$0xff]   ;;  %v3421_v56 = vld [vmem:[%s3637_s27 + $0x40] sm:$0xff]  }
 0x648   : > { %2299 = vmatpush1.bf16.msra.mxu0 %v3403_v45 }
 0x649   : > { %2300 = vmatprep.subr.bf16.mxu0 %v3408_v46 }
 0x64c   : > { %2301 = vmatpush1.bf16.msra.mxu0 %v3406_v47 }
 0x64d   : > { %2302 = vmatprep.subr.bf16.mxu0 %v3411_v49 }
 0x650   : > { %2303 = vmatpush1.bf16.msra.mxu0 %v3409_v50 }
 0x651   : > { %v1804_v58 = vpop.f32.mrb[24].mxu0  ;;  %2304 = vmatprep.subr.bf16.mxu0 %v3414_v16 }
 0x652   : > { %v3190_v57 = vpop.f32.mrb[25].mxu0 }
 0x653   : > { %v1807_v59 = vpop.f32.mrb[26].mxu0  ;;  %v3423_v57 = vld [vmem:[%s3637_s27 + $0x48] sm:$0xff]  }
 0x654   : > { %v3191_v60 = vpop.f32.mrb[27].mxu0  ;;  %2305 = vmatpush1.bf16.msra.mxu0 %v3412_v51  ;;  %v3424_v59 = vld [vmem:[%s3637_s27 + $0x8] sm:$0xff]  }
 0x655   : > { %v3425_v60 = vld [vmem:[%s3637_s27 + $0x50] sm:$0xff]  }
 0x6d4   : > { %v1743_v61 = vpop.xlane.xlu1 %1742 }
 0x6d5   : > { %v1745_v62 = vsub.f32 %v1737_v52, %v1743_v61  ;;  %v3417_v52 = vld [vmem:[%s3631_s25 + $0x64] ss:$8 sps:$4 sm:$0xff]   ;;  %v3426_v61 = vld [vmem:[%s3637_s27 + $0x10] sm:$0xff]  }
 0x6d6   : > { %2306 = vmatprep.subr.bf16.mxu0 %v3417_v52 }
 0x6d7   : > { %v1748_v63 = vmul.f32 1.442695, %v1745_v62  ;;  %2307 = vmatpush1.bf16.msra.mxu0 %v3415_v53  ;;  %v3427_v62 = vld [vmem:[%s3637_s27 + $0x58] sm:$0xff]  }
 0x6d8   : > { %2308 = vmatprep.subr.bf16.mxu0 %v3420_v54 }
 0x6d9   : > { %3457 = vpow2.f32 %v1748_v63  ;;  %v3428_v63 = vld [vmem:[%s3637_s27 + $0x18] sm:$0xff]  }
 0x6db   : > { %2309 = vmatpush1.bf16.msra.mxu0 %v3418_v55 }
 0x6e3   : > { %v3458_v39 = vpop.eup %3457 }
 0x6e4   : > { %v1753_v4 = vsel %vm1328_vm2, %v3458_v39, 0.0 }
 0x6e5   : > { %1754 = vadd.xlane.f32.xlu1 %v1753_v4  ;;  %v3430_v4 = vld [vmem:[%s3637_s27 + $0x20] sm:$0xff]  }
 0x712   : > { %v3069_v48 = vpop.f32.mrb[28].mxu0 }
 0x713   : > { %v3070_v42 = vpop.f32.mrb[29].mxu0 }
 0x714   : > { %v3071_v0 = vadd.f32 %v3070_v42, %v3069_v48  ;;  %v3072_v1 = vpop.f32.mrb[30].mxu0  ;;  %v3431_v48 = vld [vmem:[%s3637_s27 + $0x68] sm:$0xff]  }
 0x715   : > { %v3073_v2 = vpop.f32.mrb[31].mxu0 }
 0x716   : > { %v3074_v3 = vadd.f32 %v3073_v2, %v3072_v1  ;;  %v2096_v41 = vadd.f32 %v3071_v0, %v2952_v26 }
 0x718   : > { %v2099_v21 = vadd.f32 %v3074_v3, %v2952_v26 }
 0x772   : > { %v1755_v5 = vpop.xlane.xlu1 %1754 }
 0x773   : > { %3459 = vrcp.f32 %v1755_v5 }
 0x77d   : > { %v3460_v6 = vpop.eup %3459 }
 0x77e   : > { %v1759_v7 = vmul.f32 %v3460_v6, %v3458_v39  ;;  %v3429_v39 = vld [vmem:[%s3637_s27 + $0x60] sm:$0xff]  }
 0x780   : > { %v1761_v10 = vpack.c.bf16 %v1759_v7, %v1759_v7 }
 0x782   : > { %3195 = vmatmul.mubr.msk.bf16.vlgmr.msra.gmra.mrb[36].mxu1 %vm1328_vm2, %v1761_v10 }
 0x783   : > { %3199 = vmatpush3.bf16.msra.mxu1 %v3389_v9  ;;  %3214 = vmatprep.mubr.msk.bf16.mxu1 %vm3523_vm0, %v3522_v8 }
 0x784   : > { %3200 = vmatprep.subr.bf16.mxu1 %v3522_v8 }
 0x787   : > { %3201 = vmatpush3.bf16.msra.mxu1 %v3390_v11 }
 0x788   : > { %3202 = vmatprep.subr.bf16.mxu1 %v3522_v8 }
 0x78b   : > { %3203 = vmatpush3.bf16.msra.mxu1 %v3391_v12 }
 0x78c   : > { %3204 = vmatprep.subr.bf16.mxu1 %v3522_v8 }
 0x78f   : > { %3205 = vmatpush3.bf16.msra.mxu1 %v3392_v13 }
 0x790   : > { %3206 = vmatprep.subr.bf16.mxu1 %v3522_v8 }
 0x793   : > { %3207 = vmatpush3.bf16.msra.mxu1 %v3393_v14 }
 0x794   : > { %3208 = vmatprep.subr.bf16.mxu1 %v3522_v8 }
 0x797   : > { %3209 = vmatpush3.bf16.msra.mxu1 %v3394_v15 }
 0x798   : > { %3210 = vmatprep.subr.bf16.mxu1 %v3522_v8 }
 0x79b   : > { %3211 = vmatpush3.bf16.msra.mxu1 %v3395_v17 }
 0x79c   : > { %3212 = vmatprep.subr.bf16.mxu1 %v3522_v8 }
 0x79f   : > { %3213 = vmatpush3.bf16.msra.mxu1 %v3396_v18 }
 0x7a0   : > { %3084 = vmatprep.subr.bf16.mxu1 %v3421_v56 }
 0x855   : > { %v1850_v19 = vpop.f32.mrb[36].mxu1 }
 0x856   : > { %v1912_v20 = vpack.c.bf16 %v1850_v19, %v1804_v58  ;;  %v3196_v22 = vpop.f32.mrb[37].mxu1  ;;  %v3422_v58 = vld [vmem:[%s3637_s27] sm:$0xff]  }
 0x857   : > { %v1853_v23 = vpop.f32.mrb[38].mxu1 }
 0x858   : > { %v3197_v25 = vpop.f32.mrb[39].mxu1  ;;  %3215 = vmatmul.mubr.bf16.vlgmr.msra.gmra.mrb[40].mxu1 %v1912_v20  ;;  %v2977_v20 = vld [vmem:[%s3662_s26 + $0x1] ss:$0 sm:$0xff] }
 0x859   : > { %3085 = vmatpush3.bf16.msra.mxu1 %v3422_v58 }
 0x85a   : > { %3086 = vmatprep.subr.bf16.mxu1 %v3423_v57 }
 0x85d   : > { %3087 = vmatpush3.bf16.msra.mxu1 %v3424_v59  ;;  %v2995_v59 = vld [vmem:[%s3662_s26 + $0x3] ss:$0 sm:$0xff] }
 0x85e   : > { %3088 = vmatprep.subr.bf16.mxu1 %v3425_v60 }
 0x861   : > { %3089 = vmatpush3.bf16.msra.mxu1 %v3426_v61 }
 0x862   : > { %3090 = vmatprep.subr.bf16.mxu1 %v3427_v62 }
 0x865   : > { %3091 = vmatpush3.bf16.msra.mxu1 %v3428_v63 }
 0x866   : > { %3092 = vmatprep.subr.bf16.mxu1 %v3429_v39 }
 0x869   : > { %3093 = vmatpush3.bf16.msra.mxu1 %v3430_v4 }
 0x86a   : > { %3094 = vmatprep.subr.bf16.mxu1 %v3431_v48 }
 0x92b   : > { %v2136_v44 = vpop.f32.mrb[40].mxu1 }
 0x92c   : > { %v2137_v27 = vadd.f32 %v2136_v44, %v2096_v41  ;;  %v3216_v28 = vpop.f32.mrb[41].mxu1  ;;  %v2978_v44 = vld [vmem:[%s3662_s26 + $0x2] ss:$0 sm:$0xff] }
 0x92d   : > { %v2139_v29 = vpop.f32.mrb[42].mxu1 }
 0x92e   : > { %v3906_v8 = vadd.f32 %v3469_v30, %v2137_v27  ;;  %v2140_v31 = vadd.f32 %v2139_v29, %v2099_v21  ;;  %v3217_v32 = vpop.f32.mrb[43].mxu1  ;;  %v3432_v30 = vld [vmem:[%s3637_s27 + $0x28] sm:$0xff]  }
 0x92f   : > { %3095 = vmatpush3.bf16.msra.mxu1 %v3432_v30  ;;  %v3435_v32 = vld [vmem:[%s3637_s27 + $0x78] sm:$0xff]  }
 0x930   : > { %v3908_v34 = vadd.f32 %v3470_v33, %v2140_v31  ;;  %2145 = vadd.xlane.f32.xlu0 %v3906_v8  ;;  %v2151_v35 = vmul.f32 %v3906_v8, %v3906_v8  ;;  %v3434_v31 = vld [vmem:[%s3637_s27 + $0x30] sm:$0xff]   ;;  %v3436_v33 = vld [vmem:[%s3637_s27 + $0x38] sm:$0xff]  }
 0x932   : > { %2147 = vadd.xlane.f32.xlu1 %v3908_v34  ;;  %v2152_v37 = vmul.f32 %v3908_v34, %v3908_v34 }
 0x934   : > { %2153 = vadd.xlane.f32.xlu0 %v2151_v35 }
 0x936   : > { %2155 = vadd.xlane.f32.xlu1 %v2152_v37 }
 0x9bd   : > { %v2146_v42 = vpop.xlane.xlu0 %2145 }
 0x9be   : > { %v2149_v0 = vmul.f32 0.020833334, %v2146_v42 }
 0x9bf   : > { %v2148_v1 = vpop.xlane.xlu1 %2147 }
 0x9c0   : > { %v2150_v2 = vmul.f32 0.020833334, %v2148_v1  ;;  %v2159_v5 = vmul.f32 %v2149_v0, %v2149_v0  ;;  %v2165_v18 = vsub.f32 %v3906_v8, %v2149_v0  ;;  %v3433_v8 = vld [vmem:[%s3637_s27 + $0x70] sm:$0xff]  }
 0x9c1   : > { %v2154_v3 = vpop.xlane.xlu0 %2153  ;;  %3096 = vmatprep.subr.bf16.mxu1 %v3433_v8 }
 0x9c2   : > { %v2157_v6 = vmul.f32 0.020833334, %v2154_v3  ;;  %v2160_v9 = vmul.f32 %v2150_v2, %v2150_v2  ;;  %v2166_v22 = vsub.f32 %v3908_v34, %v2150_v2  ;;  %3097 = vmatpush3.bf16.msra.mxu1 %v3434_v31  ;;  %v2204_v34 = vlaneseq }
 0x9c3   : > { %v2156_v7 = vpop.xlane.xlu1 %2155  ;;  %3098 = vmatprep.subr.bf16.mxu1 %v3435_v32  ;;  %v3015_v32 = vld [vmem:[%s4031_s21] ss:$0 sm:$0xff] (!%p3014_p8) }
 0x9c4   : > { %v2161_v10 = vsub.f32 %v2157_v6, %v2159_v5  ;;  %v2158_v11 = vmul.f32 0.020833334, %v2156_v7  ;;  %v2205_v35 = vshrl.u32 %v2204_v34, 7 }
 0x9c6   : > { %v2163_v12 = vmax.f32 %v2161_v10, 0.0  ;;  %v2162_v13 = vsub.f32 %v2158_v11, %v2160_v9  ;;  %3099 = vmatpush3.bf16.msra.mxu1 %v3436_v33  ;;  %v2206_v37 = vsub.s32 0, %v2205_v35  ;;  %v2210_v36 = vsub.s32 1, %v2205_v35 }
 0x9c7   : > { %v3524_v35 = vmov (!%p3014_p8), 0  }
 0x9c8   : > { %v2167_v14 = vadd.f32 1e-05, %v2163_v12  ;;  %v2164_v15 = vmax.f32 %v2162_v13, 0.0  ;;  %v2207_v24 = vrot.slane %v2202_v38, %v2206_v37  ;;  %v2211_v40 = vrot.slane %v2202_v38, %v2210_v36  ;;  %3471 = vset.pattern.permute.xlu1 (!%p3014_p8), %v3524_v35  ;;  %3472 = vset.pattern.permute.xlu0 (!%p3014_p8), %v3524_v35  ;;  %v3016_v37 = vld [vmem:[%s564_s20] ss:$0 sm:$0xff] (!%p3014_p8) }
 0x9ca   : > { %3461 = vrsqrt.f32 %v2167_v14  ;;  %v2168_v17 = vadd.f32 1e-05, %v2164_v15 }
 0x9cc   : > { %3463 = vrsqrt.f32 %v2168_v17 }
 0x9d4   : > { %v3462_v19 = vpop.eup %3461 }
 0x9d5   : > { %v2171_v23 = vmul.f32 %v3462_v19, %v2165_v18 }
 0x9d6   : > { %v3464_v25 = vpop.eup %3463 }
 0x9d7   : > { %v2172_v26 = vmul.f32 %v3464_v25, %v2166_v22  ;;  %v2177_v41 = vmul.f32 %v2977_v20, %v2171_v23 }
 0x9d9   : > { %v2178_v27 = vmul.f32 %v2977_v20, %v2172_v26  ;;  %v2183_v28 = vadd.f32 %v2978_v44, %v2177_v41  ;;  %v3012_v26 = vld [vmem:[%s3662_s26 + $0x4] ss:$0 sm:$0xff] }
 0x9db   : > { %v2184_v21 = vadd.f32 %v2978_v44, %v2178_v27 }
 0x9dd   : > { %v2201_v29 = vpack.c.bf16 %v2184_v21, %v2183_v28 }
 0x9df   : > { %2327 = vmatmul.mubr.bf16.vlgmr.msra.gmra.mrb[32].mxu0 %v2201_v29 }
 0xab2   : > { %v2328_v43 = vpop.f32.mrb[32].mxu0 }
 0xab3   : > { %v2329_v45 = vadd.f32 %v2328_v43, %v2207_v24  ;;  %v2330_v46 = vpop.f32.mrb[33].mxu0 }
 0xab4   : > { %v2331_v47 = vadd.f32 %v2330_v46, %v2211_v40  ;;  %v2332_v49 = vpop.f32.mrb[34].mxu0 }
 0xab5   : > { %v2333_v50 = vadd.f32 %v2332_v49, %v2207_v24  ;;  %v2334_v16 = vpop.f32.mrb[35].mxu0  ;;  %v2337_v52 = vmax.f32 %v2329_v45, 0.0 }
 0xab6   : > { %v2335_v51 = vadd.f32 %v2334_v16, %v2211_v40  ;;  %v2338_v54 = vmax.f32 %v2331_v47, 0.0 }
 0xab7   : > { %v2339_v53 = vmax.f32 %v2333_v50, 0.0 }
 0xab8   : > { %v2340_v55 = vmax.f32 %v2335_v51, 0.0 }
 0xab9   : > { %v2373_v56 = vpack.c.bf16 %v2339_v53, %v2337_v52 }
 0xaba   : > { %v2374_v58 = vpack.c.bf16 %v2340_v55, %v2338_v54 }
 0xabc   : > { %2507 = vmatprep.mubr.bf16.mxu1 %v2374_v58 }
 0xabd   : > { %2508 = vmatmul.mubr.bf16.vlgmr.msra.gmra.mrb[44].mxu1 %v2373_v56 }
 0xb90   : > { %v3100_v57 = vpop.f32.mrb[44].mxu1 }
 0xb91   : > { %v3101_v60 = vpop.f32.mrb[45].mxu1 }
 0xb92   : > { %v3102_v61 = vadd.f32 %v3101_v60, %v3100_v57  ;;  %v3103_v62 = vpop.f32.mrb[46].mxu1 }
 0xb93   : > { %v3104_v63 = vpop.f32.mrb[47].mxu1 }
 0xb94   : > { %v2510_v39 = vadd.f32 %v3102_v61, %v2995_v59  ;;  %v3105_v4 = vadd.f32 %v3104_v63, %v3103_v62 }
 0xb96   : > { %v2513_v48 = vadd.f32 %v3105_v4, %v2995_v59  ;;  %v2516_v42 = vadd.f32 %v2510_v39, %v2183_v28  ;;  %v3013_v28 = vld [vmem:[%s3662_s26 + $0x5] ss:$0 sm:$0xff] }
 0xb98   : > { %2518 = vadd.xlane.f32.xlu0 %v2516_v42  ;;  %v2517_v0 = vadd.f32 %v2513_v48, %v2184_v21  ;;  %v2524_v1 = vmul.f32 %v2516_v42, %v2516_v42 }
 0xb9a   : > { %2520 = vadd.xlane.f32.xlu1 %v2517_v0  ;;  %v2525_v2 = vmul.f32 %v2517_v0, %v2517_v0 }
 0xb9c   : > { %2526 = vadd.xlane.f32.xlu0 %v2524_v1 }
 0xb9e   : > { %2528 = vadd.xlane.f32.xlu1 %v2525_v2 }
 0xc25   : > { %v2519_v3 = vpop.xlane.xlu0 %2518 }
 0xc26   : > { %v2522_v5 = vmul.f32 0.020833334, %v2519_v3 }
 0xc27   : > { %v2521_v6 = vpop.xlane.xlu1 %2520 }
 0xc28   : > { %v2523_v7 = vmul.f32 0.020833334, %v2521_v6  ;;  %v2532_v10 = vmul.f32 %v2522_v5, %v2522_v5  ;;  %v2538_v23 = vsub.f32 %v2516_v42, %v2522_v5 }
 0xc29   : > { %v2527_v9 = vpop.xlane.xlu0 %2526 }
 0xc2a   : > { %v2530_v11 = vmul.f32 0.020833334, %v2527_v9  ;;  %v2533_v13 = vmul.f32 %v2523_v7, %v2523_v7  ;;  %v2539_v41 = vsub.f32 %v2517_v0, %v2523_v7 }
 0xc2b   : > { %v2529_v12 = vpop.xlane.xlu1 %2528 }
 0xc2c   : > { %v2534_v14 = vsub.f32 %v2530_v11, %v2532_v10  ;;  %v2531_v15 = vmul.f32 0.020833334, %v2529_v12 }
 0xc2e   : > { %v2536_v17 = vmax.f32 %v2534_v14, 0.0  ;;  %v2535_v18 = vsub.f32 %v2531_v15, %v2533_v13 }
 0xc30   : > { %v2540_v19 = vadd.f32 1e-05, %v2536_v17  ;;  %v2537_v20 = vmax.f32 %v2535_v18, 0.0 }
 0xc32   : > { %3465 = vrsqrt.f32 %v2540_v19  ;;  %v2541_v22 = vadd.f32 1e-05, %v2537_v20 }
 0xc34   : > { %3467 = vrsqrt.f32 %v2541_v22 }
 0xc3c   : > { %v3466_v25 = vpop.eup %3465 }
 0xc3d   : > { %v2544_v44 = vmul.f32 %v3466_v25, %v2538_v23 }
 0xc3e   : > { %v3468_v27 = vpop.eup %3467 }
 0xc3f   : > { %v2550_v21 = vmul.f32 %v3012_v26, %v2544_v44  ;;  %v2545_v29 = vmul.f32 %v3468_v27, %v2539_v41  ;;  %2563 = sbr.rel (%p3014_p8) target bundleno = 3487 (0xd9f), region = 64 }
 0xc41   : > { %v3960_v30 = vadd.f32 %v3013_v28, %v2550_v21  ;;  %v2551_v8 = vmul.f32 %v3012_v26, %v2545_v29 }
 0xc43   : > { %2558 = vst [vmem:[#allocation2] sm:$0xff] %v3960_v30  ;;  %v3963_v31 = vadd.f32 %v3013_v28, %v2551_v8  ;;  %v2571_v33 = vmul.f32 (!%p3014_p8), %v3015_v32, %v3960_v30 }
 0xc45   : > { %2559 = vst [vmem:[#allocation2 + $0x8] sm:$0xff] %v3963_v31  ;;  %2573 = vadd.xlane.f32.xlu0 (!%p3014_p8), %v2571_v33  ;;  %v2572_v34 = vmul.f32 (!%p3014_p8), %v3015_v32, %v3963_v31 }
 0xc49   : > { %2575 = vadd.xlane.f32.xlu0 %v2572_v34 }
 0xcd2   : > { %v2574_v38 = vpop.xlane.xlu0 %2573 }
 0xcd3   : > { %v2584_v36 = vadd.f32 %v3016_v37, %v2574_v38 }
 0xcd5   : > { %v2587_v24 = vsel %vm2586_vm3, %v2584_v36, -inf }
 0xcd6   : > { %v2588_v40 = vrot.slane %v2587_v24, 4  ;;  %v2576_v43 = vpop.xlane.xlu0 %2575 }
 0xcd7   : > { %v2585_v45 = vadd.f32 %v3016_v37, %v2576_v43 }
 0xcd8   : > { %v2589_v46 = vmax.f32 %v2587_v24, %v2588_v40 }
 0xcd9   : > { %v2594_v47 = vsel %vm2586_vm3, %v2585_v45, -inf }
 0xcda   : > { %v2590_v49 = vrot.slane %v2589_v46, 2  ;;  %v2595_v50 = vrot.slane %v2594_v47, 4 }
 0xcdc   : > { %v2591_v16 = vmax.f32 %v2589_v46, %v2590_v49  ;;  %v2596_v51 = vmax.f32 %v2594_v47, %v2595_v50 }
 0xcde   : > { %v2592_v52 = vrot.slane %v2591_v16, 1  ;;  %v2597_v53 = vrot.slane %v2596_v51, 2 }
 0xce0   : > { %v2593_v54 = vmax.f32 %v2591_v16, %v2592_v52  ;;  %v2598_v55 = vmax.f32 %v2596_v51, %v2597_v53 }
 0xce2   : > { %v2601_v56 = vsub.f32 %v2584_v36, %v2593_v54  ;;  %v2599_v58 = vrot.slane %v2598_v55, 1 }
 0xce4   : > { %v2603_v57 = vmul.f32 1.442695, %v2601_v56  ;;  %v2600_v59 = vmax.f32 %v2598_v55, %v2599_v58 }
 0xce6   : > { %3473 = vpow2.f32 %v2603_v57  ;;  %v2602_v60 = vsub.f32 %v2585_v45, %v2600_v59 }
 0xce8   : > { %v2605_v61 = vmul.f32 1.442695, %v2602_v60 }
 0xcea   : > { %3475 = vpow2.f32 %v2605_v61 }
 0xcf0   : > { %v3474_v62 = vpop.eup %3473 }
 0xcf1   : > { %v2607_v63 = vsel %vm2586_vm3, %v3474_v62, 0.0 }
 0xcf2   : > { %v2608_v39 = vrot.slane %v2607_v63, 4 }
 0xcf4   : > { %v3476_v4 = vpop.eup %3475  ;;  %v2609_v48 = vadd.f32 %v2608_v39, %v2607_v63 }
 0xcf5   : > { %v2614_v42 = vsel %vm2586_vm3, %v3476_v4, 0.0 }
 0xcf6   : > { %v2610_v0 = vrot.slane %v2609_v48, 2  ;;  %v2615_v1 = vrot.slane %v2614_v42, 4 }
 0xcf8   : > { %v2611_v2 = vadd.f32 %v2610_v0, %v2609_v48  ;;  %v2616_v3 = vadd.f32 %v2615_v1, %v2614_v42 }
 0xcfa   : > { %v2617_v5 = vrot.slane %v2616_v3, 2  ;;  %v2612_v6 = vrot.slane %v2611_v2, 1 }
 0xcfc   : > { %v2613_v7 = vadd.f32 %v2612_v6, %v2611_v2  ;;  %v2618_v9 = vadd.f32 %v2617_v5, %v2616_v3 }
 0xcfe   : > { %3477 = vrcp.f32 %v2613_v7  ;;  %v2619_v10 = vrot.slane %v2618_v9, 1 }
 0xd00   : > { %v2620_v11 = vadd.f32 %v2619_v10, %v2618_v9 }
 0xd02   : > { %3479 = vrcp.f32 %v2620_v11 }
 0xd08   : > { %v3478_v12 = vpop.eup %3477 }
 0xd09   : > { %v2623_v13 = vmul.f32 %v3478_v12, %v3474_v62 }
 0xd0b   : > { %2627 = vperm.xlu1 %3471, %v2623_v13  }
 0xd0c   : > { %v3480_v14 = vpop.eup %3479 }
 0xd0d   : > { %v2624_v15 = vmul.f32 %v3480_v14, %v3476_v4 }
 0xd0f   : > { %2632 = vperm.xlu1 %3471, %v2624_v15  }
 0xd8a   : > { %v2628_v17 = vpop.permute.xlu1 %2627 }
 0xd8b   : > { %v2635_v18 = vmul.f32 %v2628_v17, %v3960_v30 }
 0xd8d   : > { %v2637_v19 = vrot.slane %v2635_v18, 4 }
 0xd8e   : > { %v2633_v20 = vpop.permute.xlu1 %2632 }
 0xd8f   : > { %v2638_v22 = vadd.f32 %v2637_v19, %v2635_v18  ;;  %v2636_v23 = vmul.f32 %v2633_v20, %v3963_v31 }
 0xd91   : > { %v2639_v25 = vrot.slane %v2638_v22, 2  ;;  %v2643_v26 = vrot.slane %v2636_v23, 4 }
 0xd93   : > { %v2640_v41 = vadd.f32 %v2639_v25, %v2638_v22  ;;  %v2644_v44 = vadd.f32 %v2643_v26, %v2636_v23 }
 0xd95   : > { %v2645_v27 = vrot.slane %v2644_v44, 2  ;;  %v2641_v28 = vrot.slane %v2640_v41, 1 }
 0xd97   : > { %v2646_v21 = vadd.f32 %v2645_v27, %v2644_v44  ;;  %v2642_v8 = vadd.f32 %v2641_v28, %v2640_v41 }
 0xd99   : > { %v2647_v29 = vrot.slane %v2646_v21, 1 }
 0xd9b   : > { %v2648_v32 = vadd.f32 %v2647_v29, %v2646_v21 }
 0xd9d   : > { %v2652_v33 = vsel %vm2651_vm4, %v2648_v32, %v2642_v8 }
 0xd9e   : > { %2654 = vst [vmem:[%s3657_s16] sm:$0x3] %v2652_v33 }
 0xd9f PF: > { %s4032_s10 = sld [smem:[#allocation6_spill]]  ;;  %s4033_s30 = sld [smem:[#allocation4_spill]] }
 0xda0   : > { %s4035_s11 = sld [smem:[#allocation7_spill]]  ;;  %s4036_s12 = sld [smem:[#allocation8_spill]] }
 0xda5   : > { %s19_s13 = sadd.s32 1, %s4032_s10   ;;  %s4034_s10 = sld [smem:[#allocation5_spill]] }
 0xda6   : > { %p16_p9 = scmp.ge.s32.totalorder %s19_s13, 8  }
 0xda8   :  { %18 = sbr.rel (!%p16_p9) target bundleno = 5 (0x5), region = 118 }

// kernel: _lambda_.5
= control target key start
LH: loop header
LB: loop body
LE: loop exit
PB: predicated region body
PF: predicated region fallthrough
CT: control target
= control target key end

     0   :  { %v2521_v0 = vmov 0.0   ;;  %vm2522_vm0 = vmmov 0   ;;  %vm50_vm1 = vcmask 1041408   ;;  %s3257_s5 = inlined_call_operand.vmem [shape: bf16[128,128], index: 5, kind: input, shape index: {}]   ;;  %s3258_s2 = inlined_call_operand.vmem [shape: f32[5,2,128], index: 2, kind: input, shape index: {}]   ;;  %s3259_s0 = inlined_call_operand.vmem [shape: f32[2,128], index: 0, kind: input, shape index: {}]   ;;  %s3260_s1 = inlined_call_operand.vmem [shape: f32[2,128], index: 1, kind: input, shape index: {}]   ;;  %s3261_s7 = inlined_call_operand.vmem [shape: f32[6,128], index: 7, kind: input, shape index: {}]   ;;  %s3262_s6 = inlined_call_operand.vmem [shape: bf16[128,128], index: 6, kind: input, shape index: {}]   ;;  %s3263_s8 = inlined_call_operand.vmem [shape: bf16[4,128,256], index: 8, kind: input, shape index: {}]   ;;  %s3264_s10 = inlined_call_operand.vmem [shape: bf16[4,256,128], index: 10, kind: input, shape index: {}]   ;;  %s3265_s9 = inlined_call_operand.vmem [shape: f32[4,3,256], index: 9, kind: input, shape index: {}]   ;;  %s3266_s4 = inlined_call_operand.vmem [shape: f32[2,128], index: 4, kind: input, shape index: {}]   ;;  %s3267_s3 = inlined_call_operand.vmem [shape: f32[2,128], index: 3, kind: input, shape index: {}]   ;;  %s3268_s11 = inlined_call_operand.vmem [shape: f32[1,128], index: 11, kind: input, shape index: {}]   ;;  %s3269_s12 = inlined_call_operand.vmem [shape: f32[2,128], index: 12, kind: output, shape index: {}]  }
   0x1   :  { %2288 = vmatprep.subr.bf16.mxu0 %v2521_v0  ;;  %v2331_v1 = vld [vmem:[%s3257_s5] sm:$0xff]   ;;  %2304 = vmatprep.mubr.msk.bf16.mxu0 %vm2522_vm0, %v2521_v0  ;;  %v2332_v2 = vld [vmem:[%s3257_s5 + $0x8] sm:$0xff]   ;;  %v2333_v3 = vld [vmem:[%s3257_s5 + $0x10] sm:$0xff]  }
   0x2   :  { %2308 = vmatprep.subr.bf16.mxu1 %v2521_v0  ;;  %2324 = vmatprep.mubr.msk.bf16.mxu1 %vm2522_vm0, %v2521_v0  ;;  %v42_v4 = vld [vmem:[%s3258_s2] sm:$0x3]  ;;  %v43_v5 = vld [vmem:[%s3258_s2 + $0x2] sm:$0x3]  ;;  %v44_v6 = vld [vmem:[%s3258_s2 + $0x4] sm:$0x3] }
   0x3   :  { %2289 = vmatpush3.bf16.msra.mxu0 %v2331_v1  ;;  %v2334_v7 = vld [vmem:[%s3257_s5 + $0x18] sm:$0xff]   ;;  %v51_v8 = vsel %vm50_vm1, %v42_v4, 0.0  ;;  %v52_v9 = vsel %vm50_vm1, %v43_v5, 0.0  ;;  %v54_v10 = vsel %vm50_vm1, %v44_v6, 0.0  ;;  %v45_v11 = vld [vmem:[%s3258_s2 + $0x6] sm:$0x3] }
   0x4   :  { %2290 = vmatprep.subr.bf16.mxu0 %v2521_v0  ;;  %v53_v12 = vadd.f32 %v52_v9, %v51_v8  ;;  %v2335_v14 = vld [vmem:[%s3257_s5 + $0x20] sm:$0xff]   ;;  %v56_v15 = vsel %vm50_vm1, %v45_v11, 0.0  ;;  %v2631_v16 = vld [vmem:[%s3258_s2 + $0x8] sm:$0x3]  ;;  %v2337_v24 = vld [vmem:[%s3257_s5 + $0x30] sm:$0xff]  }
   0x5   :  { %v2336_v18 = vld [vmem:[%s3257_s5 + $0x28] sm:$0xff]   ;;  %v47_v19 = vld [vmem:[%s3259_s0] sm:$0x3]  ;;  %v58_v21 = vsel %vm50_vm1, %v2631_v16, 0.0  ;;  %v2338_v26 = vld [vmem:[%s3257_s5 + $0x38] sm:$0xff]  }
   0x6   :  { %v55_v13 = vadd.f32 %v54_v10, %v53_v12  ;;  %v48_v20 = vld [vmem:[%s3260_s1] sm:$0x3]  ;;  %v2340_v38 = vld [vmem:[%s3262_s6 + $0x8] sm:$0xff]   ;;  %v2341_v39 = vld [vmem:[%s3262_s6 + $0x10] sm:$0xff]  }
   0x7   :  { %2291 = vmatpush3.bf16.msra.mxu0 %v2332_v2  ;;  %v49_v22 = vadd.f32 %v48_v20, %v47_v19  ;;  %v1876_v28 = vld [vmem:[%s3261_s7] ss:$0 sm:$0xff]  ;;  %v2342_v40 = vld [vmem:[%s3262_s6 + $0x18] sm:$0xff]   ;;  %v2344_v42 = vld [vmem:[%s3262_s6 + $0x28] sm:$0xff]  }
   0x8   :  { %2292 = vmatprep.subr.bf16.mxu0 %v2521_v0  ;;  %v57_v17 = vadd.f32 %v56_v15, %v55_v13  ;;  %v2339_v37 = vld [vmem:[%s3262_s6] sm:$0xff]   ;;  %v2345_v43 = vld [vmem:[%s3262_s6 + $0x30] sm:$0xff]   ;;  %v2346_v44 = vld [vmem:[%s3262_s6 + $0x38] sm:$0xff]  }
   0x9   :  { %2309 = vmatpush3.bf16.msra.mxu1 %v2339_v37  ;;  %v2343_v41 = vld [vmem:[%s3262_s6 + $0x20] sm:$0xff]   ;;  %v2355_v11 = vld [vmem:[%s3263_s8 + $0x14] ss:$8 sps:$4 sm:$0xff]   ;;  %v2353_v12 = vld [vmem:[%s3263_s8 + $0x10] ss:$8 sps:$4 sm:$0xff]  }
   0xa   :  { %v59_v23 = vadd.f32 %v58_v21, %v57_v17  ;;  %2310 = vmatprep.subr.bf16.mxu1 %v2521_v0  ;;  %v1885_v55 = vld [vmem:[%s3261_s7 + $0x1] ss:$0 sm:$0xff]  ;;  %v1886_v57 = vld [vmem:[%s3261_s7 + $0x2] ss:$0 sm:$0xff]  ;;  %v1887_v62 = vld [vmem:[%s3261_s7 + $0x3] ss:$0 sm:$0xff] }
   0xb   :  { %2293 = vmatpush3.bf16.msra.mxu0 %v2333_v3  ;;  %v2347_v8 = vld [vmem:[%s3263_s8] ss:$8 sps:$4 sm:$0xff]   ;;  %v2352_v9 = vld [vmem:[%s3263_s8 + $0x84] ss:$8 sps:$4 sm:$0xff]   ;;  %v2358_v13 = vld [vmem:[%s3263_s8 + $0x94] ss:$8 sps:$4 sm:$0xff]  }
   0xc   :  { %2294 = vmatprep.subr.bf16.mxu0 %v2521_v0  ;;  %v60_v25 = vadd.f32 %v59_v23, %v49_v22  ;;  %v2350_v10 = vld [vmem:[%s3263_s8 + $0x80] ss:$8 sps:$4 sm:$0xff]   ;;  %v2361_v15 = vld [vmem:[%s3263_s8 + $0x24] ss:$8 sps:$4 sm:$0xff]   ;;  %v2367_v20 = vld [vmem:[%s3263_s8 + $0x34] ss:$8 sps:$4 sm:$0xff]  }
   0xd   :  { %2311 = vmatpush3.bf16.msra.mxu1 %v2340_v38  ;;  %v2359_v17 = vld [vmem:[%s3263_s8 + $0x20] ss:$8 sps:$4 sm:$0xff]   ;;  %v2365_v21 = vld [vmem:[%s3263_s8 + $0x30] ss:$8 sps:$4 sm:$0xff]   ;;  %v2370_v22 = vld [vmem:[%s3263_s8 + $0xb4] ss:$8 sps:$4 sm:$0xff]  }
   0xe   :  { %v77_v27 = vpack.c.bf16 %v60_v25, %v60_v25  ;;  %2312 = vmatprep.subr.bf16.mxu1 %v2521_v0  ;;  %v2362_v19 = vld [vmem:[%s3263_s8 + $0xa0] ss:$8 sps:$4 sm:$0xff]   ;;  %v2368_v23 = vld [vmem:[%s3263_s8 + $0xb0] ss:$8 sps:$4 sm:$0xff]   ;;  %v2391_v37 = vld [vmem:[%s3263_s8 + $0x74] ss:$8 sps:$4 sm:$0xff]  }
   0xf   :  { %2295 = vmatpush3.bf16.msra.mxu0 %v2334_v7  ;;  %v2349_v7 = vld [vmem:[%s3263_s8 + $0x4] ss:$8 sps:$4 sm:$0xff]   ;;  %v2371_v25 = vld [vmem:[%s3263_s8 + $0x40] ss:$8 sps:$4 sm:$0xff]   ;;  %v2394_v38 = vld [vmem:[%s3263_s8 + $0xf4] ss:$8 sps:$4 sm:$0xff]  }
  0x10   :  { %2296 = vmatprep.subr.bf16.mxu0 %v2521_v0 }
  0x11   :  { %2313 = vmatpush3.bf16.msra.mxu1 %v2341_v39  ;;  %v2392_v39 = vld [vmem:[%s3263_s8 + $0xf0] ss:$8 sps:$4 sm:$0xff]  }
  0x12   :  { %2314 = vmatprep.subr.bf16.mxu1 %v2521_v0 }
  0x13   :  { %2297 = vmatpush3.bf16.msra.mxu0 %v2335_v14  ;;  %v2356_v14 = vld [vmem:[%s3263_s8 + $0x90] ss:$8 sps:$4 sm:$0xff]  }
  0x14   :  { %2298 = vmatprep.subr.bf16.mxu0 %v2521_v0 }
  0x15   :  { %2315 = vmatpush3.bf16.msra.mxu1 %v2342_v40  ;;  %v2523_v40 = vmov 0  }
  0x16   :  { %2316 = vmatprep.subr.bf16.mxu1 %v2521_v0 }
  0x17   :  { %2299 = vmatpush3.bf16.msra.mxu0 %v2336_v18  ;;  %v2364_v18 = vld [vmem:[%s3263_s8 + $0xa4] ss:$8 sps:$4 sm:$0xff]  }
  0x18   :  { %2300 = vmatprep.subr.bf16.mxu0 %v2521_v0 }
  0x19   :  { %2317 = vmatpush3.bf16.msra.mxu1 %v2343_v41 }
  0x1a   :  { %2318 = vmatprep.subr.bf16.mxu1 %v2521_v0 }
  0x1b   :  { %2301 = vmatpush3.bf16.msra.mxu0 %v2337_v24  ;;  %v2373_v24 = vld [vmem:[%s3263_s8 + $0x44] ss:$8 sps:$4 sm:$0xff]  }
  0x1c   :  { %2302 = vmatprep.subr.bf16.mxu0 %v2521_v0 }
  0x1d   :  { %2319 = vmatpush3.bf16.msra.mxu1 %v2344_v42 }
  0x1e   :  { %2320 = vmatprep.subr.bf16.mxu1 %v2521_v0 }
  0x1f   :  { %2303 = vmatpush3.bf16.msra.mxu0 %v2338_v26  ;;  %v2376_v26 = vld [vmem:[%s3263_s8 + $0xc4] ss:$8 sps:$4 sm:$0xff]  }
  0x20   :  { %459 = vmatprep.subr.bf16.mxu0 %v2349_v7 }
  0x21   :  { %2321 = vmatpush3.bf16.msra.mxu1 %v2345_v43 }
  0x22   :  { %2305 = vmatmul.mubr.bf16.vlgmr.msra.gmra.mrb[0].mxu0 %v77_v27  ;;  %2322 = vmatprep.subr.bf16.mxu1 %v2521_v0  ;;  %v2374_v27 = vld [vmem:[%s3263_s8 + $0xc0] ss:$8 sps:$4 sm:$0xff]  }
  0x23   :  { %460 = vmatpush1.bf16.msra.mxu0 %v2347_v8  ;;  %491 = vmatprep.mubr.bf16.mxu0 %v2523_v40 }
  0x24   :  { %461 = vmatprep.subr.bf16.mxu0 %v2355_v11 }
  0x25   :  { %2323 = vmatpush3.bf16.msra.mxu1 %v2346_v44 }
  0x26   :  { %700 = vmatprep.subr.bf16.mxu1 %v2352_v9 }
  0x27   :  { %462 = vmatpush1.bf16.msra.mxu0 %v2353_v12 }
  0x28   :  { %463 = vmatprep.subr.bf16.mxu0 %v2361_v15 }
  0x2b   :  { %464 = vmatpush1.bf16.msra.mxu0 %v2359_v17 }
  0x2c   :  { %465 = vmatprep.subr.bf16.mxu0 %v2367_v20 }
  0x2f   :  { %466 = vmatpush1.bf16.msra.mxu0 %v2365_v21 }
  0x30   :  { %467 = vmatprep.subr.bf16.mxu0 %v2373_v24 }
  0x33   :  { %468 = vmatpush1.bf16.msra.mxu0 %v2371_v25 }
  0xf5   :  { %v165_v29 = vpop.f32.mrb[0].mxu0 }
  0xf6   :  { %v166_v30 = vadd.f32 %v1876_v28, %v165_v29  ;;  %v2306_v31 = vpop.f32.mrb[1].mxu0  ;;  %v2379_v28 = vld [vmem:[%s3263_s8 + $0x54] ss:$8 sps:$4 sm:$0xff]   ;;  %v2377_v29 = vld [vmem:[%s3263_s8 + $0x50] ss:$8 sps:$4 sm:$0xff]  }
  0xf7   :  { %v168_v32 = vpop.f32.mrb[2].mxu0  ;;  %469 = vmatprep.subr.bf16.mxu0 %v2379_v28  ;;  %v2380_v31 = vld [vmem:[%s3263_s8 + $0xd0] ss:$8 sps:$4 sm:$0xff]  }
  0xf8   :  { %v2307_v33 = vpop.f32.mrb[3].mxu0  ;;  %v173_v34 = vsel %vm50_vm1, %v166_v30, 0.0  ;;  %v177_v35 = vmul.f32 %v166_v30, %v166_v30  ;;  %470 = vmatpush1.bf16.msra.mxu0 %v2377_v29  ;;  %v2385_v32 = vld [vmem:[%s3263_s8 + $0x64] ss:$8 sps:$4 sm:$0xff]  }
  0xf9   :  { %174 = vadd.xlane.f32.xlu0 %v173_v34  ;;  %v2383_v33 = vld [vmem:[%s3263_s8 + $0x60] ss:$8 sps:$4 sm:$0xff]   ;;  %471 = vmatprep.subr.bf16.mxu0 %v2385_v32 }
  0xfa   :  { %v178_v36 = vsel %vm50_vm1, %v177_v35, 0.0  ;;  %v2386_v34 = vld [vmem:[%s3263_s8 + $0xe0] ss:$8 sps:$4 sm:$0xff]   ;;  %v2388_v35 = vld [vmem:[%s3263_s8 + $0xe4] ss:$8 sps:$4 sm:$0xff]  }
  0xfc   :  { %472 = vmatpush1.bf16.msra.mxu0 %v2383_v33 }
  0xfd   :  { %179 = vadd.xlane.f32.xlu0 %v178_v36  ;;  %v2389_v36 = vld [vmem:[%s3263_s8 + $0x70] ss:$8 sps:$4 sm:$0xff]   ;;  %473 = vmatprep.subr.bf16.mxu0 %v2391_v37  ;;  %v2398_v37 = vld [vmem:[%s3264_s10 + $0x88] sm:$0xff]  }
 0x100   :  { %474 = vmatpush1.bf16.msra.mxu0 %v2389_v36  ;;  %v2397_v36 = vld [vmem:[%s3264_s10 + $0xc8] sm:$0xff]  }
 0x186   :  { %v175_v45 = vpop.xlane.xlu0 %174 }
 0x187   :  { %v176_v46 = vmul.f32 0.010416667, %v175_v45 }
 0x189   :  { %v182_v48 = vmul.f32 %v176_v46, %v176_v46  ;;  %v185_v53 = vsub.f32 %v166_v30, %v176_v46  ;;  %v2382_v30 = vld [vmem:[%s3263_s8 + $0xd4] ss:$8 sps:$4 sm:$0xff]  }
 0x18a   :  { %v180_v47 = vpop.xlane.xlu0 %179 }
 0x18b   :  { %v181_v49 = vmul.f32 0.010416667, %v180_v47 }
 0x18d   :  { %v183_v50 = vsub.f32 %v181_v49, %v182_v48 }
 0x18f   :  { %v184_v51 = vmax.f32 %v183_v50, 0.0 }
 0x191   :  { %v186_v52 = vadd.f32 1e-05, %v184_v51  ;;  %v1896_v51 = vld [vmem:[%s3261_s7 + $0x4] ss:$0 sm:$0xff] }
 0x193   :  { %2507 = vrsqrt.f32 %v186_v52 }
 0x19d   :  { %v2508_v54 = vpop.eup %2507 }
 0x19e   :  { %v188_v56 = vmul.f32 %v2508_v54, %v185_v53  ;;  %v1897_v53 = vld [vmem:[%s3261_s7 + $0x5] ss:$0 sm:$0xff] }
 0x1a0   :  { %v193_v58 = vmul.f32 %v1885_v55, %v188_v56 }
 0x1a2   :  { %v198_v59 = vadd.f32 %v1886_v57, %v193_v58 }
 0x1a4   :  { %v199_v60 = vmax.f32 %v198_v59, 0.0 }
 0x1a6   :  { %v216_v61 = vpack.c.bf16 %v199_v60, %v199_v60  ;;  %v2395_v60 = vld [vmem:[%s3264_s10 + $0xc0] sm:$0xff]  }
 0x1a7   :  { %2200 = vmatprep.subr.bf16.mxu0 %v2395_v60  ;;  %v2418_v60 = vld [vmem:[%s3264_s10 + $0xb0] sm:$0xff]  }
 0x1a8   :  { %2325 = vmatmul.mubr.bf16.vlgmr.msra.gmra.mrb[0].mxu1 %v216_v61  ;;  %v369_v61 = vlaneseq }
 0x1a9   :  { %701 = vmatpush1.bf16.msra.mxu1 %v2350_v10  ;;  %732 = vmatprep.mubr.bf16.mxu1 %v2523_v40 }
 0x1aa   :  { %702 = vmatprep.subr.bf16.mxu1 %v2358_v13 }
 0x1ad   :  { %703 = vmatpush1.bf16.msra.mxu1 %v2356_v14 }
 0x1ae   :  { %704 = vmatprep.subr.bf16.mxu1 %v2364_v18 }
 0x1b1   :  { %705 = vmatpush1.bf16.msra.mxu1 %v2362_v19 }
 0x1b2   :  { %706 = vmatprep.subr.bf16.mxu1 %v2370_v22 }
 0x1b5   :  { %707 = vmatpush1.bf16.msra.mxu1 %v2368_v23 }
 0x1b6   :  { %708 = vmatprep.subr.bf16.mxu1 %v2376_v26 }
 0x1b9   :  { %709 = vmatpush1.bf16.msra.mxu1 %v2374_v27 }
 0x1ba   :  { %710 = vmatprep.subr.bf16.mxu1 %v2382_v30 }
 0x1bd   :  { %711 = vmatpush1.bf16.msra.mxu1 %v2380_v31 }
 0x1be   :  { %712 = vmatprep.subr.bf16.mxu1 %v2388_v35  ;;  %v2396_v35 = vld [vmem:[%s3264_s10 + $0x80] sm:$0xff]  }
 0x1c1   :  { %713 = vmatpush1.bf16.msra.mxu1 %v2386_v34 }
 0x1c2   :  { %714 = vmatprep.subr.bf16.mxu1 %v2394_v38  ;;  %v2399_v38 = vld [vmem:[%s3264_s10 + $0x40] sm:$0xff]  }
 0x1c5   :  { %715 = vmatpush1.bf16.msra.mxu1 %v2392_v39  ;;  %v2400_v39 = vld [vmem:[%s3264_s10] sm:$0xff]  }
 0x1c6   :  { %2222 = vmatprep.subr.bf16.mxu1 %v2399_v38  ;;  %v1898_v38 = vld [vmem:[%s3265_s9 + $0x1] ss:$4 sm:$0x3] }
 0x27b   :  { %v304_v63 = vpop.f32.mrb[0].mxu1 }
 0x27c   :  { %v2698_v0 = vadd.f32 %v1887_v62, %v304_v63  ;;  %v2326_v1 = vpop.f32.mrb[1].mxu1  ;;  %v370_v62 = vshrl.u32 %v369_v61, 7  ;;  %v2420_v61 = vld [vmem:[%s3264_s10 + $0x28] sm:$0xff]  }
 0x27d   :  { %v307_v2 = vpop.f32.mrb[2].mxu1  ;;  %v346_v1 = vld [vmem:[%s3265_s9] ss:$4 sm:$0x3] }
 0x27e   :  { %v2327_v3 = vpop.f32.mrb[3].mxu1  ;;  %v312_v4 = vsel %vm50_vm1, %v2698_v0, 0.0  ;;  %v316_v5 = vmul.f32 %v2698_v0, %v2698_v0  ;;  %v2819_v63 = vsub.s32 0, %v370_v62 }
 0x27f   :  { %313 = vadd.xlane.f32.xlu1 %v312_v4 }
 0x280   :  { %v317_v6 = vsel %vm50_vm1, %v316_v5, 0.0  ;;  %v372_v2 = vrot.slane %v346_v1, %v2819_v63 }
 0x283   :  { %318 = vadd.xlane.f32.xlu1 %v317_v6 }
 0x30c   :  { %v314_v41 = vpop.xlane.xlu1 %313 }
 0x30d   :  { %v315_v42 = vmul.f32 0.020833334, %v314_v41  ;;  %v2401_v41 = vld [vmem:[%s3264_s10 + $0xd0] sm:$0xff]  }
 0x30f   :  { %v321_v44 = vmul.f32 %v315_v42, %v315_v42  ;;  %v324_v49 = vsub.f32 %v2698_v0, %v315_v42  ;;  %v2821_v0 = vsub.s32 1, %v370_v62  ;;  %v2402_v42 = vld [vmem:[%s3264_s10 + $0x90] sm:$0xff]   ;;  %v2421_v62 = vld [vmem:[%s3264_s10 + $0xf8] sm:$0xff]  }
 0x310   :  { %v319_v43 = vpop.xlane.xlu1 %318 }
 0x311   :  { %v320_v45 = vmul.f32 0.020833334, %v319_v43  ;;  %v376_v3 = vrot.slane %v346_v1, %v2821_v0  ;;  %v2403_v43 = vld [vmem:[%s3264_s10 + $0x48] sm:$0xff]   ;;  %v2423_v1 = vld [vmem:[%s3264_s10 + $0x70] sm:$0xff]  }
 0x313   :  { %v322_v46 = vsub.f32 %v320_v45, %v321_v44  ;;  %v2404_v44 = vld [vmem:[%s3264_s10 + $0x8] sm:$0xff]   ;;  %v2405_v45 = vld [vmem:[%s3264_s10 + $0xd8] sm:$0xff]  }
 0x315   :  { %v323_v47 = vmax.f32 %v322_v46, 0.0  ;;  %v2406_v46 = vld [vmem:[%s3264_s10 + $0x98] sm:$0xff]  }
 0x317   :  { %v325_v48 = vadd.f32 1e-05, %v323_v47  ;;  %v2407_v47 = vld [vmem:[%s3264_s10 + $0x50] sm:$0xff]  }
 0x319   :  { %2509 = vrsqrt.f32 %v325_v48  ;;  %v2408_v48 = vld [vmem:[%s3264_s10 + $0x10] sm:$0xff]  }
 0x323   :  { %v2510_v50 = vpop.eup %2509 }
 0x324   :  { %v327_v52 = vmul.f32 %v2510_v50, %v324_v49  ;;  %v2409_v49 = vld [vmem:[%s3264_s10 + $0xe0] sm:$0xff]  }
 0x325   :  { %v2410_v50 = vld [vmem:[%s3264_s10 + $0xa0] sm:$0xff]  }
 0x326   :  { %v332_v54 = vmul.f32 %v1896_v51, %v327_v52  ;;  %v2411_v51 = vld [vmem:[%s3264_s10 + $0x58] sm:$0xff]  }
 0x327   :  { %v2412_v52 = vld [vmem:[%s3264_s10 + $0x18] sm:$0xff]  }
 0x328   :  { %v337_v55 = vadd.f32 %v1897_v53, %v332_v54  ;;  %v2413_v53 = vld [vmem:[%s3264_s10 + $0xe8] sm:$0xff]   ;;  %v2415_v54 = vld [vmem:[%s3264_s10 + $0x60] sm:$0xff]  }
 0x32a   :  { %v2810_v56 = vmax.f32 %v337_v55, 0.0  ;;  %v2414_v55 = vld [vmem:[%s3264_s10 + $0xa8] sm:$0xff]  }
 0x32c   :  { %v367_v57 = vpack.c.bf16 %v2810_v56, %v2810_v56  ;;  %v339_v58 = vadd.f32 %v2810_v56, %v2631_v16  ;;  %v1916_v16 = vld [vmem:[%s3265_s9 + $0x8] ss:$4 sm:$0x3] }
 0x32d   :  { %v613_v4 = vrot.slane %v1916_v16, %v2819_v63  ;;  %v617_v6 = vrot.slane %v1916_v16, %v2821_v0  ;;  %v2422_v16 = vld [vmem:[%s3264_s10 + $0xb8] sm:$0xff]  }
 0x32e   :  { %492 = vmatmul.mubr.bf16.vlgmr.msra.gmra.mrb[4].mxu0 %v367_v57  ;;  %v608_v59 = vpack.c.bf16 %v339_v58, %v339_v58  ;;  %v2416_v57 = vld [vmem:[%s3264_s10 + $0x20] sm:$0xff]   ;;  %v2417_v58 = vld [vmem:[%s3264_s10 + $0xf0] sm:$0xff]  }
 0x32f   :  { %2201 = vmatpush3.bf16.msra.mxu0 %v2396_v35 }
 0x330   :  { %733 = vmatmul.mubr.bf16.vlgmr.msra.gmra.mrb[4].mxu1 %v608_v59  ;;  %2202 = vmatprep.subr.bf16.mxu0 %v2397_v36  ;;  %v2419_v59 = vld [vmem:[%s3264_s10 + $0x68] sm:$0xff]  }
 0x331   :  { %2223 = vmatpush3.bf16.msra.mxu1 %v2400_v39 }
 0x332   :  { %2224 = vmatprep.subr.bf16.mxu1 %v2403_v43  ;;  %v527_v43 = vrot.slane %v1898_v38, %v2819_v63 }
 0x333   :  { %2203 = vmatpush3.bf16.msra.mxu0 %v2398_v37 }
 0x334   :  { %2204 = vmatprep.subr.bf16.mxu0 %v2401_v41 }
 0x335   :  { %2225 = vmatpush3.bf16.msra.mxu1 %v2404_v44  ;;  %v531_v44 = vrot.slane %v1898_v38, %v2821_v0  ;;  %v2469_v38 = vld [vmem:[%s3263_s8 + $0x1e0] ss:$8 sps:$4 sm:$0xff]  }
 0x336   :  { %2226 = vmatprep.subr.bf16.mxu1 %v2407_v47 }
 0x337   :  { %2205 = vmatpush3.bf16.msra.mxu0 %v2402_v42 }
 0x338   :  { %2206 = vmatprep.subr.bf16.mxu0 %v2405_v45 }
 0x339   :  { %2227 = vmatpush3.bf16.msra.mxu1 %v2408_v48 }
 0x33a   :  { %2228 = vmatprep.subr.bf16.mxu1 %v2411_v51 }
 0x33b   :  { %2207 = vmatpush3.bf16.msra.mxu0 %v2406_v46 }
 0x33c   :  { %2208 = vmatprep.subr.bf16.mxu0 %v2409_v49 }
 0x33d   :  { %2229 = vmatpush3.bf16.msra.mxu1 %v2412_v52 }
 0x33e   :  { %2230 = vmatprep.subr.bf16.mxu1 %v2415_v54 }
 0x33f   :  { %2209 = vmatpush3.bf16.msra.mxu0 %v2410_v50 }
 0x340   :  { %2210 = vmatprep.subr.bf16.mxu0 %v2413_v53 }
 0x341   :  { %2231 = vmatpush3.bf16.msra.mxu1 %v2416_v57 }
 0x342   :  { %2232 = vmatprep.subr.bf16.mxu1 %v2419_v59  ;;  %v2432_v59 = vld [vmem:[%s3263_s8 + $0x114] ss:$8 sps:$4 sm:$0xff]  }
 0x343   :  { %2211 = vmatpush3.bf16.msra.mxu0 %v2414_v55 }
 0x344   :  { %2212 = vmatprep.subr.bf16.mxu0 %v2417_v58 }
 0x345   :  { %2233 = vmatpush3.bf16.msra.mxu1 %v2420_v61 }
 0x346   :  { %2234 = vmatprep.subr.bf16.mxu1 %v2423_v1  ;;  %v2430_v1 = vld [vmem:[%s3263_s8 + $0x110] ss:$8 sps:$4 sm:$0xff]  }
 0x347   :  { %2213 = vmatpush3.bf16.msra.mxu0 %v2418_v60 }
 0x348   :  { %2214 = vmatprep.subr.bf16.mxu0 %v2421_v62 }
 0x34b   :  { %2215 = vmatpush3.bf16.msra.mxu0 %v2422_v16 }
 0x401   :  { %v493_v5 = vpop.f32.mrb[4].mxu0 }
 0x402   :  { %v495_v7 = vpop.f32.mrb[5].mxu0  ;;  %v2833_v8 = vadd.f32 %v493_v5, %v372_v2  ;;  %v2424_v2 = vld [vmem:[%s3264_s10 + $0x30] sm:$0xff]   ;;  %v2429_v5 = vld [vmem:[%s3264_s10 + $0x38] sm:$0xff]  }
 0x403   :  { %v2835_v9 = vadd.f32 %v495_v7, %v376_v3  ;;  %v497_v10 = vpop.f32.mrb[6].mxu0  ;;  %v734_v11 = vpop.f32.mrb[4].mxu1  ;;  %2235 = vmatpush3.bf16.msra.mxu1 %v2424_v2  ;;  %v2427_v3 = vld [vmem:[%s3263_s8 + $0x104] ss:$8 sps:$4 sm:$0xff]  }
 0x404   :  { %v2837_v12 = vadd.f32 %v734_v11, %v613_v4  ;;  %v498_v13 = vpop.f32.mrb[7].mxu0  ;;  %v736_v14 = vpop.f32.mrb[5].mxu1  ;;  %v506_v23 = vmul.f32 %v2833_v8, %v2833_v8  ;;  %v500_v28 = vsel %vm50_vm1, %v2833_v8, 0.0  ;;  %v2428_v4 = vld [vmem:[%s3264_s10 + $0x78] sm:$0xff]   ;;  %1214 = vmatprep.subr.bf16.mxu0 %v2427_v3  ;;  %v2435_v3 = vld [vmem:[%s3263_s8 + $0x124] ss:$8 sps:$4 sm:$0xff]  }
 0x405   :  { %v2839_v15 = vadd.f32 %v736_v14, %v617_v6  ;;  %v738_v17 = vpop.f32.mrb[6].mxu1  ;;  %v507_v24 = vmul.f32 %v2835_v9, %v2835_v9  ;;  %v501_v29 = vsel %vm50_vm1, %v2835_v9, 0.0  ;;  %2236 = vmatprep.subr.bf16.mxu1 %v2428_v4  ;;  %v2433_v4 = vld [vmem:[%s3263_s8 + $0x120] ss:$8 sps:$4 sm:$0xff]  }
 0x406   :  { %v739_v18 = vpop.f32.mrb[7].mxu1  ;;  %v741_v19 = vsel %vm50_vm1, %v2837_v12, 0.0  ;;  %v747_v20 = vmul.f32 %v2837_v12, %v2837_v12  ;;  %v508_v31 = vsel %vm50_vm1, %v506_v23, 0.0  ;;  %v502_v33 = vadd.f32 %v501_v29, %v500_v28  ;;  %v1918_v28 = vld [vmem:[%s3265_s9 + $0xa] ss:$4 sm:$0x3] }
 0x407   :  { %v742_v21 = vsel %vm50_vm1, %v2839_v15, 0.0  ;;  %v748_v22 = vmul.f32 %v2839_v15, %v2839_v15  ;;  %v509_v32 = vsel %vm50_vm1, %v507_v24, 0.0  ;;  %2237 = vmatpush3.bf16.msra.mxu1 %v2429_v5  ;;  %v781_v35 = vrot.slane %v1918_v28, %v2819_v63  ;;  %v2438_v5 = vld [vmem:[%s3263_s8 + $0x134] ss:$8 sps:$4 sm:$0xff]  }
 0x408   :  { %v743_v25 = vadd.f32 %v742_v21, %v741_v19  ;;  %v749_v26 = vsel %vm50_vm1, %v747_v20, 0.0  ;;  %v510_v34 = vadd.f32 %v509_v32, %v508_v31  ;;  %v785_v36 = vrot.slane %v1918_v28, %v2821_v0  ;;  %v2454_v28 = vld [vmem:[%s3263_s8 + $0x190] ss:$8 sps:$4 sm:$0xff]  }
 0x409   :  { %v750_v27 = vsel %vm50_vm1, %v748_v22, 0.0 }
 0x40a   :  { %744 = vadd.xlane.f32.xlu0 %v743_v25  ;;  %v751_v30 = vadd.f32 %v750_v27, %v749_v26  ;;  %v1917_v27 = vld [vmem:[%s3265_s9 + $0x9] ss:$4 sm:$0x3] }
 0x40b   :  { %v768_v31 = vrot.slane %v1917_v27, %v2819_v63  ;;  %v772_v32 = vrot.slane %v1917_v27, %v2821_v0  ;;  %v2456_v27 = vld [vmem:[%s3263_s8 + $0x194] ss:$8 sps:$4 sm:$0xff]  }
 0x40c   :  { %752 = vadd.xlane.f32.xlu1 %v751_v30 }
 0x40e   :  { %503 = vadd.xlane.f32.xlu0 %v502_v33 }
 0x410   :  { %511 = vadd.xlane.f32.xlu1 %v510_v34 }
 0x497   :  { %v745_v6 = vpop.xlane.xlu0 %744 }
 0x498   :  { %v746_v7 = vmul.f32 0.041666668, %v745_v6  ;;  %v2436_v6 = vld [vmem:[%s3263_s8 + $0x130] ss:$8 sps:$4 sm:$0xff]  }
 0x499   :  { %v753_v10 = vpop.xlane.xlu1 %752 }
 0x49a   :  { %v754_v11 = vmul.f32 0.041666668, %v753_v10  ;;  %v755_v13 = vmul.f32 %v746_v7, %v746_v7  ;;  %v758_v29 = vsub.f32 %v2837_v12, %v746_v7  ;;  %v759_v30 = vsub.f32 %v2839_v15, %v746_v7  ;;  %v1899_v12 = vld [vmem:[%s3265_s9 + $0x2] ss:$4 sm:$0x3] }
 0x49b   :  { %v504_v14 = vpop.xlane.xlu0 %503  ;;  %v540_v49 = vrot.slane %v1899_v12, %v2819_v63  ;;  %v544_v50 = vrot.slane %v1899_v12, %v2821_v0  ;;  %v2441_v7 = vld [vmem:[%s3263_s8 + $0x144] ss:$8 sps:$4 sm:$0xff]   ;;  %v2439_v10 = vld [vmem:[%s3263_s8 + $0x140] ss:$8 sps:$4 sm:$0xff]   ;;  %v2472_v12 = vld [vmem:[%s3263_s8 + $0x1f0] ss:$8 sps:$4 sm:$0xff]  }
 0x49c   :  { %v756_v17 = vsub.f32 %v754_v11, %v755_v13  ;;  %v505_v18 = vmul.f32 0.0052083335, %v504_v14  ;;  %v2444_v11 = vld [vmem:[%s3263_s8 + $0x154] ss:$8 sps:$4 sm:$0xff]   ;;  %v2442_v13 = vld [vmem:[%s3263_s8 + $0x150] ss:$8 sps:$4 sm:$0xff]  }
 0x49d   :  { %v512_v19 = vpop.xlane.xlu1 %511  ;;  %v2447_v14 = vld [vmem:[%s3263_s8 + $0x164] ss:$8 sps:$4 sm:$0xff]  }
 0x49e   :  { %v757_v20 = vmax.f32 %v756_v17, 0.0  ;;  %v513_v21 = vmul.f32 0.0052083335, %v512_v19  ;;  %v514_v22 = vmul.f32 %v505_v18, %v505_v18  ;;  %v517_v15 = vsub.f32 %v2833_v8, %v505_v18  ;;  %v340_v17 = vld [vmem:[%s3266_s4] sm:$0x3] }
 0x49f   :  { %v518_v42 = vsub.f32 %v2835_v9, %v505_v18  ;;  %v2425_v9 = vld [vmem:[%s3263_s8 + $0x100] ss:$8 sps:$4 sm:$0xff]   ;;  %v2450_v19 = vld [vmem:[%s3263_s8 + $0x174] ss:$8 sps:$4 sm:$0xff]  }
 0x4a0   :  { %v760_v23 = vadd.f32 1e-05, %v757_v20  ;;  %v515_v24 = vsub.f32 %v513_v21, %v514_v22  ;;  %v2445_v18 = vld [vmem:[%s3263_s8 + $0x160] ss:$8 sps:$4 sm:$0xff]   ;;  %v341_v20 = vadd.f32 %v340_v17, %v2810_v56  ;;  %v2448_v21 = vld [vmem:[%s3263_s8 + $0x170] ss:$8 sps:$4 sm:$0xff]  }
 0x4a1   :  { %v2519_v22 = vld [vmem:[%s3258_s2 + $0x6] sm:$0x3]  ;;  %v2479_v17 = vld [vmem:[%s3264_s10 + $0x150] sm:$0xff]  }
 0x4a2   :  { %2511 = vrsqrt.f32 %v760_v23  ;;  %v516_v25 = vmax.f32 %v515_v24, 0.0  ;;  %v342_v23 = vadd.f32 %v2519_v22, %v341_v20  ;;  %v2453_v24 = vld [vmem:[%s3263_s8 + $0x184] ss:$8 sps:$4 sm:$0xff]   ;;  %v2482_v22 = vld [vmem:[%s3264_s10 + $0x118] sm:$0xff]  }
 0x4a4   :  { %v519_v26 = vadd.f32 1e-05, %v516_v25  ;;  %v2451_v25 = vld [vmem:[%s3263_s8 + $0x180] ss:$8 sps:$4 sm:$0xff]  }
 0x4a6   :  { %2513 = vrsqrt.f32 %v519_v26  ;;  %v1122_v26 = vpack.c.bf16 %v342_v23, %v342_v23  ;;  %v2483_v23 = vld [vmem:[%s3264_s10 + $0x160] sm:$0xff]  }
 0x4ac   :  { %v2512_v33 = vpop.eup %2511 }
 0x4ad   :  { %v763_v34 = vmul.f32 %v2512_v33, %v759_v30  ;;  %v762_v37 = vmul.f32 %v2512_v33, %v758_v29  ;;  %v2459_v29 = vld [vmem:[%s3263_s8 + $0x1a4] ss:$8 sps:$4 sm:$0xff]   ;;  %v2457_v30 = vld [vmem:[%s3263_s8 + $0x1a0] ss:$8 sps:$4 sm:$0xff]  }
 0x4ae   :  { %v2463_v33 = vld [vmem:[%s3263_s8 + $0x1c0] ss:$8 sps:$4 sm:$0xff]  }
 0x4af   :  { %v776_v39 = vmul.f32 %v772_v32, %v763_v34  ;;  %v775_v41 = vmul.f32 %v768_v31, %v762_v37  ;;  %v2462_v31 = vld [vmem:[%s3263_s8 + $0x1b4] ss:$8 sps:$4 sm:$0xff]   ;;  %v2465_v32 = vld [vmem:[%s3263_s8 + $0x1c4] ss:$8 sps:$4 sm:$0xff]   ;;  %v343_v37 = vld [vmem:[%s3267_s3] sm:$0x3] }
 0x4b0   :  { %v2514_v45 = vpop.eup %2513  ;;  %v2468_v34 = vld [vmem:[%s3263_s8 + $0x1d4] ss:$8 sps:$4 sm:$0xff]  }
 0x4b1   :  { %v789_v46 = vadd.f32 %v785_v36, %v776_v39  ;;  %v788_v47 = vadd.f32 %v781_v35, %v775_v41  ;;  %v522_v48 = vmul.f32 %v2514_v45, %v518_v42  ;;  %v521_v51 = vmul.f32 %v2514_v45, %v517_v15  ;;  %v2466_v35 = vld [vmem:[%s3263_s8 + $0x1d0] ss:$8 sps:$4 sm:$0xff]   ;;  %v2471_v36 = vld [vmem:[%s3263_s8 + $0x1e4] ss:$8 sps:$4 sm:$0xff]   ;;  %v2474_v39 = vld [vmem:[%s3263_s8 + $0x1f4] ss:$8 sps:$4 sm:$0xff]  }
 0x4b2   :  { %v344_v41 = vadd.f32 %v343_v37, %v2810_v56  ;;  %v2520_v15 = vld [vmem:[%s3258_s2 + $0x4] sm:$0x3] }
 0x4b3   :  { %v791_v52 = vmax.f32 %v789_v46, 0.0  ;;  %v790_v53 = vmax.f32 %v788_v47, 0.0  ;;  %v535_v54 = vmul.f32 %v531_v44, %v522_v48  ;;  %v534_v55 = vmul.f32 %v527_v43, %v521_v51 }
 0x4b4   :  { %v345_v42 = vadd.f32 %v2520_v15, %v344_v41  ;;  %v2487_v41 = vld [vmem:[%s3264_s10 + $0x170] sm:$0xff]   ;;  %v2489_v15 = vld [vmem:[%s3264_s10 + $0x178] sm:$0xff]  }
 0x4b5   :  { %v826_v8 = vpack.c.bf16 %v791_v52, %v791_v52  ;;  %v825_v57 = vpack.c.bf16 %v790_v53, %v790_v53  ;;  %v548_v58 = vadd.f32 %v544_v50, %v535_v54  ;;  %v547_v60 = vadd.f32 %v540_v49, %v534_v55  ;;  %v2015_v54 = vld [vmem:[%s3265_s9 + $0x10] ss:$4 sm:$0x3] }
 0x4b6   :  { %v1501_v43 = vpack.c.bf16 %v345_v42, %v345_v42  ;;  %v1127_v55 = vrot.slane %v2015_v54, %v2819_v63  ;;  %v2490_v42 = vld [vmem:[%s3264_s10 + $0x138] sm:$0xff]  }
 0x4b7   :  { %955 = vmatprep.mubr.bf16.mxu0 %v826_v8  ;;  %v550_v61 = vmax.f32 %v548_v58, 0.0  ;;  %v549_v62 = vmax.f32 %v547_v60, 0.0  ;;  %v1131_v8 = vrot.slane %v2015_v54, %v2821_v0 }
 0x4b8   :  { %956 = vmatmul.mubr.bf16.vlgmr.msra.gmra.mrb[8].mxu0 %v825_v57 }
 0x4b9   :  { %1215 = vmatpush1.bf16.msra.mxu0 %v2425_v9  ;;  %1246 = vmatprep.mubr.bf16.mxu0 %v2523_v40  ;;  %v584_v16 = vpack.c.bf16 %v550_v61, %v550_v61  ;;  %v583_v2 = vpack.c.bf16 %v549_v62, %v549_v62 }
 0x4ba   :  { %1216 = vmatprep.subr.bf16.mxu0 %v2432_v59 }
 0x4bb   :  { %1091 = vmatprep.mubr.bf16.mxu1 %v584_v16 }
 0x4bc   :  { %1092 = vmatmul.mubr.bf16.vlgmr.msra.gmra.mrb[8].mxu1 %v583_v2 }
 0x4bd   :  { %1217 = vmatpush1.bf16.msra.mxu0 %v2430_v1 }
 0x4be   :  { %1218 = vmatprep.subr.bf16.mxu0 %v2435_v3 }
 0x4c1   :  { %1219 = vmatpush1.bf16.msra.mxu0 %v2433_v4 }
 0x4c2   :  { %1220 = vmatprep.subr.bf16.mxu0 %v2438_v5 }
 0x4c5   :  { %1221 = vmatpush1.bf16.msra.mxu0 %v2436_v6 }
 0x4c6   :  { %1222 = vmatprep.subr.bf16.mxu0 %v2441_v7  ;;  %v2475_v7 = vld [vmem:[%s3264_s10 + $0x140] sm:$0xff]  }
 0x4c7   :  { %2244 = vmatprep.subr.bf16.mxu1 %v2475_v7 }
 0x4c9   :  { %1223 = vmatpush1.bf16.msra.mxu0 %v2439_v10  ;;  %v2476_v10 = vld [vmem:[%s3264_s10 + $0x100] sm:$0xff]  }
 0x4ca   :  { %1224 = vmatprep.subr.bf16.mxu0 %v2444_v11  ;;  %2245 = vmatpush3.bf16.msra.mxu1 %v2476_v10  ;;  %v2477_v11 = vld [vmem:[%s3264_s10 + $0x148] sm:$0xff]  }
 0x4cb   :  { %2246 = vmatprep.subr.bf16.mxu1 %v2477_v11  ;;  %v2493_v10 = vld [vmem:[%s3264_s10 + $0x1c8] sm:$0xff]  }
 0x4cd   :  { %1225 = vmatpush1.bf16.msra.mxu0 %v2442_v13  ;;  %v2478_v13 = vld [vmem:[%s3264_s10 + $0x108] sm:$0xff]  }
 0x4ce   :  { %1226 = vmatprep.subr.bf16.mxu0 %v2447_v14  ;;  %v2098_v14 = vld [vmem:[%s3265_s9 + $0x18] ss:$4 sm:$0x3]  ;;  %2247 = vmatpush3.bf16.msra.mxu1 %v2478_v13 }
 0x4cf   :  { %2248 = vmatprep.subr.bf16.mxu1 %v2479_v17  ;;  %v1510_v20 = vrot.slane %v2098_v14, %v2821_v0  ;;  %v2494_v17 = vld [vmem:[%s3264_s10 + $0x188] sm:$0xff]  }
 0x4d1   :  { %1227 = vmatpush1.bf16.msra.mxu0 %v2445_v18  ;;  %v2480_v18 = vld [vmem:[%s3264_s10 + $0x110] sm:$0xff]  }
 0x4d2   :  { %1228 = vmatprep.subr.bf16.mxu0 %v2450_v19  ;;  %v1506_v19 = vrot.slane %v2098_v14, %v2819_v63  ;;  %2249 = vmatpush3.bf16.msra.mxu1 %v2480_v18 }
 0x4d5   :  { %1229 = vmatpush1.bf16.msra.mxu0 %v2448_v21  ;;  %v2481_v21 = vld [vmem:[%s3264_s10 + $0x158] sm:$0xff]  }
 0x4d6   :  { %1593 = vmatprep.subr.bf16.mxu0 %v2453_v24  ;;  %2250 = vmatprep.subr.bf16.mxu1 %v2481_v21 }
 0x4d7   :  { %2251 = vmatpush3.bf16.msra.mxu1 %v2482_v22  ;;  %v2496_v22 = vld [vmem:[%s3264_s10 + $0x190] sm:$0xff]  }
 0x4d8   :  { %1247 = vmatmul.mubr.bf16.vlgmr.msra.gmra.mrb[12].mxu0 %v1122_v26  ;;  %2252 = vmatprep.subr.bf16.mxu1 %v2483_v23 }
 0x4d9   :  { %1594 = vmatpush1.bf16.msra.mxu0 %v2451_v25  ;;  %1625 = vmatprep.mubr.bf16.mxu0 %v2523_v40  ;;  %v2460_v40 = vld [vmem:[%s3263_s8 + $0x1b0] ss:$8 sps:$4 sm:$0xff]  }
 0x4da   :  { %1595 = vmatprep.subr.bf16.mxu0 %v2456_v27 }
 0x4dd   :  { %1596 = vmatpush1.bf16.msra.mxu0 %v2454_v28 }
 0x4de   :  { %1597 = vmatprep.subr.bf16.mxu0 %v2459_v29  ;;  %v2484_v29 = vld [vmem:[%s3264_s10 + $0x120] sm:$0xff]  }
 0x4df   :  { %2253 = vmatpush3.bf16.msra.mxu1 %v2484_v29  ;;  %v2499_v29 = vld [vmem:[%s3264_s10 + $0x1e0] sm:$0xff]  }
 0x4e1   :  { %1598 = vmatpush1.bf16.msra.mxu0 %v2457_v30 }
 0x4e2   :  { %1599 = vmatprep.subr.bf16.mxu0 %v2462_v31 }
 0x4e5   :  { %1600 = vmatpush1.bf16.msra.mxu0 %v2460_v40 }
 0x4e6   :  { %1601 = vmatprep.subr.bf16.mxu0 %v2465_v32  ;;  %v2485_v32 = vld [vmem:[%s3264_s10 + $0x168] sm:$0xff]  }
 0x4e7   :  { %2254 = vmatprep.subr.bf16.mxu1 %v2485_v32  ;;  %v2502_v32 = vld [vmem:[%s3264_s10 + $0x1a8] sm:$0xff]  }
 0x4e9   :  { %1602 = vmatpush1.bf16.msra.mxu0 %v2463_v33 }
 0x4ea   :  { %1603 = vmatprep.subr.bf16.mxu0 %v2468_v34 }
 0x4ed   :  { %1604 = vmatpush1.bf16.msra.mxu0 %v2466_v35 }
 0x4ee   :  { %1605 = vmatprep.subr.bf16.mxu0 %v2471_v36 }
 0x4f1   :  { %1606 = vmatpush1.bf16.msra.mxu0 %v2469_v38  ;;  %v2486_v38 = vld [vmem:[%s3264_s10 + $0x128] sm:$0xff]  }
 0x4f2   :  { %1607 = vmatprep.subr.bf16.mxu0 %v2474_v39  ;;  %2255 = vmatpush3.bf16.msra.mxu1 %v2486_v38 }
 0x4f3   :  { %2256 = vmatprep.subr.bf16.mxu1 %v2487_v41  ;;  %v2504_v41 = vld [vmem:[%s3264_s10 + $0x1b0] sm:$0xff]  }
 0x4f5   :  { %1608 = vmatpush1.bf16.msra.mxu0 %v2472_v12  ;;  %v2488_v12 = vld [vmem:[%s3264_s10 + $0x130] sm:$0xff]  }
 0x4f6   :  { %2257 = vmatpush3.bf16.msra.mxu1 %v2488_v12 }
 0x4f7   :  { %2258 = vmatprep.subr.bf16.mxu1 %v2489_v15 }
 0x4f8   :  { %1626 = vmatmul.mubr.bf16.vlgmr.msra.gmra.mrb[16].mxu0 %v1501_v43  ;;  %v2491_v43 = vld [vmem:[%s3264_s10 + $0x1c0] sm:$0xff]  }
 0x4fa   :  { %2259 = vmatpush3.bf16.msra.mxu1 %v2490_v42 }
 0x4fb   :  { %2266 = vmatprep.subr.bf16.mxu1 %v2491_v43 }
 0x58b   :  { %v2216_v44 = vpop.f32.mrb[8].mxu0 }
 0x58c   :  { %v2217_v45 = vpop.f32.mrb[9].mxu0 }
 0x58d   :  { %v2218_v46 = vadd.f32 %v2217_v45, %v2216_v44  ;;  %v2219_v47 = vpop.f32.mrb[10].mxu0 }
 0x58e   :  { %v2220_v48 = vpop.f32.mrb[11].mxu0 }
 0x58f   :  { %v2238_v56 = vpop.f32.mrb[8].mxu1 }
 0x590   :  { %v2239_v49 = vpop.f32.mrb[9].mxu1 }
 0x591   :  { %v2240_v50 = vadd.f32 %v2239_v49, %v2238_v56  ;;  %v2241_v51 = vpop.f32.mrb[10].mxu1 }
 0x592   :  { %v2242_v52 = vpop.f32.mrb[11].mxu1  ;;  %v2016_v51 = vld [vmem:[%s3265_s9 + $0x11] ss:$4 sm:$0x3] }
 0x593   :  { %v3090_v53 = vadd.f32 %v2240_v50, %v2218_v46  ;;  %v2017_v52 = vld [vmem:[%s3265_s9 + $0x12] ss:$4 sm:$0x3] }
 0x5ab   :  { %v1248_v9 = vpop.f32.mrb[12].mxu0 }
 0x5ac   :  { %v3097_v57 = vadd.f32 %v1248_v9, %v1127_v55  ;;  %v1250_v58 = vpop.f32.mrb[13].mxu0  ;;  %v1286_v9 = vrot.slane %v2016_v51, %v2821_v0 }
 0x5ad   :  { %v3099_v59 = vadd.f32 %v1250_v58, %v1131_v8  ;;  %v1252_v60 = vpop.f32.mrb[14].mxu0  ;;  %v1282_v8 = vrot.slane %v2016_v51, %v2819_v63 }
 0x5ae   :  { %v1253_v61 = vpop.f32.mrb[15].mxu0  ;;  %v1255_v62 = vsel %vm50_vm1, %v3097_v57, 0.0  ;;  %v1261_v1 = vmul.f32 %v3097_v57, %v3097_v57 }
 0x5af   :  { %v1256_v16 = vsel %vm50_vm1, %v3099_v59, 0.0  ;;  %v1262_v2 = vmul.f32 %v3099_v59, %v3099_v59  ;;  %v1295_v61 = vrot.slane %v2017_v52, %v2819_v63 }
 0x5b0   :  { %v1257_v3 = vadd.f32 %v1256_v16, %v1255_v62  ;;  %v1263_v4 = vsel %vm50_vm1, %v1261_v1, 0.0  ;;  %v1299_v62 = vrot.slane %v2017_v52, %v2821_v0 }
 0x5b1   :  { %v1264_v5 = vsel %vm50_vm1, %v1262_v2, 0.0 }
 0x5b2   :  { %1258 = vadd.xlane.f32.xlu0 %v1257_v3  ;;  %v1265_v6 = vadd.f32 %v1264_v5, %v1263_v4 }
 0x5b4   :  { %1266 = vadd.xlane.f32.xlu1 %v1265_v6 }
 0x5cb   :  { %v1627_v24 = vpop.f32.mrb[16].mxu0 }
 0x5cc   :  { %v3143_v25 = vadd.f32 %v1627_v24, %v1506_v19  ;;  %v1629_v26 = vpop.f32.mrb[17].mxu0  ;;  %v2497_v24 = vld [vmem:[%s3264_s10 + $0x1d8] sm:$0xff]  }
 0x5cd   :  { %v3145_v27 = vadd.f32 %v1629_v26, %v1510_v20  ;;  %v1631_v28 = vpop.f32.mrb[18].mxu0  ;;  %v2495_v20 = vld [vmem:[%s3264_s10 + $0x1d0] sm:$0xff]  }
 0x5ce   :  { %v1632_v30 = vpop.f32.mrb[19].mxu0  ;;  %v1634_v31 = vsel %vm50_vm1, %v3143_v25, 0.0  ;;  %v1640_v40 = vmul.f32 %v3143_v25, %v3143_v25  ;;  %v2498_v28 = vld [vmem:[%s3264_s10 + $0x198] sm:$0xff]  }
 0x5cf   :  { %v1635_v33 = vsel %vm50_vm1, %v3145_v27, 0.0  ;;  %v1641_v34 = vmul.f32 %v3145_v27, %v3145_v27  ;;  %v2500_v30 = vld [vmem:[%s3264_s10 + $0x1a0] sm:$0xff]  }
 0x5d0   :  { %v1636_v35 = vadd.f32 %v1635_v33, %v1634_v31  ;;  %v1642_v36 = vsel %vm50_vm1, %v1640_v40, 0.0  ;;  %v2501_v31 = vld [vmem:[%s3264_s10 + $0x1e8] sm:$0xff]   ;;  %v2099_v40 = vld [vmem:[%s3265_s9 + $0x19] ss:$4 sm:$0x3]  ;;  %v2503_v33 = vld [vmem:[%s3264_s10 + $0x1f0] sm:$0xff]  }
 0x5d1   :  { %v1643_v37 = vsel %vm50_vm1, %v1641_v34, 0.0  ;;  %v2100_v34 = vld [vmem:[%s3265_s9 + $0x1a] ss:$4 sm:$0x3]  ;;  %v1665_v38 = vrot.slane %v2099_v40, %v2821_v0 }
 0x5d2   :  { %1637 = vadd.xlane.f32.xlu0 %v1636_v35  ;;  %v1644_v39 = vadd.f32 %v1643_v37, %v1642_v36  ;;  %v1661_v37 = vrot.slane %v2099_v40, %v2819_v63  ;;  %v1674_v15 = vrot.slane %v2100_v34, %v2819_v63  ;;  %v1678_v42 = vrot.slane %v2100_v34, %v2821_v0 }
 0x5d4   :  { %1645 = vadd.xlane.f32.xlu1 %v1644_v39 }
 0x63f   :  { %v1259_v44 = vpop.xlane.xlu0 %1258 }
 0x640   :  { %v1260_v45 = vmul.f32 0.041666668, %v1259_v44 }
 0x641   :  { %v1267_v46 = vpop.xlane.xlu1 %1266 }
 0x642   :  { %v1268_v47 = vmul.f32 0.041666668, %v1267_v46  ;;  %v1269_v48 = vmul.f32 %v1260_v45, %v1260_v45  ;;  %v1272_v54 = vsub.f32 %v3097_v57, %v1260_v45  ;;  %v1273_v55 = vsub.f32 %v3099_v59, %v1260_v45  ;;  %v2492_v59 = vld [vmem:[%s3264_s10 + $0x180] sm:$0xff]   ;;  %v2506_v45 = vld [vmem:[%s3264_s10 + $0x1b8] sm:$0xff]  }
 0x644   :  { %v1270_v56 = vsub.f32 %v1268_v47, %v1269_v48 }
 0x646   :  { %v1271_v49 = vmax.f32 %v1270_v56, 0.0 }
 0x648   :  { %v1274_v50 = vadd.f32 1e-05, %v1271_v49 }
 0x64a   :  { %2515 = vrsqrt.f32 %v1274_v50 }
 0x654   :  { %v2516_v58 = vpop.eup %2515 }
 0x655   :  { %v1277_v60 = vmul.f32 %v2516_v58, %v1273_v55  ;;  %v1276_v1 = vmul.f32 %v2516_v58, %v1272_v54 }
 0x657   :  { %v1290_v16 = vmul.f32 %v1286_v9, %v1277_v60  ;;  %v1289_v2 = vmul.f32 %v1282_v8, %v1276_v1 }
 0x659   :  { %v1303_v3 = vadd.f32 %v1299_v62, %v1290_v16  ;;  %v1302_v4 = vadd.f32 %v1295_v61, %v1289_v2  ;;  %v2181_v61 = vld [vmem:[%s3268_s11] ss:$0 sm:$0xff] }
 0x65b   :  { %v1305_v5 = vmax.f32 %v1303_v3, 0.0  ;;  %v1304_v6 = vmax.f32 %v1302_v4, 0.0 }
 0x65d   :  { %v1340_v57 = vpack.c.bf16 %v1305_v5, %v1305_v5  ;;  %v1339_v7 = vpack.c.bf16 %v1304_v6, %v1304_v6 }
 0x65f   :  { %1469 = vmatprep.mubr.bf16.mxu1 %v1340_v57  ;;  %v1638_v11 = vpop.xlane.xlu0 %1637 }
 0x660   :  { %v1639_v13 = vmul.f32 0.041666668, %v1638_v11  ;;  %1470 = vmatmul.mubr.bf16.vlgmr.msra.gmra.mrb[12].mxu1 %v1339_v7 }
 0x661   :  { %v1646_v14 = vpop.xlane.xlu1 %1645  ;;  %2267 = vmatpush3.bf16.msra.mxu1 %v2492_v59 }
 0x662   :  { %v1647_v18 = vmul.f32 0.041666668, %v1646_v14  ;;  %v1648_v19 = vmul.f32 %v1639_v13, %v1639_v13  ;;  %2268 = vmatprep.subr.bf16.mxu1 %v2493_v10  ;;  %v1651_v35 = vsub.f32 %v3143_v25, %v1639_v13  ;;  %v1652_v36 = vsub.f32 %v3145_v27, %v1639_v13  ;;  %v2505_v25 = vld [vmem:[%s3264_s10 + $0x1f8] sm:$0xff]  }
 0x664   :  { %v1649_v21 = vsub.f32 %v1647_v18, %v1648_v19 }
 0x665   :  { %2269 = vmatpush3.bf16.msra.mxu1 %v2494_v17 }
 0x666   :  { %v1650_v23 = vmax.f32 %v1649_v21, 0.0  ;;  %2270 = vmatprep.subr.bf16.mxu1 %v2495_v20 }
 0x668   :  { %v1653_v26 = vadd.f32 1e-05, %v1650_v23 }
 0x669   :  { %2271 = vmatpush3.bf16.msra.mxu1 %v2496_v22 }
 0x66a   :  { %2517 = vrsqrt.f32 %v1653_v26  ;;  %2272 = vmatprep.subr.bf16.mxu1 %v2497_v24 }
 0x66d   :  { %2273 = vmatpush3.bf16.msra.mxu1 %v2498_v28 }
 0x66e   :  { %2274 = vmatprep.subr.bf16.mxu1 %v2499_v29 }
 0x671   :  { %2275 = vmatpush3.bf16.msra.mxu1 %v2500_v30 }
 0x672   :  { %2276 = vmatprep.subr.bf16.mxu1 %v2501_v31 }
 0x674   :  { %v2518_v39 = vpop.eup %2517 }
 0x675   :  { %2277 = vmatpush3.bf16.msra.mxu1 %v2502_v32  ;;  %v1656_v12 = vmul.f32 %v2518_v39, %v1652_v36  ;;  %v1655_v43 = vmul.f32 %v2518_v39, %v1651_v35 }
 0x676   :  { %2278 = vmatprep.subr.bf16.mxu1 %v2503_v33 }
 0x677   :  { %v1669_v27 = vmul.f32 %v1665_v38, %v1656_v12  ;;  %v1668_v44 = vmul.f32 %v1661_v37, %v1655_v43 }
 0x679   :  { %2279 = vmatpush3.bf16.msra.mxu1 %v2504_v41  ;;  %v1682_v46 = vadd.f32 %v1678_v42, %v1669_v27  ;;  %v1681_v47 = vadd.f32 %v1674_v15, %v1668_v44 }
 0x67a   :  { %2280 = vmatprep.subr.bf16.mxu1 %v2505_v25 }
 0x67b   :  { %v1684_v48 = vmax.f32 %v1682_v46, 0.0  ;;  %v1683_v63 = vmax.f32 %v1681_v47, 0.0 }
 0x67d   :  { %2281 = vmatpush3.bf16.msra.mxu1 %v2506_v45  ;;  %v1719_v0 = vpack.c.bf16 %v1684_v48, %v1684_v48  ;;  %v1718_v56 = vpack.c.bf16 %v1683_v63, %v1683_v63 }
 0x67f   :  { %1848 = vmatprep.mubr.bf16.mxu1 %v1719_v0 }
 0x680   :  { %1849 = vmatmul.mubr.bf16.vlgmr.msra.gmra.mrb[16].mxu1 %v1718_v56 }
 0x733   :  { %v2260_v49 = vpop.f32.mrb[12].mxu1 }
 0x734   :  { %v2261_v50 = vpop.f32.mrb[13].mxu1 }
 0x735   :  { %v2262_v51 = vadd.f32 %v2261_v50, %v2260_v49  ;;  %v2263_v52 = vpop.f32.mrb[14].mxu1 }
 0x736   :  { %v2264_v54 = vpop.f32.mrb[15].mxu1 }
 0x737   :  { %v1477_v55 = vadd.f32 %v2262_v51, %v3090_v53 }
 0x753   :  { %v2282_v8 = vpop.f32.mrb[16].mxu1 }
 0x754   :  { %v2283_v9 = vpop.f32.mrb[17].mxu1 }
 0x755   :  { %v2284_v58 = vadd.f32 %v2283_v9, %v2282_v8  ;;  %v2285_v60 = vpop.f32.mrb[18].mxu1 }
 0x756   :  { %v2286_v62 = vpop.f32.mrb[19].mxu1 }
 0x757   :  { %v1856_v1 = vadd.f32 %v2284_v58, %v1477_v55 }
 0x759   :  { %v1864_v16 = vadd.f32 %v2181_v61, %v1856_v1 }
 0x75b   :  { %1865 = vst [vmem:[%s3269_s12] sm:$0x3] %v1864_v16 }

</bundles_post_ra>
